<compile_context>
chip_gen: v7x
topology: tpu7x:2x2x1
jax: 0.10.0
libtpu: 0.0.40
codegen_flags: <defaults>
</compile_context>

<pallas_src>
import functools

import jax
import jax.numpy as jnp
from jax.experimental import pallas as pl
from jax.experimental.pallas import tpu as pltpu


_BN_EPS = 1e-5


# ----------------------------- fused Pallas kernel ------------------------------


def _fused_forward_kernel(x_ref, wbuf_ref, vbuf_ref, o_ref, x_scr, *, plan):
    """Whole-model forward for one batch tile.

    x_ref : (b_tile*L0, Cin) f32  batch stacked along rows, channels on lanes
    wbuf  : (rows, W) bf16        all conv weights, restacked as (K*Cin, Cout) blocks
    vbuf  : (rows, W) f32         BN scale/shift + Linear weights/biases (+ tiled W1)
    o_ref : (b_tile, out_features)
    x_scr : (b_tile*L0, C_scr) f32 scratch for the even/odd strided split of stride-2 convs
    """
    b_tile = plan["b_tile"]

    def wload(ent):
        r0, nr, nc = ent
        return wbuf_ref[r0:r0 + nr, 0:nc]

    def vload(ent):
        r0, nr, nc = ent
        return vbuf_ref[r0:r0 + nr, 0:nc]

    def conv_relu(x, w_rhs, k, L, stride):
        """ReLU(Conv1d(x), 'same' zero pad, given stride) over the whole stacked batch tile.

        x: (R, Cin) f32 with R = b_tile * L.  w_rhs: (k*Cin, Cout) bf16.
        Taps are gathered with pltpu.roll + iota boundary masks (XLU/VPU), stride-2 is
        folded in via even/odd strided loads, and the conv is ONE im2col MXU matmul.
        """
        R, cin = x.shape
        pad = k // 2
        Ro, Lo = R // stride, L // stride
        if stride == 1:
            streams = [x]
        else:
            # even/odd row streams at output resolution (halves the encoder matmul work)
            x_scr[0:R, 0:cin] = x
            streams = [x_scr[pl.ds(p, Ro, stride), 0:cin] for p in range(stride)]
        j = jax.lax.broadcasted_iota(jnp.int32, (Ro, 1), 0) % Lo   # per-sample output index
        cols = []
        for t in range(k):
            d = t - pad                       # tap offset in input coordinates
            m, parity = d // stride, d % stride
            col = streams[parity]
            if m != 0:
                col = pltpu.roll(col, shift=(-m) % Ro, axis=0)
                # zero rows whose source position falls in the 'same' zero padding
                col = jnp.where((j + m >= 0) & (j + m < Lo), col, 0.0)
            cols.append(col.astype(jnp.bfloat16))
        lhs = cols[0] if k == 1 else jnp.concatenate(cols, axis=1)  # (Ro, k*Cin) bf16
        y = jnp.dot(lhs, w_rhs, preferred_element_type=jnp.float32)
        return jnp.maximum(y, 0.0)

    x = x_ref[...].astype(jnp.float32)        # (b_tile*L0, Cin)
    L = plan["seq_len"]
    for blk in plan["blocks"]:
        k, stride = blk["k"], blk["stride"]
        y = conv_relu(x, wload(blk["w0"]), k, L, stride)            # Conv(stride) + ReLU
        L //= stride
        if blk["skip"]:
            z = y
            for st in blk["skip"]:
                # eval-mode BatchNorm1d folded to per-channel scale/shift (f32 VPU ops)
                z_bn = z * vload(st["scale"]) + vload(st["shift"])
                z = conv_relu(z_bn, wload(st["w"]), k, L, 1)        # BN -> Conv -> ReLU
            y = y + z                                               # residual add
        x = y

    # Flatten (b_tile*L, 1) -> (b_tile, L) fused with the first Linear:
    # flat @ W1 == G @ (y * tile(W1, b_tile)), with G the per-sample 0/1 row-sum matrix.
    R = x.shape[0]
    bb = jax.lax.broadcasted_iota(jnp.int32, (b_tile, R), 0)
    rr = jax.lax.broadcasted_iota(jnp.int32, (b_tile, R), 1)
    G = ((rr >= bb * L) & (rr < (bb + 1) * L)).astype(jnp.float32)  # (b_tile, R)
    lin = plan["lin"]
    h = jnp.dot(G, x * vload(lin[0]["w"]), preferred_element_type=jnp.float32)
    h = h + vload(lin[0]["b"])
    # TODO(synk): Dropout is identity (eval mode only).
    for i in range(1, len(lin)):
        h = jnp.maximum(h, 0.0)
        h = jnp.dot(h, vload(lin[i]["w"]), preferred_element_type=jnp.float32)
        h = h + vload(lin[i]["b"])
    o_ref[...] = h.astype(o_ref.dtype)


# ----------------------------- wrapper ------------------------------


class _Packer:
    """Packs many small 2D params into one (rows, width) buffer; rows 8-aligned per entry."""

    def __init__(self, width):
        self.width = width
        self.rows = 0
        self.parts = []

    def add(self, a):
        a = jnp.asarray(a)
        nr, nc = a.shape
        ent = (self.rows, nr, nc)
        self.parts.append(a)
        self.rows += -(-nr // 8) * 8
        return ent

    def finalize(self, dtype):
        buf = jnp.zeros((max(self.rows, 8), self.width), dtype)
        r = 0
        for a in self.parts:
            buf = buf.at[r:r + a.shape[0], :a.shape[1]].set(a.astype(dtype))
            r += -(-a.shape[0] // 8) * 8
        return buf


def model_apply(params, x):
    """x: (B, data_width, in_channels); single fused Pallas kernel for the whole forward."""
    B, L0, cin0 = x.shape
    assert params["reducer"][-1]["w0"].shape[2] == 1     # trailing Conv1Block(8, 1, ...)
    b_tile = B if B <= 8 else 8
    assert B % b_tile == 0

    all_blocks = ([(b, 2) for b in params["encoder"]] +
                  [(b, 1) for b in params["reducer"]])
    max_cols = max([blk["w0"].shape[2] for blk, _ in all_blocks] +
                   [w.shape[1] for w, _ in params["lin"]])
    width = -(-max_cols // 128) * 128
    wpack, vpack = _Packer(width), _Packer(width)

    blocks = []
    for blk, stride in all_blocks:
        k, cin, cout = blk["w0"].shape
        assert k % 2 == 1                                 # 'same' padding assumes odd kernel
        entry = {"k": k, "stride": stride,
                 "w0": wpack.add(blk["w0"].reshape(k * cin, cout)), "skip": []}
        for sp in blk["skip"]:
            # general eval-mode BN fold: scale = gamma/sqrt(var+eps), shift = beta - mean*scale
            scale = sp["gamma"] / jnp.sqrt(sp["var"] + _BN_EPS)
            shift = sp["beta"] - sp["mean"] * scale
            entry["skip"].append({
                "scale": vpack.add(scale.reshape(1, cout)),
                "shift": vpack.add(shift.reshape(1, cout)),
                "w": wpack.add(sp["w"].reshape(k * cout, cout)),
            })
        blocks.append(entry)

    lin = []
    w1, b1 = params["lin"][0]
    lin.append({"w": vpack.add(jnp.tile(w1, (b_tile, 1))),   # fused with the flatten
                "b": vpack.add(b1.reshape(1, -1))})
    for w, b in params["lin"][1:]:
        lin.append({"w": vpack.add(w), "b": vpack.add(b.reshape(1, -1))})

    plan = {"b_tile": b_tile, "seq_len": L0, "blocks": blocks, "lin": lin}
    wbuf = wpack.finalize(jnp.bfloat16)        # all matmul RHS weights -> one bf16 DMA
    vbuf = vpack.finalize(jnp.float32)         # BN scale/shift + Linear W/b -> one f32 DMA

    out_features = params["lin"][-1][0].shape[1]
    x_stacked = x.reshape(B * L0, cin0).astype(jnp.float32)
    scr_cols = max([blk["w0"].shape[1] for blk, s in all_blocks if s > 1] + [8])

    kernel = functools.partial(_fused_forward_kernel, plan=plan)
    return pl.pallas_call(
        kernel,
        out_shape=jax.ShapeDtypeStruct((B, out_features), jnp.float32),
        grid=(B // b_tile,),
        in_specs=[
            pl.BlockSpec((b_tile * L0, cin0), lambda b: (b, 0)),
            pl.BlockSpec(wbuf.shape, lambda b: (0, 0)),
            pl.BlockSpec(vbuf.shape, lambda b: (0, 0)),
        ],
        out_specs=pl.BlockSpec((b_tile, out_features), lambda b: (b, 0)),
        scratch_shapes=[pltpu.VMEM((b_tile * L0, scr_cols), jnp.float32)],
        compiler_params=pltpu.CompilerParams(dimension_semantics=("parallel",)),
    )(x_stacked, wbuf, vbuf)


# ----------------------------- parameters ------------------------------


def init_conv_block(key, cin, cout, k, steps):
    keys = jax.random.split(key, 1 + 5 * steps)
    w0 = jax.random.normal(keys[0], (k, cin, cout), jnp.float32) / jnp.sqrt(cin * k)
    skip = []
    for s in range(steps):
        kg, kb, km, kv, kw = keys[1 + 5 * s: 6 + 5 * s]
        skip.append({
            "gamma": 1.0 + 0.1 * jax.random.normal(kg, (cout,), jnp.float32),
            "beta": 0.1 * jax.random.normal(kb, (cout,), jnp.float32),
            "mean": 0.05 * jax.random.normal(km, (cout,), jnp.float32),
            "var": 1.0 + 0.1 * jnp.abs(jax.random.normal(kv, (cout,), jnp.float32)),
            "w": jax.random.normal(kw, (k, cout, cout), jnp.float32) / jnp.sqrt(cout * k),
        })
    return {"w0": w0, "skip": skip}


def init_model(key, *, kernel_size=3, num_layers=2, steps=2, lin_steps=1,
               in_channels=8, out_features=1, data_width=64):
    # The PyTorch reducer hardcodes a trailing Conv1Block(8, 1, ...), so in_channels must be 8.
    assert in_channels == 8
    assert data_width % (2 ** num_layers) == 0
    keys = iter(jax.random.split(key, 4 * num_layers + 8))

    encoder = [init_conv_block(next(keys), in_channels * 2 ** i,
                               in_channels * 2 ** (i + 1), kernel_size, steps)
               for i in range(num_layers)]
    reducer = [init_conv_block(next(keys), in_channels * 2 ** i,
                               in_channels * 2 ** (i - 1), kernel_size, steps)
               for i in range(num_layers, 0, -1)]
    reducer.append(init_conv_block(next(keys), 8, 1, kernel_size, steps))

    oc = data_width // 2 ** num_layers
    lin = []
    for _ in range(lin_steps):
        kw, kb = jax.random.split(next(keys))
        lin.append((jax.random.normal(kw, (oc, oc), jnp.float32) / jnp.sqrt(oc),
                    0.01 * jax.random.normal(kb, (oc,), jnp.float32)))
    kw, kb = jax.random.split(next(keys))
    lin.append((jax.random.normal(kw, (oc, out_features), jnp.float32) / jnp.sqrt(oc),
                0.01 * jax.random.normal(kb, (out_features,), jnp.float32)))
    return {"encoder": encoder, "reducer": reducer, "lin": lin}


# ----------------------------- pure-JAX reference ------------------------------


def _ref_conv(x, w, stride, cast_bf16):
    if cast_bf16:
        x = x.astype(jnp.bfloat16)
        w = w.astype(jnp.bfloat16)
    return jax.lax.conv_general_dilated(
        x, w, window_strides=(stride,),
        padding=[(w.shape[0] // 2, w.shape[0] // 2)],
        dimension_numbers=("NWC", "WIO", "NWC"),
        preferred_element_type=jnp.float32)


def _ref_block(p, x, stride, cast_bf16):
    y = jax.nn.relu(_ref_conv(x, p["w0"], stride, cast_bf16))
    if p["skip"]:
        z = y
        for sp in p["skip"]:
            scale = sp["gamma"] / jnp.sqrt(sp["var"] + _BN_EPS)
            shift = sp["beta"] - sp["mean"] * scale
            z = jax.nn.relu(_ref_conv(z * scale + shift, sp["w"], 1, cast_bf16))
        y = y + z
    return y


def _ref_model(params, x, cast_bf16=False):
    for blk in params["encoder"]:
        x = _ref_block(blk, x, 2, cast_bf16)
    for blk in params["reducer"]:
        x = _ref_block(blk, x, 1, cast_bf16)
    x = x.reshape(x.shape[0], -1)
    for (w, b) in params["lin"][:-1]:
        x = jax.nn.relu(x @ w + b)
    w, b = params["lin"][-1]
    return x @ w + b


# ----------------------------- main ------------------------------


if __name__ == "__main__":
    key = jax.random.PRNGKey(0)
    k_param, k_x = jax.random.split(key)

    # Small config consistent with the module: batch=2, in_channels=8, data_width=64,
    # num_layers=2, steps=2, lin_steps=1, out_features=1.
    B, DW, CIN = 2, 64, 8
    params = init_model(k_param, kernel_size=3, num_layers=2, steps=2,
                        lin_steps=1, in_channels=CIN, out_features=1,
                        data_width=DW)
    x = jax.random.normal(k_x, (B, DW, CIN), jnp.float32)

    y = jax.jit(model_apply)(params, x)
    jax.block_until_ready(y)
    assert y.shape == (B, 1), y.shape

    # Structural check: reference with identical bf16 operands / f32 accumulation.
    y_bf16_ref = _ref_model(params, x, cast_bf16=True)
    assert jnp.allclose(y, y_bf16_ref, rtol=5e-3, atol=5e-3), (y, y_bf16_ref)
    # Full-precision reference: looser tolerance since kernel uses bf16 matmul operands.
    y_ref = _ref_model(params, x, cast_bf16=False)
    assert jnp.allclose(y, y_ref, rtol=5e-2, atol=5e-2), (y, y_ref)

    print("KERNEL_OK")
</pallas_src>

<mosaic_0001>
module attributes {stable_mosaic.version = 11 : i64} {
  func.func @_fused_forward_kernel(%arg0: i32, %arg1: memref<128x8xf32, #tpu.memory_space<vmem>>, %arg2: memref<688x128xbf16, #tpu.memory_space<vmem>>, %arg3: memref<224x128xf32, #tpu.memory_space<vmem>>, %arg4: memref<2x1xf32, #tpu.memory_space<vmem>>, %arg5: memref<128x16xf32, #tpu.memory_space<vmem>>) attributes {dimension_semantics = [#tpu.dimension_semantics<parallel>], iteration_bounds = array<i64: 1>, scalar_prefetch = 0 : i64, scratch_operands = 1 : i64, tpu.core_type = #tpu.core_type<tc>, window_params = [{transform_indices = @transform_0, window_bounds = array<i64: 128, 8>}, {pipeline_mode = #tpu.pipeline_mode<synchronous>, transform_indices = @transform_1, window_bounds = array<i64: 688, 128>}, {pipeline_mode = #tpu.pipeline_mode<synchronous>, transform_indices = @transform_2, window_bounds = array<i64: 224, 128>}, {transform_indices = @transform_3, window_bounds = array<i64: 2, 1>}]} {
    %c0 = arith.constant 0 : index
    %c0_0 = arith.constant 0 : index
    %0 = vector.load %arg1[%c0, %c0_0] : memref<128x8xf32, #tpu.memory_space<vmem>>, vector<128x8xf32>
    %c0_1 = arith.constant 0 : index
    %c0_2 = arith.constant 0 : index
    %1 = vector.load %arg2[%c0_1, %c0_2] : memref<688x128xbf16, #tpu.memory_space<vmem>>, vector<24x16xbf16>
    %c0_3 = arith.constant 0 : index
    %c0_4 = arith.constant 0 : index
    %2 = vector.load %arg5[%c0_3, %c0_4] : memref<128x16xf32, #tpu.memory_space<vmem>>, vector<128x8xf32>
    tpu.vector_store %arg5[%c0_3, %c0_4], %0 {strides = array<i32>} : memref<128x16xf32, #tpu.memory_space<vmem>>, vector<128x8xf32>,
    %c0_5 = arith.constant 0 : index
    %c0_6 = arith.constant 0 : index
    %3 = tpu.strided_load %arg5[%c0_5, %c0_6] {strides = array<i32: 2, 1>} : memref<128x16xf32, #tpu.memory_space<vmem>>, vector<64x8xf32>
    %c1 = arith.constant 1 : index
    %c0_7 = arith.constant 0 : index
    %4 = tpu.strided_load %arg5[%c1, %c0_7] {strides = array<i32: 2, 1>} : memref<128x16xf32, #tpu.memory_space<vmem>>, vector<64x8xf32>
    %5 = tpu.iota {dimensions = array<i32: 0>} : vector<64x1xi32>
    %c32_i32 = arith.constant 32 : i32
    %c0_i32 = arith.constant 0 : i32
    %6 = arith.cmpi eq, %c32_i32, %c0_i32 : i32
    %c1_i32 = arith.constant 1 : i32
    %7 = arith.select %6, %c1_i32, %c32_i32 : i32
    %8 = vector.broadcast %7 : i32 to vector<64x1xi32>
    %9 = arith.remsi %5, %8 : vector<64x1xi32>
    %c0_i32_8 = arith.constant 0 : i32
    %10 = vector.broadcast %c0_i32_8 : i32 to vector<64x1xi32>
    %11 = arith.cmpi ne, %9, %10 : vector<64x1xi32>
    %c0_i32_9 = arith.constant 0 : i32
    %12 = vector.broadcast %c0_i32_9 : i32 to vector<64x1xi32>
    %13 = arith.cmpi slt, %9, %12 : vector<64x1xi32>
    %c0_i32_10 = arith.constant 0 : i32
    %14 = arith.cmpi slt, %7, %c0_i32_10 : i32
    %15 = vector.broadcast %14 : i1 to vector<64x1xi1>
    %16 = vector.broadcast %15 : vector<64x1xi1> to vector<64x1xi1>
    %17 = arith.xori %13, %16 : vector<64x1xi1>
    %18 = arith.andi %17, %11 : vector<64x1xi1>
    %19 = vector.broadcast %7 : i32 to vector<64x1xi32>
    %20 = arith.addi %9, %19 : vector<64x1xi32>
    %21 = arith.select %18, %20, %9 : vector<64x1xi1>, vector<64x1xi32>
    %c1_i32_11 = arith.constant 1 : i32
    %22 = tpu.dynamic_rotate %4 by %c1_i32_11 dim 0 : vector<64x8xf32>, i32 -> vector<64x8xf32>
    %c-1_i32 = arith.constant -1 : i32
    %23 = vector.broadcast %c-1_i32 : i32 to vector<64x1xi32>
    %24 = arith.addi %21, %23 : vector<64x1xi32>
    %c0_i32_12 = arith.constant 0 : i32
    %25 = vector.broadcast %c0_i32_12 : i32 to vector<64x1xi32>
    %26 = arith.cmpi sge, %24, %25 : vector<64x1xi32>
    %c-1_i32_13 = arith.constant -1 : i32
    %27 = vector.broadcast %c-1_i32_13 : i32 to vector<64x1xi32>
    %28 = arith.addi %21, %27 : vector<64x1xi32>
    %c32_i32_14 = arith.constant 32 : i32
    %29 = vector.broadcast %c32_i32_14 : i32 to vector<64x1xi32>
    %30 = arith.cmpi slt, %28, %29 : vector<64x1xi32>
    %31 = arith.andi %26, %30 : vector<64x1xi1>
    %cst = arith.constant 0.000000e+00 : f32
    %32 = vector.shape_cast %31 : vector<64x1xi1> to vector<64x1xi1>
    %33 = vector.broadcast %32 : vector<64x1xi1> to vector<64x8xi1>
    %34 = vector.broadcast %cst : f32 to vector<64x8xf32>
    %35 = arith.select %33, %22, %34 : vector<64x8xi1>, vector<64x8xf32>
    %36 = arith.truncf %35 : vector<64x8xf32> to vector<64x8xbf16>
    %37 = arith.truncf %3 : vector<64x8xf32> to vector<64x8xbf16>
    %38 = arith.truncf %4 : vector<64x8xf32> to vector<64x8xbf16>
    %39 = tpu.concatenate %36, %37, %38 in 1 : vector<64x8xbf16>, vector<64x8xbf16>, vector<64x8xbf16> -> vector<64x24xbf16>
    %cst_15 = arith.constant dense<0.000000e+00> : vector<64x16xf32>
    %40 = tpu.matmul %39, %1, %cst_15 {dimension_numbers = #tpu.dot_dimension_numbers<[1], [0], [0], [1], [0, 0, 1, 1], [], []>} : vector<64x24xbf16>, vector<24x16xbf16>, vector<64x16xf32> -> vector<64x16xf32>
    %cst_16 = arith.constant 0.000000e+00 : f32
    %41 = vector.broadcast %cst_16 : f32 to vector<64x16xf32>
    %42 = arith.maximumf %40, %41 : vector<64x16xf32>
    %c0_17 = arith.constant 0 : index
    %c0_18 = arith.constant 0 : index
    %43 = vector.load %arg3[%c0_17, %c0_18] : memref<224x128xf32, #tpu.memory_space<vmem>>, vector<1x16xf32>
    %44 = vector.broadcast %43 : vector<1x16xf32> to vector<64x16xf32>
    %45 = arith.mulf %42, %44 : vector<64x16xf32>
    %c8 = arith.constant 8 : index
    %c0_19 = arith.constant 0 : index
    %46 = vector.load %arg3[%c8, %c0_19] : memref<224x128xf32, #tpu.memory_space<vmem>>, vector<1x16xf32>
    %47 = vector.broadcast %46 : vector<1x16xf32> to vector<64x16xf32>
    %48 = arith.addf %45, %47 : vector<64x16xf32>
    %c24 = arith.constant 24 : index
    %c0_20 = arith.constant 0 : index
    %49 = vector.load %arg2[%c24, %c0_20] : memref<688x128xbf16, #tpu.memory_space<vmem>>, vector<48x16xbf16>
    %50 = tpu.iota {dimensions = array<i32: 0>} : vector<64x1xi32>
    %c32_i32_21 = arith.constant 32 : i32
    %c0_i32_22 = arith.constant 0 : i32
    %51 = arith.cmpi eq, %c32_i32_21, %c0_i32_22 : i32
    %c1_i32_23 = arith.constant 1 : i32
    %52 = arith.select %51, %c1_i32_23, %c32_i32_21 : i32
    %53 = vector.broadcast %52 : i32 to vector<64x1xi32>
    %54 = arith.remsi %50, %53 : vector<64x1xi32>
    %c0_i32_24 = arith.constant 0 : i32
    %55 = vector.broadcast %c0_i32_24 : i32 to vector<64x1xi32>
    %56 = arith.cmpi ne, %54, %55 : vector<64x1xi32>
    %c0_i32_25 = arith.constant 0 : i32
    %57 = vector.broadcast %c0_i32_25 : i32 to vector<64x1xi32>
    %58 = arith.cmpi slt, %54, %57 : vector<64x1xi32>
    %c0_i32_26 = arith.constant 0 : i32
    %59 = arith.cmpi slt, %52, %c0_i32_26 : i32
    %60 = vector.broadcast %59 : i1 to vector<64x1xi1>
    %61 = vector.broadcast %60 : vector<64x1xi1> to vector<64x1xi1>
    %62 = arith.xori %58, %61 : vector<64x1xi1>
    %63 = arith.andi %62, %56 : vector<64x1xi1>
    %64 = vector.broadcast %52 : i32 to vector<64x1xi32>
    %65 = arith.addi %54, %64 : vector<64x1xi32>
    %66 = arith.select %63, %65, %54 : vector<64x1xi1>, vector<64x1xi32>
    %c1_i32_27 = arith.constant 1 : i32
    %67 = tpu.dynamic_rotate %48 by %c1_i32_27 dim 0 : vector<64x16xf32>, i32 -> vector<64x16xf32>
    %c-1_i32_28 = arith.constant -1 : i32
    %68 = vector.broadcast %c-1_i32_28 : i32 to vector<64x1xi32>
    %69 = arith.addi %66, %68 : vector<64x1xi32>
    %c0_i32_29 = arith.constant 0 : i32
    %70 = vector.broadcast %c0_i32_29 : i32 to vector<64x1xi32>
    %71 = arith.cmpi sge, %69, %70 : vector<64x1xi32>
    %c-1_i32_30 = arith.constant -1 : i32
    %72 = vector.broadcast %c-1_i32_30 : i32 to vector<64x1xi32>
    %73 = arith.addi %66, %72 : vector<64x1xi32>
    %c32_i32_31 = arith.constant 32 : i32
    %74 = vector.broadcast %c32_i32_31 : i32 to vector<64x1xi32>
    %75 = arith.cmpi slt, %73, %74 : vector<64x1xi32>
    %76 = arith.andi %71, %75 : vector<64x1xi1>
    %cst_32 = arith.constant 0.000000e+00 : f32
    %77 = vector.shape_cast %76 : vector<64x1xi1> to vector<64x1xi1>
    %78 = vector.broadcast %77 : vector<64x1xi1> to vector<64x16xi1>
    %79 = vector.broadcast %cst_32 : f32 to vector<64x16xf32>
    %80 = arith.select %78, %67, %79 : vector<64x16xi1>, vector<64x16xf32>
    %81 = arith.truncf %80 : vector<64x16xf32> to vector<64x16xbf16>
    %82 = arith.truncf %48 : vector<64x16xf32> to vector<64x16xbf16>
    %c63_i32 = arith.constant 63 : i32
    %83 = tpu.dynamic_rotate %48 by %c63_i32 dim 0 : vector<64x16xf32>, i32 -> vector<64x16xf32>
    %c1_i32_33 = arith.constant 1 : i32
    %84 = vector.broadcast %c1_i32_33 : i32 to vector<64x1xi32>
    %85 = arith.addi %66, %84 : vector<64x1xi32>
    %c0_i32_34 = arith.constant 0 : i32
    %86 = vector.broadcast %c0_i32_34 : i32 to vector<64x1xi32>
    %87 = arith.cmpi sge, %85, %86 : vector<64x1xi32>
    %c1_i32_35 = arith.constant 1 : i32
    %88 = vector.broadcast %c1_i32_35 : i32 to vector<64x1xi32>
    %89 = arith.addi %66, %88 : vector<64x1xi32>
    %c32_i32_36 = arith.constant 32 : i32
    %90 = vector.broadcast %c32_i32_36 : i32 to vector<64x1xi32>
    %91 = arith.cmpi slt, %89, %90 : vector<64x1xi32>
    %92 = arith.andi %87, %91 : vector<64x1xi1>
    %cst_37 = arith.constant 0.000000e+00 : f32
    %93 = vector.shape_cast %92 : vector<64x1xi1> to vector<64x1xi1>
    %94 = vector.broadcast %93 : vector<64x1xi1> to vector<64x16xi1>
    %95 = vector.broadcast %cst_37 : f32 to vector<64x16xf32>
    %96 = arith.select %94, %83, %95 : vector<64x16xi1>, vector<64x16xf32>
    %97 = arith.truncf %96 : vector<64x16xf32> to vector<64x16xbf16>
    %98 = tpu.concatenate %81, %82, %97 in 1 : vector<64x16xbf16>, vector<64x16xbf16>, vector<64x16xbf16> -> vector<64x48xbf16>
    %cst_38 = arith.constant dense<0.000000e+00> : vector<64x16xf32>
    %99 = tpu.matmul %98, %49, %cst_38 {dimension_numbers = #tpu.dot_dimension_numbers<[1], [0], [0], [1], [0, 0, 1, 1], [], []>} : vector<64x48xbf16>, vector<48x16xbf16>, vector<64x16xf32> -> vector<64x16xf32>
    %cst_39 = arith.constant 0.000000e+00 : f32
    %100 = vector.broadcast %cst_39 : f32 to vector<64x16xf32>
    %101 = arith.maximumf %99, %100 : vector<64x16xf32>
    %c16 = arith.constant 16 : index
    %c0_40 = arith.constant 0 : index
    %102 = vector.load %arg3[%c16, %c0_40] : memref<224x128xf32, #tpu.memory_space<vmem>>, vector<1x16xf32>
    %103 = vector.broadcast %102 : vector<1x16xf32> to vector<64x16xf32>
    %104 = arith.mulf %101, %103 : vector<64x16xf32>
    %c24_41 = arith.constant 24 : index
    %c0_42 = arith.constant 0 : index
    %105 = vector.load %arg3[%c24_41, %c0_42] : memref<224x128xf32, #tpu.memory_space<vmem>>, vector<1x16xf32>
    %106 = vector.broadcast %105 : vector<1x16xf32> to vector<64x16xf32>
    %107 = arith.addf %104, %106 : vector<64x16xf32>
    %c72 = arith.constant 72 : index
    %c0_43 = arith.constant 0 : index
    %108 = vector.load %arg2[%c72, %c0_43] : memref<688x128xbf16, #tpu.memory_space<vmem>>, vector<48x16xbf16>
    %109 = tpu.iota {dimensions = array<i32: 0>} : vector<64x1xi32>
    %c32_i32_44 = arith.constant 32 : i32
    %c0_i32_45 = arith.constant 0 : i32
    %110 = arith.cmpi eq, %c32_i32_44, %c0_i32_45 : i32
    %c1_i32_46 = arith.constant 1 : i32
    %111 = arith.select %110, %c1_i32_46, %c32_i32_44 : i32
    %112 = vector.broadcast %111 : i32 to vector<64x1xi32>
    %113 = arith.remsi %109, %112 : vector<64x1xi32>
    %c0_i32_47 = arith.constant 0 : i32
    %114 = vector.broadcast %c0_i32_47 : i32 to vector<64x1xi32>
    %115 = arith.cmpi ne, %113, %114 : vector<64x1xi32>
    %c0_i32_48 = arith.constant 0 : i32
    %116 = vector.broadcast %c0_i32_48 : i32 to vector<64x1xi32>
    %117 = arith.cmpi slt, %113, %116 : vector<64x1xi32>
    %c0_i32_49 = arith.constant 0 : i32
    %118 = arith.cmpi slt, %111, %c0_i32_49 : i32
    %119 = vector.broadcast %118 : i1 to vector<64x1xi1>
    %120 = vector.broadcast %119 : vector<64x1xi1> to vector<64x1xi1>
    %121 = arith.xori %117, %120 : vector<64x1xi1>
    %122 = arith.andi %121, %115 : vector<64x1xi1>
    %123 = vector.broadcast %111 : i32 to vector<64x1xi32>
    %124 = arith.addi %113, %123 : vector<64x1xi32>
    %125 = arith.select %122, %124, %113 : vector<64x1xi1>, vector<64x1xi32>
    %c1_i32_50 = arith.constant 1 : i32
    %126 = tpu.dynamic_rotate %107 by %c1_i32_50 dim 0 : vector<64x16xf32>, i32 -> vector<64x16xf32>
    %c-1_i32_51 = arith.constant -1 : i32
    %127 = vector.broadcast %c-1_i32_51 : i32 to vector<64x1xi32>
    %128 = arith.addi %125, %127 : vector<64x1xi32>
    %c0_i32_52 = arith.constant 0 : i32
    %129 = vector.broadcast %c0_i32_52 : i32 to vector<64x1xi32>
    %130 = arith.cmpi sge, %128, %129 : vector<64x1xi32>
    %c-1_i32_53 = arith.constant -1 : i32
    %131 = vector.broadcast %c-1_i32_53 : i32 to vector<64x1xi32>
    %132 = arith.addi %125, %131 : vector<64x1xi32>
    %c32_i32_54 = arith.constant 32 : i32
    %133 = vector.broadcast %c32_i32_54 : i32 to vector<64x1xi32>
    %134 = arith.cmpi slt, %132, %133 : vector<64x1xi32>
    %135 = arith.andi %130, %134 : vector<64x1xi1>
    %cst_55 = arith.constant 0.000000e+00 : f32
    %136 = vector.shape_cast %135 : vector<64x1xi1> to vector<64x1xi1>
    %137 = vector.broadcast %136 : vector<64x1xi1> to vector<64x16xi1>
    %138 = vector.broadcast %cst_55 : f32 to vector<64x16xf32>
    %139 = arith.select %137, %126, %138 : vector<64x16xi1>, vector<64x16xf32>
    %140 = arith.truncf %139 : vector<64x16xf32> to vector<64x16xbf16>
    %141 = arith.truncf %107 : vector<64x16xf32> to vector<64x16xbf16>
    %c63_i32_56 = arith.constant 63 : i32
    %142 = tpu.dynamic_rotate %107 by %c63_i32_56 dim 0 : vector<64x16xf32>, i32 -> vector<64x16xf32>
    %c1_i32_57 = arith.constant 1 : i32
    %143 = vector.broadcast %c1_i32_57 : i32 to vector<64x1xi32>
    %144 = arith.addi %125, %143 : vector<64x1xi32>
    %c0_i32_58 = arith.constant 0 : i32
    %145 = vector.broadcast %c0_i32_58 : i32 to vector<64x1xi32>
    %146 = arith.cmpi sge, %144, %145 : vector<64x1xi32>
    %c1_i32_59 = arith.constant 1 : i32
    %147 = vector.broadcast %c1_i32_59 : i32 to vector<64x1xi32>
    %148 = arith.addi %125, %147 : vector<64x1xi32>
    %c32_i32_60 = arith.constant 32 : i32
    %149 = vector.broadcast %c32_i32_60 : i32 to vector<64x1xi32>
    %150 = arith.cmpi slt, %148, %149 : vector<64x1xi32>
    %151 = arith.andi %146, %150 : vector<64x1xi1>
    %cst_61 = arith.constant 0.000000e+00 : f32
    %152 = vector.shape_cast %151 : vector<64x1xi1> to vector<64x1xi1>
    %153 = vector.broadcast %152 : vector<64x1xi1> to vector<64x16xi1>
    %154 = vector.broadcast %cst_61 : f32 to vector<64x16xf32>
    %155 = arith.select %153, %142, %154 : vector<64x16xi1>, vector<64x16xf32>
    %156 = arith.truncf %155 : vector<64x16xf32> to vector<64x16xbf16>
    %157 = tpu.concatenate %140, %141, %156 in 1 : vector<64x16xbf16>, vector<64x16xbf16>, vector<64x16xbf16> -> vector<64x48xbf16>
    %cst_62 = arith.constant dense<0.000000e+00> : vector<64x16xf32>
    %158 = tpu.matmul %157, %108, %cst_62 {dimension_numbers = #tpu.dot_dimension_numbers<[1], [0], [0], [1], [0, 0, 1, 1], [], []>} : vector<64x48xbf16>, vector<48x16xbf16>, vector<64x16xf32> -> vector<64x16xf32>
    %cst_63 = arith.constant 0.000000e+00 : f32
    %159 = vector.broadcast %cst_63 : f32 to vector<64x16xf32>
    %160 = arith.maximumf %158, %159 : vector<64x16xf32>
    %161 = arith.addf %42, %160 : vector<64x16xf32>
    %c120 = arith.constant 120 : index
    %c0_64 = arith.constant 0 : index
    %162 = vector.load %arg2[%c120, %c0_64] : memref<688x128xbf16, #tpu.memory_space<vmem>>, vector<48x32xbf16>
    %c0_65 = arith.constant 0 : index
    %c0_66 = arith.constant 0 : index
    %163 = vector.load %arg5[%c0_65, %c0_66] : memref<128x16xf32, #tpu.memory_space<vmem>>, vector<64x16xf32>
    tpu.vector_store %arg5[%c0_65, %c0_66], %161 {strides = array<i32>} : memref<128x16xf32, #tpu.memory_space<vmem>>, vector<64x16xf32>,
    %c0_67 = arith.constant 0 : index
    %c0_68 = arith.constant 0 : index
    %164 = tpu.strided_load %arg5[%c0_67, %c0_68] {strides = array<i32: 2, 1>} : memref<128x16xf32, #tpu.memory_space<vmem>>, vector<32x16xf32>
    %c1_69 = arith.constant 1 : index
    %c0_70 = arith.constant 0 : index
    %165 = tpu.strided_load %arg5[%c1_69, %c0_70] {strides = array<i32: 2, 1>} : memref<128x16xf32, #tpu.memory_space<vmem>>, vector<32x16xf32>
    %166 = tpu.iota {dimensions = array<i32: 0>} : vector<32x1xi32>
    %c16_i32 = arith.constant 16 : i32
    %c0_i32_71 = arith.constant 0 : i32
    %167 = arith.cmpi eq, %c16_i32, %c0_i32_71 : i32
    %c1_i32_72 = arith.constant 1 : i32
    %168 = arith.select %167, %c1_i32_72, %c16_i32 : i32
    %169 = vector.broadcast %168 : i32 to vector<32x1xi32>
    %170 = arith.remsi %166, %169 : vector<32x1xi32>
    %c0_i32_73 = arith.constant 0 : i32
    %171 = vector.broadcast %c0_i32_73 : i32 to vector<32x1xi32>
    %172 = arith.cmpi ne, %170, %171 : vector<32x1xi32>
    %c0_i32_74 = arith.constant 0 : i32
    %173 = vector.broadcast %c0_i32_74 : i32 to vector<32x1xi32>
    %174 = arith.cmpi slt, %170, %173 : vector<32x1xi32>
    %c0_i32_75 = arith.constant 0 : i32
    %175 = arith.cmpi slt, %168, %c0_i32_75 : i32
    %176 = vector.broadcast %175 : i1 to vector<32x1xi1>
    %177 = vector.broadcast %176 : vector<32x1xi1> to vector<32x1xi1>
    %178 = arith.xori %174, %177 : vector<32x1xi1>
    %179 = arith.andi %178, %172 : vector<32x1xi1>
    %180 = vector.broadcast %168 : i32 to vector<32x1xi32>
    %181 = arith.addi %170, %180 : vector<32x1xi32>
    %182 = arith.select %179, %181, %170 : vector<32x1xi1>, vector<32x1xi32>
    %c1_i32_76 = arith.constant 1 : i32
    %183 = tpu.dynamic_rotate %165 by %c1_i32_76 dim 0 : vector<32x16xf32>, i32 -> vector<32x16xf32>
    %c-1_i32_77 = arith.constant -1 : i32
    %184 = vector.broadcast %c-1_i32_77 : i32 to vector<32x1xi32>
    %185 = arith.addi %182, %184 : vector<32x1xi32>
    %c0_i32_78 = arith.constant 0 : i32
    %186 = vector.broadcast %c0_i32_78 : i32 to vector<32x1xi32>
    %187 = arith.cmpi sge, %185, %186 : vector<32x1xi32>
    %c-1_i32_79 = arith.constant -1 : i32
    %188 = vector.broadcast %c-1_i32_79 : i32 to vector<32x1xi32>
    %189 = arith.addi %182, %188 : vector<32x1xi32>
    %c16_i32_80 = arith.constant 16 : i32
    %190 = vector.broadcast %c16_i32_80 : i32 to vector<32x1xi32>
    %191 = arith.cmpi slt, %189, %190 : vector<32x1xi32>
    %192 = arith.andi %187, %191 : vector<32x1xi1>
    %cst_81 = arith.constant 0.000000e+00 : f32
    %193 = vector.shape_cast %192 : vector<32x1xi1> to vector<32x1xi1>
    %194 = vector.broadcast %193 : vector<32x1xi1> to vector<32x16xi1>
    %195 = vector.broadcast %cst_81 : f32 to vector<32x16xf32>
    %196 = arith.select %194, %183, %195 : vector<32x16xi1>, vector<32x16xf32>
    %197 = arith.truncf %196 : vector<32x16xf32> to vector<32x16xbf16>
    %198 = arith.truncf %164 : vector<32x16xf32> to vector<32x16xbf16>
    %199 = arith.truncf %165 : vector<32x16xf32> to vector<32x16xbf16>
    %200 = tpu.concatenate %197, %198, %199 in 1 : vector<32x16xbf16>, vector<32x16xbf16>, vector<32x16xbf16> -> vector<32x48xbf16>
    %cst_82 = arith.constant dense<0.000000e+00> : vector<32x32xf32>
    %201 = tpu.matmul %200, %162, %cst_82 {dimension_numbers = #tpu.dot_dimension_numbers<[1], [0], [0], [1], [0, 0, 1, 1], [], []>} : vector<32x48xbf16>, vector<48x32xbf16>, vector<32x32xf32> -> vector<32x32xf32>
    %cst_83 = arith.constant 0.000000e+00 : f32
    %202 = vector.broadcast %cst_83 : f32 to vector<32x32xf32>
    %203 = arith.maximumf %201, %202 : vector<32x32xf32>
    %c32 = arith.constant 32 : index
    %c0_84 = arith.constant 0 : index
    %204 = vector.load %arg3[%c32, %c0_84] : memref<224x128xf32, #tpu.memory_space<vmem>>, vector<1x32xf32>
    %205 = vector.broadcast %204 : vector<1x32xf32> to vector<32x32xf32>
    %206 = arith.mulf %203, %205 : vector<32x32xf32>
    %c40 = arith.constant 40 : index
    %c0_85 = arith.constant 0 : index
    %207 = vector.load %arg3[%c40, %c0_85] : memref<224x128xf32, #tpu.memory_space<vmem>>, vector<1x32xf32>
    %208 = vector.broadcast %207 : vector<1x32xf32> to vector<32x32xf32>
    %209 = arith.addf %206, %208 : vector<32x32xf32>
    %c168 = arith.constant 168 : index
    %c0_86 = arith.constant 0 : index
    %210 = vector.load %arg2[%c168, %c0_86] : memref<688x128xbf16, #tpu.memory_space<vmem>>, vector<96x32xbf16>
    %211 = tpu.iota {dimensions = array<i32: 0>} : vector<32x1xi32>
    %c16_i32_87 = arith.constant 16 : i32
    %c0_i32_88 = arith.constant 0 : i32
    %212 = arith.cmpi eq, %c16_i32_87, %c0_i32_88 : i32
    %c1_i32_89 = arith.constant 1 : i32
    %213 = arith.select %212, %c1_i32_89, %c16_i32_87 : i32
    %214 = vector.broadcast %213 : i32 to vector<32x1xi32>
    %215 = arith.remsi %211, %214 : vector<32x1xi32>
    %c0_i32_90 = arith.constant 0 : i32
    %216 = vector.broadcast %c0_i32_90 : i32 to vector<32x1xi32>
    %217 = arith.cmpi ne, %215, %216 : vector<32x1xi32>
    %c0_i32_91 = arith.constant 0 : i32
    %218 = vector.broadcast %c0_i32_91 : i32 to vector<32x1xi32>
    %219 = arith.cmpi slt, %215, %218 : vector<32x1xi32>
    %c0_i32_92 = arith.constant 0 : i32
    %220 = arith.cmpi slt, %213, %c0_i32_92 : i32
    %221 = vector.broadcast %220 : i1 to vector<32x1xi1>
    %222 = vector.broadcast %221 : vector<32x1xi1> to vector<32x1xi1>
    %223 = arith.xori %219, %222 : vector<32x1xi1>
    %224 = arith.andi %223, %217 : vector<32x1xi1>
    %225 = vector.broadcast %213 : i32 to vector<32x1xi32>
    %226 = arith.addi %215, %225 : vector<32x1xi32>
    %227 = arith.select %224, %226, %215 : vector<32x1xi1>, vector<32x1xi32>
    %c1_i32_93 = arith.constant 1 : i32
    %228 = tpu.dynamic_rotate %209 by %c1_i32_93 dim 0 : vector<32x32xf32>, i32 -> vector<32x32xf32>
    %c-1_i32_94 = arith.constant -1 : i32
    %229 = vector.broadcast %c-1_i32_94 : i32 to vector<32x1xi32>
    %230 = arith.addi %227, %229 : vector<32x1xi32>
    %c0_i32_95 = arith.constant 0 : i32
    %231 = vector.broadcast %c0_i32_95 : i32 to vector<32x1xi32>
    %232 = arith.cmpi sge, %230, %231 : vector<32x1xi32>
    %c-1_i32_96 = arith.constant -1 : i32
    %233 = vector.broadcast %c-1_i32_96 : i32 to vector<32x1xi32>
    %234 = arith.addi %227, %233 : vector<32x1xi32>
    %c16_i32_97 = arith.constant 16 : i32
    %235 = vector.broadcast %c16_i32_97 : i32 to vector<32x1xi32>
    %236 = arith.cmpi slt, %234, %235 : vector<32x1xi32>
    %237 = arith.andi %232, %236 : vector<32x1xi1>
    %cst_98 = arith.constant 0.000000e+00 : f32
    %238 = vector.shape_cast %237 : vector<32x1xi1> to vector<32x1xi1>
    %239 = vector.broadcast %238 : vector<32x1xi1> to vector<32x32xi1>
    %240 = vector.broadcast %cst_98 : f32 to vector<32x32xf32>
    %241 = arith.select %239, %228, %240 : vector<32x32xi1>, vector<32x32xf32>
    %242 = arith.truncf %241 : vector<32x32xf32> to vector<32x32xbf16>
    %243 = arith.truncf %209 : vector<32x32xf32> to vector<32x32xbf16>
    %c31_i32 = arith.constant 31 : i32
    %244 = tpu.dynamic_rotate %209 by %c31_i32 dim 0 : vector<32x32xf32>, i32 -> vector<32x32xf32>
    %c1_i32_99 = arith.constant 1 : i32
    %245 = vector.broadcast %c1_i32_99 : i32 to vector<32x1xi32>
    %246 = arith.addi %227, %245 : vector<32x1xi32>
    %c0_i32_100 = arith.constant 0 : i32
    %247 = vector.broadcast %c0_i32_100 : i32 to vector<32x1xi32>
    %248 = arith.cmpi sge, %246, %247 : vector<32x1xi32>
    %c1_i32_101 = arith.constant 1 : i32
    %249 = vector.broadcast %c1_i32_101 : i32 to vector<32x1xi32>
    %250 = arith.addi %227, %249 : vector<32x1xi32>
    %c16_i32_102 = arith.constant 16 : i32
    %251 = vector.broadcast %c16_i32_102 : i32 to vector<32x1xi32>
    %252 = arith.cmpi slt, %250, %251 : vector<32x1xi32>
    %253 = arith.andi %248, %252 : vector<32x1xi1>
    %cst_103 = arith.constant 0.000000e+00 : f32
    %254 = vector.shape_cast %253 : vector<32x1xi1> to vector<32x1xi1>
    %255 = vector.broadcast %254 : vector<32x1xi1> to vector<32x32xi1>
    %256 = vector.broadcast %cst_103 : f32 to vector<32x32xf32>
    %257 = arith.select %255, %244, %256 : vector<32x32xi1>, vector<32x32xf32>
    %258 = arith.truncf %257 : vector<32x32xf32> to vector<32x32xbf16>
    %259 = tpu.concatenate %242, %243, %258 in 1 : vector<32x32xbf16>, vector<32x32xbf16>, vector<32x32xbf16> -> vector<32x96xbf16>
    %cst_104 = arith.constant dense<0.000000e+00> : vector<32x32xf32>
    %260 = tpu.matmul %259, %210, %cst_104 {dimension_numbers = #tpu.dot_dimension_numbers<[1], [0], [0], [1], [0, 0, 1, 1], [], []>} : vector<32x96xbf16>, vector<96x32xbf16>, vector<32x32xf32> -> vector<32x32xf32>
    %cst_105 = arith.constant 0.000000e+00 : f32
    %261 = vector.broadcast %cst_105 : f32 to vector<32x32xf32>
    %262 = arith.maximumf %260, %261 : vector<32x32xf32>
    %c48 = arith.constant 48 : index
    %c0_106 = arith.constant 0 : index
    %263 = vector.load %arg3[%c48, %c0_106] : memref<224x128xf32, #tpu.memory_space<vmem>>, vector<1x32xf32>
    %264 = vector.broadcast %263 : vector<1x32xf32> to vector<32x32xf32>
    %265 = arith.mulf %262, %264 : vector<32x32xf32>
    %c56 = arith.constant 56 : index
    %c0_107 = arith.constant 0 : index
    %266 = vector.load %arg3[%c56, %c0_107] : memref<224x128xf32, #tpu.memory_space<vmem>>, vector<1x32xf32>
    %267 = vector.broadcast %266 : vector<1x32xf32> to vector<32x32xf32>
    %268 = arith.addf %265, %267 : vector<32x32xf32>
    %c264 = arith.constant 264 : index
    %c0_108 = arith.constant 0 : index
    %269 = vector.load %arg2[%c264, %c0_108] : memref<688x128xbf16, #tpu.memory_space<vmem>>, vector<96x32xbf16>
    %270 = tpu.iota {dimensions = array<i32: 0>} : vector<32x1xi32>
    %c16_i32_109 = arith.constant 16 : i32
    %c0_i32_110 = arith.constant 0 : i32
    %271 = arith.cmpi eq, %c16_i32_109, %c0_i32_110 : i32
    %c1_i32_111 = arith.constant 1 : i32
    %272 = arith.select %271, %c1_i32_111, %c16_i32_109 : i32
    %273 = vector.broadcast %272 : i32 to vector<32x1xi32>
    %274 = arith.remsi %270, %273 : vector<32x1xi32>
    %c0_i32_112 = arith.constant 0 : i32
    %275 = vector.broadcast %c0_i32_112 : i32 to vector<32x1xi32>
    %276 = arith.cmpi ne, %274, %275 : vector<32x1xi32>
    %c0_i32_113 = arith.constant 0 : i32
    %277 = vector.broadcast %c0_i32_113 : i32 to vector<32x1xi32>
    %278 = arith.cmpi slt, %274, %277 : vector<32x1xi32>
    %c0_i32_114 = arith.constant 0 : i32
    %279 = arith.cmpi slt, %272, %c0_i32_114 : i32
    %280 = vector.broadcast %279 : i1 to vector<32x1xi1>
    %281 = vector.broadcast %280 : vector<32x1xi1> to vector<32x1xi1>
    %282 = arith.xori %278, %281 : vector<32x1xi1>
    %283 = arith.andi %282, %276 : vector<32x1xi1>
    %284 = vector.broadcast %272 : i32 to vector<32x1xi32>
    %285 = arith.addi %274, %284 : vector<32x1xi32>
    %286 = arith.select %283, %285, %274 : vector<32x1xi1>, vector<32x1xi32>
    %c1_i32_115 = arith.constant 1 : i32
    %287 = tpu.dynamic_rotate %268 by %c1_i32_115 dim 0 : vector<32x32xf32>, i32 -> vector<32x32xf32>
    %c-1_i32_116 = arith.constant -1 : i32
    %288 = vector.broadcast %c-1_i32_116 : i32 to vector<32x1xi32>
    %289 = arith.addi %286, %288 : vector<32x1xi32>
    %c0_i32_117 = arith.constant 0 : i32
    %290 = vector.broadcast %c0_i32_117 : i32 to vector<32x1xi32>
    %291 = arith.cmpi sge, %289, %290 : vector<32x1xi32>
    %c-1_i32_118 = arith.constant -1 : i32
    %292 = vector.broadcast %c-1_i32_118 : i32 to vector<32x1xi32>
    %293 = arith.addi %286, %292 : vector<32x1xi32>
    %c16_i32_119 = arith.constant 16 : i32
    %294 = vector.broadcast %c16_i32_119 : i32 to vector<32x1xi32>
    %295 = arith.cmpi slt, %293, %294 : vector<32x1xi32>
    %296 = arith.andi %291, %295 : vector<32x1xi1>
    %cst_120 = arith.constant 0.000000e+00 : f32
    %297 = vector.shape_cast %296 : vector<32x1xi1> to vector<32x1xi1>
    %298 = vector.broadcast %297 : vector<32x1xi1> to vector<32x32xi1>
    %299 = vector.broadcast %cst_120 : f32 to vector<32x32xf32>
    %300 = arith.select %298, %287, %299 : vector<32x32xi1>, vector<32x32xf32>
    %301 = arith.truncf %300 : vector<32x32xf32> to vector<32x32xbf16>
    %302 = arith.truncf %268 : vector<32x32xf32> to vector<32x32xbf16>
    %c31_i32_121 = arith.constant 31 : i32
    %303 = tpu.dynamic_rotate %268 by %c31_i32_121 dim 0 : vector<32x32xf32>, i32 -> vector<32x32xf32>
    %c1_i32_122 = arith.constant 1 : i32
    %304 = vector.broadcast %c1_i32_122 : i32 to vector<32x1xi32>
    %305 = arith.addi %286, %304 : vector<32x1xi32>
    %c0_i32_123 = arith.constant 0 : i32
    %306 = vector.broadcast %c0_i32_123 : i32 to vector<32x1xi32>
    %307 = arith.cmpi sge, %305, %306 : vector<32x1xi32>
    %c1_i32_124 = arith.constant 1 : i32
    %308 = vector.broadcast %c1_i32_124 : i32 to vector<32x1xi32>
    %309 = arith.addi %286, %308 : vector<32x1xi32>
    %c16_i32_125 = arith.constant 16 : i32
    %310 = vector.broadcast %c16_i32_125 : i32 to vector<32x1xi32>
    %311 = arith.cmpi slt, %309, %310 : vector<32x1xi32>
    %312 = arith.andi %307, %311 : vector<32x1xi1>
    %cst_126 = arith.constant 0.000000e+00 : f32
    %313 = vector.shape_cast %312 : vector<32x1xi1> to vector<32x1xi1>
    %314 = vector.broadcast %313 : vector<32x1xi1> to vector<32x32xi1>
    %315 = vector.broadcast %cst_126 : f32 to vector<32x32xf32>
    %316 = arith.select %314, %303, %315 : vector<32x32xi1>, vector<32x32xf32>
    %317 = arith.truncf %316 : vector<32x32xf32> to vector<32x32xbf16>
    %318 = tpu.concatenate %301, %302, %317 in 1 : vector<32x32xbf16>, vector<32x32xbf16>, vector<32x32xbf16> -> vector<32x96xbf16>
    %cst_127 = arith.constant dense<0.000000e+00> : vector<32x32xf32>
    %319 = tpu.matmul %318, %269, %cst_127 {dimension_numbers = #tpu.dot_dimension_numbers<[1], [0], [0], [1], [0, 0, 1, 1], [], []>} : vector<32x96xbf16>, vector<96x32xbf16>, vector<32x32xf32> -> vector<32x32xf32>
    %cst_128 = arith.constant 0.000000e+00 : f32
    %320 = vector.broadcast %cst_128 : f32 to vector<32x32xf32>
    %321 = arith.maximumf %319, %320 : vector<32x32xf32>
    %322 = arith.addf %203, %321 : vector<32x32xf32>
    %c360 = arith.constant 360 : index
    %c0_129 = arith.constant 0 : index
    %323 = vector.load %arg2[%c360, %c0_129] : memref<688x128xbf16, #tpu.memory_space<vmem>>, vector<96x16xbf16>
    %324 = tpu.iota {dimensions = array<i32: 0>} : vector<32x1xi32>
    %c16_i32_130 = arith.constant 16 : i32
    %c0_i32_131 = arith.constant 0 : i32
    %325 = arith.cmpi eq, %c16_i32_130, %c0_i32_131 : i32
    %c1_i32_132 = arith.constant 1 : i32
    %326 = arith.select %325, %c1_i32_132, %c16_i32_130 : i32
    %327 = vector.broadcast %326 : i32 to vector<32x1xi32>
    %328 = arith.remsi %324, %327 : vector<32x1xi32>
    %c0_i32_133 = arith.constant 0 : i32
    %329 = vector.broadcast %c0_i32_133 : i32 to vector<32x1xi32>
    %330 = arith.cmpi ne, %328, %329 : vector<32x1xi32>
    %c0_i32_134 = arith.constant 0 : i32
    %331 = vector.broadcast %c0_i32_134 : i32 to vector<32x1xi32>
    %332 = arith.cmpi slt, %328, %331 : vector<32x1xi32>
    %c0_i32_135 = arith.constant 0 : i32
    %333 = arith.cmpi slt, %326, %c0_i32_135 : i32
    %334 = vector.broadcast %333 : i1 to vector<32x1xi1>
    %335 = vector.broadcast %334 : vector<32x1xi1> to vector<32x1xi1>
    %336 = arith.xori %332, %335 : vector<32x1xi1>
    %337 = arith.andi %336, %330 : vector<32x1xi1>
    %338 = vector.broadcast %326 : i32 to vector<32x1xi32>
    %339 = arith.addi %328, %338 : vector<32x1xi32>
    %340 = arith.select %337, %339, %328 : vector<32x1xi1>, vector<32x1xi32>
    %c1_i32_136 = arith.constant 1 : i32
    %341 = tpu.dynamic_rotate %322 by %c1_i32_136 dim 0 : vector<32x32xf32>, i32 -> vector<32x32xf32>
    %c-1_i32_137 = arith.constant -1 : i32
    %342 = vector.broadcast %c-1_i32_137 : i32 to vector<32x1xi32>
    %343 = arith.addi %340, %342 : vector<32x1xi32>
    %c0_i32_138 = arith.constant 0 : i32
    %344 = vector.broadcast %c0_i32_138 : i32 to vector<32x1xi32>
    %345 = arith.cmpi sge, %343, %344 : vector<32x1xi32>
    %c-1_i32_139 = arith.constant -1 : i32
    %346 = vector.broadcast %c-1_i32_139 : i32 to vector<32x1xi32>
    %347 = arith.addi %340, %346 : vector<32x1xi32>
    %c16_i32_140 = arith.constant 16 : i32
    %348 = vector.broadcast %c16_i32_140 : i32 to vector<32x1xi32>
    %349 = arith.cmpi slt, %347, %348 : vector<32x1xi32>
    %350 = arith.andi %345, %349 : vector<32x1xi1>
    %cst_141 = arith.constant 0.000000e+00 : f32
    %351 = vector.shape_cast %350 : vector<32x1xi1> to vector<32x1xi1>
    %352 = vector.broadcast %351 : vector<32x1xi1> to vector<32x32xi1>
    %353 = vector.broadcast %cst_141 : f32 to vector<32x32xf32>
    %354 = arith.select %352, %341, %353 : vector<32x32xi1>, vector<32x32xf32>
    %355 = arith.truncf %354 : vector<32x32xf32> to vector<32x32xbf16>
    %356 = arith.truncf %322 : vector<32x32xf32> to vector<32x32xbf16>
    %c31_i32_142 = arith.constant 31 : i32
    %357 = tpu.dynamic_rotate %322 by %c31_i32_142 dim 0 : vector<32x32xf32>, i32 -> vector<32x32xf32>
    %c1_i32_143 = arith.constant 1 : i32
    %358 = vector.broadcast %c1_i32_143 : i32 to vector<32x1xi32>
    %359 = arith.addi %340, %358 : vector<32x1xi32>
    %c0_i32_144 = arith.constant 0 : i32
    %360 = vector.broadcast %c0_i32_144 : i32 to vector<32x1xi32>
    %361 = arith.cmpi sge, %359, %360 : vector<32x1xi32>
    %c1_i32_145 = arith.constant 1 : i32
    %362 = vector.broadcast %c1_i32_145 : i32 to vector<32x1xi32>
    %363 = arith.addi %340, %362 : vector<32x1xi32>
    %c16_i32_146 = arith.constant 16 : i32
    %364 = vector.broadcast %c16_i32_146 : i32 to vector<32x1xi32>
    %365 = arith.cmpi slt, %363, %364 : vector<32x1xi32>
    %366 = arith.andi %361, %365 : vector<32x1xi1>
    %cst_147 = arith.constant 0.000000e+00 : f32
    %367 = vector.shape_cast %366 : vector<32x1xi1> to vector<32x1xi1>
    %368 = vector.broadcast %367 : vector<32x1xi1> to vector<32x32xi1>
    %369 = vector.broadcast %cst_147 : f32 to vector<32x32xf32>
    %370 = arith.select %368, %357, %369 : vector<32x32xi1>, vector<32x32xf32>
    %371 = arith.truncf %370 : vector<32x32xf32> to vector<32x32xbf16>
    %372 = tpu.concatenate %355, %356, %371 in 1 : vector<32x32xbf16>, vector<32x32xbf16>, vector<32x32xbf16> -> vector<32x96xbf16>
    %cst_148 = arith.constant dense<0.000000e+00> : vector<32x16xf32>
    %373 = tpu.matmul %372, %323, %cst_148 {dimension_numbers = #tpu.dot_dimension_numbers<[1], [0], [0], [1], [0, 0, 1, 1], [], []>} : vector<32x96xbf16>, vector<96x16xbf16>, vector<32x16xf32> -> vector<32x16xf32>
    %cst_149 = arith.constant 0.000000e+00 : f32
    %374 = vector.broadcast %cst_149 : f32 to vector<32x16xf32>
    %375 = arith.maximumf %373, %374 : vector<32x16xf32>
    %c64 = arith.constant 64 : index
    %c0_150 = arith.constant 0 : index
    %376 = vector.load %arg3[%c64, %c0_150] : memref<224x128xf32, #tpu.memory_space<vmem>>, vector<1x16xf32>
    %377 = vector.broadcast %376 : vector<1x16xf32> to vector<32x16xf32>
    %378 = arith.mulf %375, %377 : vector<32x16xf32>
    %c72_151 = arith.constant 72 : index
    %c0_152 = arith.constant 0 : index
    %379 = vector.load %arg3[%c72_151, %c0_152] : memref<224x128xf32, #tpu.memory_space<vmem>>, vector<1x16xf32>
    %380 = vector.broadcast %379 : vector<1x16xf32> to vector<32x16xf32>
    %381 = arith.addf %378, %380 : vector<32x16xf32>
    %c456 = arith.constant 456 : index
    %c0_153 = arith.constant 0 : index
    %382 = vector.load %arg2[%c456, %c0_153] : memref<688x128xbf16, #tpu.memory_space<vmem>>, vector<48x16xbf16>
    %383 = tpu.iota {dimensions = array<i32: 0>} : vector<32x1xi32>
    %c16_i32_154 = arith.constant 16 : i32
    %c0_i32_155 = arith.constant 0 : i32
    %384 = arith.cmpi eq, %c16_i32_154, %c0_i32_155 : i32
    %c1_i32_156 = arith.constant 1 : i32
    %385 = arith.select %384, %c1_i32_156, %c16_i32_154 : i32
    %386 = vector.broadcast %385 : i32 to vector<32x1xi32>
    %387 = arith.remsi %383, %386 : vector<32x1xi32>
    %c0_i32_157 = arith.constant 0 : i32
    %388 = vector.broadcast %c0_i32_157 : i32 to vector<32x1xi32>
    %389 = arith.cmpi ne, %387, %388 : vector<32x1xi32>
    %c0_i32_158 = arith.constant 0 : i32
    %390 = vector.broadcast %c0_i32_158 : i32 to vector<32x1xi32>
    %391 = arith.cmpi slt, %387, %390 : vector<32x1xi32>
    %c0_i32_159 = arith.constant 0 : i32
    %392 = arith.cmpi slt, %385, %c0_i32_159 : i32
    %393 = vector.broadcast %392 : i1 to vector<32x1xi1>
    %394 = vector.broadcast %393 : vector<32x1xi1> to vector<32x1xi1>
    %395 = arith.xori %391, %394 : vector<32x1xi1>
    %396 = arith.andi %395, %389 : vector<32x1xi1>
    %397 = vector.broadcast %385 : i32 to vector<32x1xi32>
    %398 = arith.addi %387, %397 : vector<32x1xi32>
    %399 = arith.select %396, %398, %387 : vector<32x1xi1>, vector<32x1xi32>
    %c1_i32_160 = arith.constant 1 : i32
    %400 = tpu.dynamic_rotate %381 by %c1_i32_160 dim 0 : vector<32x16xf32>, i32 -> vector<32x16xf32>
    %c-1_i32_161 = arith.constant -1 : i32
    %401 = vector.broadcast %c-1_i32_161 : i32 to vector<32x1xi32>
    %402 = arith.addi %399, %401 : vector<32x1xi32>
    %c0_i32_162 = arith.constant 0 : i32
    %403 = vector.broadcast %c0_i32_162 : i32 to vector<32x1xi32>
    %404 = arith.cmpi sge, %402, %403 : vector<32x1xi32>
    %c-1_i32_163 = arith.constant -1 : i32
    %405 = vector.broadcast %c-1_i32_163 : i32 to vector<32x1xi32>
    %406 = arith.addi %399, %405 : vector<32x1xi32>
    %c16_i32_164 = arith.constant 16 : i32
    %407 = vector.broadcast %c16_i32_164 : i32 to vector<32x1xi32>
    %408 = arith.cmpi slt, %406, %407 : vector<32x1xi32>
    %409 = arith.andi %404, %408 : vector<32x1xi1>
    %cst_165 = arith.constant 0.000000e+00 : f32
    %410 = vector.shape_cast %409 : vector<32x1xi1> to vector<32x1xi1>
    %411 = vector.broadcast %410 : vector<32x1xi1> to vector<32x16xi1>
    %412 = vector.broadcast %cst_165 : f32 to vector<32x16xf32>
    %413 = arith.select %411, %400, %412 : vector<32x16xi1>, vector<32x16xf32>
    %414 = arith.truncf %413 : vector<32x16xf32> to vector<32x16xbf16>
    %415 = arith.truncf %381 : vector<32x16xf32> to vector<32x16xbf16>
    %c31_i32_166 = arith.constant 31 : i32
    %416 = tpu.dynamic_rotate %381 by %c31_i32_166 dim 0 : vector<32x16xf32>, i32 -> vector<32x16xf32>
    %c1_i32_167 = arith.constant 1 : i32
    %417 = vector.broadcast %c1_i32_167 : i32 to vector<32x1xi32>
    %418 = arith.addi %399, %417 : vector<32x1xi32>
    %c0_i32_168 = arith.constant 0 : i32
    %419 = vector.broadcast %c0_i32_168 : i32 to vector<32x1xi32>
    %420 = arith.cmpi sge, %418, %419 : vector<32x1xi32>
    %c1_i32_169 = arith.constant 1 : i32
    %421 = vector.broadcast %c1_i32_169 : i32 to vector<32x1xi32>
    %422 = arith.addi %399, %421 : vector<32x1xi32>
    %c16_i32_170 = arith.constant 16 : i32
    %423 = vector.broadcast %c16_i32_170 : i32 to vector<32x1xi32>
    %424 = arith.cmpi slt, %422, %423 : vector<32x1xi32>
    %425 = arith.andi %420, %424 : vector<32x1xi1>
    %cst_171 = arith.constant 0.000000e+00 : f32
    %426 = vector.shape_cast %425 : vector<32x1xi1> to vector<32x1xi1>
    %427 = vector.broadcast %426 : vector<32x1xi1> to vector<32x16xi1>
    %428 = vector.broadcast %cst_171 : f32 to vector<32x16xf32>
    %429 = arith.select %427, %416, %428 : vector<32x16xi1>, vector<32x16xf32>
    %430 = arith.truncf %429 : vector<32x16xf32> to vector<32x16xbf16>
    %431 = tpu.concatenate %414, %415, %430 in 1 : vector<32x16xbf16>, vector<32x16xbf16>, vector<32x16xbf16> -> vector<32x48xbf16>
    %cst_172 = arith.constant dense<0.000000e+00> : vector<32x16xf32>
    %432 = tpu.matmul %431, %382, %cst_172 {dimension_numbers = #tpu.dot_dimension_numbers<[1], [0], [0], [1], [0, 0, 1, 1], [], []>} : vector<32x48xbf16>, vector<48x16xbf16>, vector<32x16xf32> -> vector<32x16xf32>
    %cst_173 = arith.constant 0.000000e+00 : f32
    %433 = vector.broadcast %cst_173 : f32 to vector<32x16xf32>
    %434 = arith.maximumf %432, %433 : vector<32x16xf32>
    %c80 = arith.constant 80 : index
    %c0_174 = arith.constant 0 : index
    %435 = vector.load %arg3[%c80, %c0_174] : memref<224x128xf32, #tpu.memory_space<vmem>>, vector<1x16xf32>
    %436 = vector.broadcast %435 : vector<1x16xf32> to vector<32x16xf32>
    %437 = arith.mulf %434, %436 : vector<32x16xf32>
    %c88 = arith.constant 88 : index
    %c0_175 = arith.constant 0 : index
    %438 = vector.load %arg3[%c88, %c0_175] : memref<224x128xf32, #tpu.memory_space<vmem>>, vector<1x16xf32>
    %439 = vector.broadcast %438 : vector<1x16xf32> to vector<32x16xf32>
    %440 = arith.addf %437, %439 : vector<32x16xf32>
    %c504 = arith.constant 504 : index
    %c0_176 = arith.constant 0 : index
    %441 = vector.load %arg2[%c504, %c0_176] : memref<688x128xbf16, #tpu.memory_space<vmem>>, vector<48x16xbf16>
    %442 = tpu.iota {dimensions = array<i32: 0>} : vector<32x1xi32>
    %c16_i32_177 = arith.constant 16 : i32
    %c0_i32_178 = arith.constant 0 : i32
    %443 = arith.cmpi eq, %c16_i32_177, %c0_i32_178 : i32
    %c1_i32_179 = arith.constant 1 : i32
    %444 = arith.select %443, %c1_i32_179, %c16_i32_177 : i32
    %445 = vector.broadcast %444 : i32 to vector<32x1xi32>
    %446 = arith.remsi %442, %445 : vector<32x1xi32>
    %c0_i32_180 = arith.constant 0 : i32
    %447 = vector.broadcast %c0_i32_180 : i32 to vector<32x1xi32>
    %448 = arith.cmpi ne, %446, %447 : vector<32x1xi32>
    %c0_i32_181 = arith.constant 0 : i32
    %449 = vector.broadcast %c0_i32_181 : i32 to vector<32x1xi32>
    %450 = arith.cmpi slt, %446, %449 : vector<32x1xi32>
    %c0_i32_182 = arith.constant 0 : i32
    %451 = arith.cmpi slt, %444, %c0_i32_182 : i32
    %452 = vector.broadcast %451 : i1 to vector<32x1xi1>
    %453 = vector.broadcast %452 : vector<32x1xi1> to vector<32x1xi1>
    %454 = arith.xori %450, %453 : vector<32x1xi1>
    %455 = arith.andi %454, %448 : vector<32x1xi1>
    %456 = vector.broadcast %444 : i32 to vector<32x1xi32>
    %457 = arith.addi %446, %456 : vector<32x1xi32>
    %458 = arith.select %455, %457, %446 : vector<32x1xi1>, vector<32x1xi32>
    %c1_i32_183 = arith.constant 1 : i32
    %459 = tpu.dynamic_rotate %440 by %c1_i32_183 dim 0 : vector<32x16xf32>, i32 -> vector<32x16xf32>
    %c-1_i32_184 = arith.constant -1 : i32
    %460 = vector.broadcast %c-1_i32_184 : i32 to vector<32x1xi32>
    %461 = arith.addi %458, %460 : vector<32x1xi32>
    %c0_i32_185 = arith.constant 0 : i32
    %462 = vector.broadcast %c0_i32_185 : i32 to vector<32x1xi32>
    %463 = arith.cmpi sge, %461, %462 : vector<32x1xi32>
    %c-1_i32_186 = arith.constant -1 : i32
    %464 = vector.broadcast %c-1_i32_186 : i32 to vector<32x1xi32>
    %465 = arith.addi %458, %464 : vector<32x1xi32>
    %c16_i32_187 = arith.constant 16 : i32
    %466 = vector.broadcast %c16_i32_187 : i32 to vector<32x1xi32>
    %467 = arith.cmpi slt, %465, %466 : vector<32x1xi32>
    %468 = arith.andi %463, %467 : vector<32x1xi1>
    %cst_188 = arith.constant 0.000000e+00 : f32
    %469 = vector.shape_cast %468 : vector<32x1xi1> to vector<32x1xi1>
    %470 = vector.broadcast %469 : vector<32x1xi1> to vector<32x16xi1>
    %471 = vector.broadcast %cst_188 : f32 to vector<32x16xf32>
    %472 = arith.select %470, %459, %471 : vector<32x16xi1>, vector<32x16xf32>
    %473 = arith.truncf %472 : vector<32x16xf32> to vector<32x16xbf16>
    %474 = arith.truncf %440 : vector<32x16xf32> to vector<32x16xbf16>
    %c31_i32_189 = arith.constant 31 : i32
    %475 = tpu.dynamic_rotate %440 by %c31_i32_189 dim 0 : vector<32x16xf32>, i32 -> vector<32x16xf32>
    %c1_i32_190 = arith.constant 1 : i32
    %476 = vector.broadcast %c1_i32_190 : i32 to vector<32x1xi32>
    %477 = arith.addi %458, %476 : vector<32x1xi32>
    %c0_i32_191 = arith.constant 0 : i32
    %478 = vector.broadcast %c0_i32_191 : i32 to vector<32x1xi32>
    %479 = arith.cmpi sge, %477, %478 : vector<32x1xi32>
    %c1_i32_192 = arith.constant 1 : i32
    %480 = vector.broadcast %c1_i32_192 : i32 to vector<32x1xi32>
    %481 = arith.addi %458, %480 : vector<32x1xi32>
    %c16_i32_193 = arith.constant 16 : i32
    %482 = vector.broadcast %c16_i32_193 : i32 to vector<32x1xi32>
    %483 = arith.cmpi slt, %481, %482 : vector<32x1xi32>
    %484 = arith.andi %479, %483 : vector<32x1xi1>
    %cst_194 = arith.constant 0.000000e+00 : f32
    %485 = vector.shape_cast %484 : vector<32x1xi1> to vector<32x1xi1>
    %486 = vector.broadcast %485 : vector<32x1xi1> to vector<32x16xi1>
    %487 = vector.broadcast %cst_194 : f32 to vector<32x16xf32>
    %488 = arith.select %486, %475, %487 : vector<32x16xi1>, vector<32x16xf32>
    %489 = arith.truncf %488 : vector<32x16xf32> to vector<32x16xbf16>
    %490 = tpu.concatenate %473, %474, %489 in 1 : vector<32x16xbf16>, vector<32x16xbf16>, vector<32x16xbf16> -> vector<32x48xbf16>
    %cst_195 = arith.constant dense<0.000000e+00> : vector<32x16xf32>
    %491 = tpu.matmul %490, %441, %cst_195 {dimension_numbers = #tpu.dot_dimension_numbers<[1], [0], [0], [1], [0, 0, 1, 1], [], []>} : vector<32x48xbf16>, vector<48x16xbf16>, vector<32x16xf32> -> vector<32x16xf32>
    %cst_196 = arith.constant 0.000000e+00 : f32
    %492 = vector.broadcast %cst_196 : f32 to vector<32x16xf32>
    %493 = arith.maximumf %491, %492 : vector<32x16xf32>
    %494 = arith.addf %375, %493 : vector<32x16xf32>
    %c552 = arith.constant 552 : index
    %c0_197 = arith.constant 0 : index
    %495 = vector.load %arg2[%c552, %c0_197] : memref<688x128xbf16, #tpu.memory_space<vmem>>, vector<48x8xbf16>
    %496 = tpu.iota {dimensions = array<i32: 0>} : vector<32x1xi32>
    %c16_i32_198 = arith.constant 16 : i32
    %c0_i32_199 = arith.constant 0 : i32
    %497 = arith.cmpi eq, %c16_i32_198, %c0_i32_199 : i32
    %c1_i32_200 = arith.constant 1 : i32
    %498 = arith.select %497, %c1_i32_200, %c16_i32_198 : i32
    %499 = vector.broadcast %498 : i32 to vector<32x1xi32>
    %500 = arith.remsi %496, %499 : vector<32x1xi32>
    %c0_i32_201 = arith.constant 0 : i32
    %501 = vector.broadcast %c0_i32_201 : i32 to vector<32x1xi32>
    %502 = arith.cmpi ne, %500, %501 : vector<32x1xi32>
    %c0_i32_202 = arith.constant 0 : i32
    %503 = vector.broadcast %c0_i32_202 : i32 to vector<32x1xi32>
    %504 = arith.cmpi slt, %500, %503 : vector<32x1xi32>
    %c0_i32_203 = arith.constant 0 : i32
    %505 = arith.cmpi slt, %498, %c0_i32_203 : i32
    %506 = vector.broadcast %505 : i1 to vector<32x1xi1>
    %507 = vector.broadcast %506 : vector<32x1xi1> to vector<32x1xi1>
    %508 = arith.xori %504, %507 : vector<32x1xi1>
    %509 = arith.andi %508, %502 : vector<32x1xi1>
    %510 = vector.broadcast %498 : i32 to vector<32x1xi32>
    %511 = arith.addi %500, %510 : vector<32x1xi32>
    %512 = arith.select %509, %511, %500 : vector<32x1xi1>, vector<32x1xi32>
    %c1_i32_204 = arith.constant 1 : i32
    %513 = tpu.dynamic_rotate %494 by %c1_i32_204 dim 0 : vector<32x16xf32>, i32 -> vector<32x16xf32>
    %c-1_i32_205 = arith.constant -1 : i32
    %514 = vector.broadcast %c-1_i32_205 : i32 to vector<32x1xi32>
    %515 = arith.addi %512, %514 : vector<32x1xi32>
    %c0_i32_206 = arith.constant 0 : i32
    %516 = vector.broadcast %c0_i32_206 : i32 to vector<32x1xi32>
    %517 = arith.cmpi sge, %515, %516 : vector<32x1xi32>
    %c-1_i32_207 = arith.constant -1 : i32
    %518 = vector.broadcast %c-1_i32_207 : i32 to vector<32x1xi32>
    %519 = arith.addi %512, %518 : vector<32x1xi32>
    %c16_i32_208 = arith.constant 16 : i32
    %520 = vector.broadcast %c16_i32_208 : i32 to vector<32x1xi32>
    %521 = arith.cmpi slt, %519, %520 : vector<32x1xi32>
    %522 = arith.andi %517, %521 : vector<32x1xi1>
    %cst_209 = arith.constant 0.000000e+00 : f32
    %523 = vector.shape_cast %522 : vector<32x1xi1> to vector<32x1xi1>
    %524 = vector.broadcast %523 : vector<32x1xi1> to vector<32x16xi1>
    %525 = vector.broadcast %cst_209 : f32 to vector<32x16xf32>
    %526 = arith.select %524, %513, %525 : vector<32x16xi1>, vector<32x16xf32>
    %527 = arith.truncf %526 : vector<32x16xf32> to vector<32x16xbf16>
    %528 = arith.truncf %494 : vector<32x16xf32> to vector<32x16xbf16>
    %c31_i32_210 = arith.constant 31 : i32
    %529 = tpu.dynamic_rotate %494 by %c31_i32_210 dim 0 : vector<32x16xf32>, i32 -> vector<32x16xf32>
    %c1_i32_211 = arith.constant 1 : i32
    %530 = vector.broadcast %c1_i32_211 : i32 to vector<32x1xi32>
    %531 = arith.addi %512, %530 : vector<32x1xi32>
    %c0_i32_212 = arith.constant 0 : i32
    %532 = vector.broadcast %c0_i32_212 : i32 to vector<32x1xi32>
    %533 = arith.cmpi sge, %531, %532 : vector<32x1xi32>
    %c1_i32_213 = arith.constant 1 : i32
    %534 = vector.broadcast %c1_i32_213 : i32 to vector<32x1xi32>
    %535 = arith.addi %512, %534 : vector<32x1xi32>
    %c16_i32_214 = arith.constant 16 : i32
    %536 = vector.broadcast %c16_i32_214 : i32 to vector<32x1xi32>
    %537 = arith.cmpi slt, %535, %536 : vector<32x1xi32>
    %538 = arith.andi %533, %537 : vector<32x1xi1>
    %cst_215 = arith.constant 0.000000e+00 : f32
    %539 = vector.shape_cast %538 : vector<32x1xi1> to vector<32x1xi1>
    %540 = vector.broadcast %539 : vector<32x1xi1> to vector<32x16xi1>
    %541 = vector.broadcast %cst_215 : f32 to vector<32x16xf32>
    %542 = arith.select %540, %529, %541 : vector<32x16xi1>, vector<32x16xf32>
    %543 = arith.truncf %542 : vector<32x16xf32> to vector<32x16xbf16>
    %544 = tpu.concatenate %527, %528, %543 in 1 : vector<32x16xbf16>, vector<32x16xbf16>, vector<32x16xbf16> -> vector<32x48xbf16>
    %cst_216 = arith.constant dense<0.000000e+00> : vector<32x8xf32>
    %545 = tpu.matmul %544, %495, %cst_216 {dimension_numbers = #tpu.dot_dimension_numbers<[1], [0], [0], [1], [0, 0, 1, 1], [], []>} : vector<32x48xbf16>, vector<48x8xbf16>, vector<32x8xf32> -> vector<32x8xf32>
    %cst_217 = arith.constant 0.000000e+00 : f32
    %546 = vector.broadcast %cst_217 : f32 to vector<32x8xf32>
    %547 = arith.maximumf %545, %546 : vector<32x8xf32>
    %c96 = arith.constant 96 : index
    %c0_218 = arith.constant 0 : index
    %548 = vector.load %arg3[%c96, %c0_218] : memref<224x128xf32, #tpu.memory_space<vmem>>, vector<1x8xf32>
    %549 = vector.broadcast %548 : vector<1x8xf32> to vector<32x8xf32>
    %550 = arith.mulf %547, %549 : vector<32x8xf32>
    %c104 = arith.constant 104 : index
    %c0_219 = arith.constant 0 : index
    %551 = vector.load %arg3[%c104, %c0_219] : memref<224x128xf32, #tpu.memory_space<vmem>>, vector<1x8xf32>
    %552 = vector.broadcast %551 : vector<1x8xf32> to vector<32x8xf32>
    %553 = arith.addf %550, %552 : vector<32x8xf32>
    %c600 = arith.constant 600 : index
    %c0_220 = arith.constant 0 : index
    %554 = vector.load %arg2[%c600, %c0_220] : memref<688x128xbf16, #tpu.memory_space<vmem>>, vector<24x8xbf16>
    %555 = tpu.iota {dimensions = array<i32: 0>} : vector<32x1xi32>
    %c16_i32_221 = arith.constant 16 : i32
    %c0_i32_222 = arith.constant 0 : i32
    %556 = arith.cmpi eq, %c16_i32_221, %c0_i32_222 : i32
    %c1_i32_223 = arith.constant 1 : i32
    %557 = arith.select %556, %c1_i32_223, %c16_i32_221 : i32
    %558 = vector.broadcast %557 : i32 to vector<32x1xi32>
    %559 = arith.remsi %555, %558 : vector<32x1xi32>
    %c0_i32_224 = arith.constant 0 : i32
    %560 = vector.broadcast %c0_i32_224 : i32 to vector<32x1xi32>
    %561 = arith.cmpi ne, %559, %560 : vector<32x1xi32>
    %c0_i32_225 = arith.constant 0 : i32
    %562 = vector.broadcast %c0_i32_225 : i32 to vector<32x1xi32>
    %563 = arith.cmpi slt, %559, %562 : vector<32x1xi32>
    %c0_i32_226 = arith.constant 0 : i32
    %564 = arith.cmpi slt, %557, %c0_i32_226 : i32
    %565 = vector.broadcast %564 : i1 to vector<32x1xi1>
    %566 = vector.broadcast %565 : vector<32x1xi1> to vector<32x1xi1>
    %567 = arith.xori %563, %566 : vector<32x1xi1>
    %568 = arith.andi %567, %561 : vector<32x1xi1>
    %569 = vector.broadcast %557 : i32 to vector<32x1xi32>
    %570 = arith.addi %559, %569 : vector<32x1xi32>
    %571 = arith.select %568, %570, %559 : vector<32x1xi1>, vector<32x1xi32>
    %c1_i32_227 = arith.constant 1 : i32
    %572 = tpu.dynamic_rotate %553 by %c1_i32_227 dim 0 : vector<32x8xf32>, i32 -> vector<32x8xf32>
    %c-1_i32_228 = arith.constant -1 : i32
    %573 = vector.broadcast %c-1_i32_228 : i32 to vector<32x1xi32>
    %574 = arith.addi %571, %573 : vector<32x1xi32>
    %c0_i32_229 = arith.constant 0 : i32
    %575 = vector.broadcast %c0_i32_229 : i32 to vector<32x1xi32>
    %576 = arith.cmpi sge, %574, %575 : vector<32x1xi32>
    %c-1_i32_230 = arith.constant -1 : i32
    %577 = vector.broadcast %c-1_i32_230 : i32 to vector<32x1xi32>
    %578 = arith.addi %571, %577 : vector<32x1xi32>
    %c16_i32_231 = arith.constant 16 : i32
    %579 = vector.broadcast %c16_i32_231 : i32 to vector<32x1xi32>
    %580 = arith.cmpi slt, %578, %579 : vector<32x1xi32>
    %581 = arith.andi %576, %580 : vector<32x1xi1>
    %cst_232 = arith.constant 0.000000e+00 : f32
    %582 = vector.shape_cast %581 : vector<32x1xi1> to vector<32x1xi1>
    %583 = vector.broadcast %582 : vector<32x1xi1> to vector<32x8xi1>
    %584 = vector.broadcast %cst_232 : f32 to vector<32x8xf32>
    %585 = arith.select %583, %572, %584 : vector<32x8xi1>, vector<32x8xf32>
    %586 = arith.truncf %585 : vector<32x8xf32> to vector<32x8xbf16>
    %587 = arith.truncf %553 : vector<32x8xf32> to vector<32x8xbf16>
    %c31_i32_233 = arith.constant 31 : i32
    %588 = tpu.dynamic_rotate %553 by %c31_i32_233 dim 0 : vector<32x8xf32>, i32 -> vector<32x8xf32>
    %c1_i32_234 = arith.constant 1 : i32
    %589 = vector.broadcast %c1_i32_234 : i32 to vector<32x1xi32>
    %590 = arith.addi %571, %589 : vector<32x1xi32>
    %c0_i32_235 = arith.constant 0 : i32
    %591 = vector.broadcast %c0_i32_235 : i32 to vector<32x1xi32>
    %592 = arith.cmpi sge, %590, %591 : vector<32x1xi32>
    %c1_i32_236 = arith.constant 1 : i32
    %593 = vector.broadcast %c1_i32_236 : i32 to vector<32x1xi32>
    %594 = arith.addi %571, %593 : vector<32x1xi32>
    %c16_i32_237 = arith.constant 16 : i32
    %595 = vector.broadcast %c16_i32_237 : i32 to vector<32x1xi32>
    %596 = arith.cmpi slt, %594, %595 : vector<32x1xi32>
    %597 = arith.andi %592, %596 : vector<32x1xi1>
    %cst_238 = arith.constant 0.000000e+00 : f32
    %598 = vector.shape_cast %597 : vector<32x1xi1> to vector<32x1xi1>
    %599 = vector.broadcast %598 : vector<32x1xi1> to vector<32x8xi1>
    %600 = vector.broadcast %cst_238 : f32 to vector<32x8xf32>
    %601 = arith.select %599, %588, %600 : vector<32x8xi1>, vector<32x8xf32>
    %602 = arith.truncf %601 : vector<32x8xf32> to vector<32x8xbf16>
    %603 = tpu.concatenate %586, %587, %602 in 1 : vector<32x8xbf16>, vector<32x8xbf16>, vector<32x8xbf16> -> vector<32x24xbf16>
    %cst_239 = arith.constant dense<0.000000e+00> : vector<32x8xf32>
    %604 = tpu.matmul %603, %554, %cst_239 {dimension_numbers = #tpu.dot_dimension_numbers<[1], [0], [0], [1], [0, 0, 1, 1], [], []>} : vector<32x24xbf16>, vector<24x8xbf16>, vector<32x8xf32> -> vector<32x8xf32>
    %cst_240 = arith.constant 0.000000e+00 : f32
    %605 = vector.broadcast %cst_240 : f32 to vector<32x8xf32>
    %606 = arith.maximumf %604, %605 : vector<32x8xf32>
    %c112 = arith.constant 112 : index
    %c0_241 = arith.constant 0 : index
    %607 = vector.load %arg3[%c112, %c0_241] : memref<224x128xf32, #tpu.memory_space<vmem>>, vector<1x8xf32>
    %608 = vector.broadcast %607 : vector<1x8xf32> to vector<32x8xf32>
    %609 = arith.mulf %606, %608 : vector<32x8xf32>
    %c120_242 = arith.constant 120 : index
    %c0_243 = arith.constant 0 : index
    %610 = vector.load %arg3[%c120_242, %c0_243] : memref<224x128xf32, #tpu.memory_space<vmem>>, vector<1x8xf32>
    %611 = vector.broadcast %610 : vector<1x8xf32> to vector<32x8xf32>
    %612 = arith.addf %609, %611 : vector<32x8xf32>
    %c624 = arith.constant 624 : index
    %c0_244 = arith.constant 0 : index
    %613 = vector.load %arg2[%c624, %c0_244] : memref<688x128xbf16, #tpu.memory_space<vmem>>, vector<24x8xbf16>
    %614 = tpu.iota {dimensions = array<i32: 0>} : vector<32x1xi32>
    %c16_i32_245 = arith.constant 16 : i32
    %c0_i32_246 = arith.constant 0 : i32
    %615 = arith.cmpi eq, %c16_i32_245, %c0_i32_246 : i32
    %c1_i32_247 = arith.constant 1 : i32
    %616 = arith.select %615, %c1_i32_247, %c16_i32_245 : i32
    %617 = vector.broadcast %616 : i32 to vector<32x1xi32>
    %618 = arith.remsi %614, %617 : vector<32x1xi32>
    %c0_i32_248 = arith.constant 0 : i32
    %619 = vector.broadcast %c0_i32_248 : i32 to vector<32x1xi32>
    %620 = arith.cmpi ne, %618, %619 : vector<32x1xi32>
    %c0_i32_249 = arith.constant 0 : i32
    %621 = vector.broadcast %c0_i32_249 : i32 to vector<32x1xi32>
    %622 = arith.cmpi slt, %618, %621 : vector<32x1xi32>
    %c0_i32_250 = arith.constant 0 : i32
    %623 = arith.cmpi slt, %616, %c0_i32_250 : i32
    %624 = vector.broadcast %623 : i1 to vector<32x1xi1>
    %625 = vector.broadcast %624 : vector<32x1xi1> to vector<32x1xi1>
    %626 = arith.xori %622, %625 : vector<32x1xi1>
    %627 = arith.andi %626, %620 : vector<32x1xi1>
    %628 = vector.broadcast %616 : i32 to vector<32x1xi32>
    %629 = arith.addi %618, %628 : vector<32x1xi32>
    %630 = arith.select %627, %629, %618 : vector<32x1xi1>, vector<32x1xi32>
    %c1_i32_251 = arith.constant 1 : i32
    %631 = tpu.dynamic_rotate %612 by %c1_i32_251 dim 0 : vector<32x8xf32>, i32 -> vector<32x8xf32>
    %c-1_i32_252 = arith.constant -1 : i32
    %632 = vector.broadcast %c-1_i32_252 : i32 to vector<32x1xi32>
    %633 = arith.addi %630, %632 : vector<32x1xi32>
    %c0_i32_253 = arith.constant 0 : i32
    %634 = vector.broadcast %c0_i32_253 : i32 to vector<32x1xi32>
    %635 = arith.cmpi sge, %633, %634 : vector<32x1xi32>
    %c-1_i32_254 = arith.constant -1 : i32
    %636 = vector.broadcast %c-1_i32_254 : i32 to vector<32x1xi32>
    %637 = arith.addi %630, %636 : vector<32x1xi32>
    %c16_i32_255 = arith.constant 16 : i32
    %638 = vector.broadcast %c16_i32_255 : i32 to vector<32x1xi32>
    %639 = arith.cmpi slt, %637, %638 : vector<32x1xi32>
    %640 = arith.andi %635, %639 : vector<32x1xi1>
    %cst_256 = arith.constant 0.000000e+00 : f32
    %641 = vector.shape_cast %640 : vector<32x1xi1> to vector<32x1xi1>
    %642 = vector.broadcast %641 : vector<32x1xi1> to vector<32x8xi1>
    %643 = vector.broadcast %cst_256 : f32 to vector<32x8xf32>
    %644 = arith.select %642, %631, %643 : vector<32x8xi1>, vector<32x8xf32>
    %645 = arith.truncf %644 : vector<32x8xf32> to vector<32x8xbf16>
    %646 = arith.truncf %612 : vector<32x8xf32> to vector<32x8xbf16>
    %c31_i32_257 = arith.constant 31 : i32
    %647 = tpu.dynamic_rotate %612 by %c31_i32_257 dim 0 : vector<32x8xf32>, i32 -> vector<32x8xf32>
    %c1_i32_258 = arith.constant 1 : i32
    %648 = vector.broadcast %c1_i32_258 : i32 to vector<32x1xi32>
    %649 = arith.addi %630, %648 : vector<32x1xi32>
    %c0_i32_259 = arith.constant 0 : i32
    %650 = vector.broadcast %c0_i32_259 : i32 to vector<32x1xi32>
    %651 = arith.cmpi sge, %649, %650 : vector<32x1xi32>
    %c1_i32_260 = arith.constant 1 : i32
    %652 = vector.broadcast %c1_i32_260 : i32 to vector<32x1xi32>
    %653 = arith.addi %630, %652 : vector<32x1xi32>
    %c16_i32_261 = arith.constant 16 : i32
    %654 = vector.broadcast %c16_i32_261 : i32 to vector<32x1xi32>
    %655 = arith.cmpi slt, %653, %654 : vector<32x1xi32>
    %656 = arith.andi %651, %655 : vector<32x1xi1>
    %cst_262 = arith.constant 0.000000e+00 : f32
    %657 = vector.shape_cast %656 : vector<32x1xi1> to vector<32x1xi1>
    %658 = vector.broadcast %657 : vector<32x1xi1> to vector<32x8xi1>
    %659 = vector.broadcast %cst_262 : f32 to vector<32x8xf32>
    %660 = arith.select %658, %647, %659 : vector<32x8xi1>, vector<32x8xf32>
    %661 = arith.truncf %660 : vector<32x8xf32> to vector<32x8xbf16>
    %662 = tpu.concatenate %645, %646, %661 in 1 : vector<32x8xbf16>, vector<32x8xbf16>, vector<32x8xbf16> -> vector<32x24xbf16>
    %cst_263 = arith.constant dense<0.000000e+00> : vector<32x8xf32>
    %663 = tpu.matmul %662, %613, %cst_263 {dimension_numbers = #tpu.dot_dimension_numbers<[1], [0], [0], [1], [0, 0, 1, 1], [], []>} : vector<32x24xbf16>, vector<24x8xbf16>, vector<32x8xf32> -> vector<32x8xf32>
    %cst_264 = arith.constant 0.000000e+00 : f32
    %664 = vector.broadcast %cst_264 : f32 to vector<32x8xf32>
    %665 = arith.maximumf %663, %664 : vector<32x8xf32>
    %666 = arith.addf %547, %665 : vector<32x8xf32>
    %c648 = arith.constant 648 : index
    %c0_265 = arith.constant 0 : index
    %667 = vector.load %arg2[%c648, %c0_265] : memref<688x128xbf16, #tpu.memory_space<vmem>>, vector<24x1xbf16>
    %668 = tpu.iota {dimensions = array<i32: 0>} : vector<32x1xi32>
    %c16_i32_266 = arith.constant 16 : i32
    %c0_i32_267 = arith.constant 0 : i32
    %669 = arith.cmpi eq, %c16_i32_266, %c0_i32_267 : i32
    %c1_i32_268 = arith.constant 1 : i32
    %670 = arith.select %669, %c1_i32_268, %c16_i32_266 : i32
    %671 = vector.broadcast %670 : i32 to vector<32x1xi32>
    %672 = arith.remsi %668, %671 : vector<32x1xi32>
    %c0_i32_269 = arith.constant 0 : i32
    %673 = vector.broadcast %c0_i32_269 : i32 to vector<32x1xi32>
    %674 = arith.cmpi ne, %672, %673 : vector<32x1xi32>
    %c0_i32_270 = arith.constant 0 : i32
    %675 = vector.broadcast %c0_i32_270 : i32 to vector<32x1xi32>
    %676 = arith.cmpi slt, %672, %675 : vector<32x1xi32>
    %c0_i32_271 = arith.constant 0 : i32
    %677 = arith.cmpi slt, %670, %c0_i32_271 : i32
    %678 = vector.broadcast %677 : i1 to vector<32x1xi1>
    %679 = vector.broadcast %678 : vector<32x1xi1> to vector<32x1xi1>
    %680 = arith.xori %676, %679 : vector<32x1xi1>
    %681 = arith.andi %680, %674 : vector<32x1xi1>
    %682 = vector.broadcast %670 : i32 to vector<32x1xi32>
    %683 = arith.addi %672, %682 : vector<32x1xi32>
    %684 = arith.select %681, %683, %672 : vector<32x1xi1>, vector<32x1xi32>
    %c1_i32_272 = arith.constant 1 : i32
    %685 = tpu.dynamic_rotate %666 by %c1_i32_272 dim 0 : vector<32x8xf32>, i32 -> vector<32x8xf32>
    %c-1_i32_273 = arith.constant -1 : i32
    %686 = vector.broadcast %c-1_i32_273 : i32 to vector<32x1xi32>
    %687 = arith.addi %684, %686 : vector<32x1xi32>
    %c0_i32_274 = arith.constant 0 : i32
    %688 = vector.broadcast %c0_i32_274 : i32 to vector<32x1xi32>
    %689 = arith.cmpi sge, %687, %688 : vector<32x1xi32>
    %c-1_i32_275 = arith.constant -1 : i32
    %690 = vector.broadcast %c-1_i32_275 : i32 to vector<32x1xi32>
    %691 = arith.addi %684, %690 : vector<32x1xi32>
    %c16_i32_276 = arith.constant 16 : i32
    %692 = vector.broadcast %c16_i32_276 : i32 to vector<32x1xi32>
    %693 = arith.cmpi slt, %691, %692 : vector<32x1xi32>
    %694 = arith.andi %689, %693 : vector<32x1xi1>
    %cst_277 = arith.constant 0.000000e+00 : f32
    %695 = vector.shape_cast %694 : vector<32x1xi1> to vector<32x1xi1>
    %696 = vector.broadcast %695 : vector<32x1xi1> to vector<32x8xi1>
    %697 = vector.broadcast %cst_277 : f32 to vector<32x8xf32>
    %698 = arith.select %696, %685, %697 : vector<32x8xi1>, vector<32x8xf32>
    %699 = arith.truncf %698 : vector<32x8xf32> to vector<32x8xbf16>
    %700 = arith.truncf %666 : vector<32x8xf32> to vector<32x8xbf16>
    %c31_i32_278 = arith.constant 31 : i32
    %701 = tpu.dynamic_rotate %666 by %c31_i32_278 dim 0 : vector<32x8xf32>, i32 -> vector<32x8xf32>
    %c1_i32_279 = arith.constant 1 : i32
    %702 = vector.broadcast %c1_i32_279 : i32 to vector<32x1xi32>
    %703 = arith.addi %684, %702 : vector<32x1xi32>
    %c0_i32_280 = arith.constant 0 : i32
    %704 = vector.broadcast %c0_i32_280 : i32 to vector<32x1xi32>
    %705 = arith.cmpi sge, %703, %704 : vector<32x1xi32>
    %c1_i32_281 = arith.constant 1 : i32
    %706 = vector.broadcast %c1_i32_281 : i32 to vector<32x1xi32>
    %707 = arith.addi %684, %706 : vector<32x1xi32>
    %c16_i32_282 = arith.constant 16 : i32
    %708 = vector.broadcast %c16_i32_282 : i32 to vector<32x1xi32>
    %709 = arith.cmpi slt, %707, %708 : vector<32x1xi32>
    %710 = arith.andi %705, %709 : vector<32x1xi1>
    %cst_283 = arith.constant 0.000000e+00 : f32
    %711 = vector.shape_cast %710 : vector<32x1xi1> to vector<32x1xi1>
    %712 = vector.broadcast %711 : vector<32x1xi1> to vector<32x8xi1>
    %713 = vector.broadcast %cst_283 : f32 to vector<32x8xf32>
    %714 = arith.select %712, %701, %713 : vector<32x8xi1>, vector<32x8xf32>
    %715 = arith.truncf %714 : vector<32x8xf32> to vector<32x8xbf16>
    %716 = tpu.concatenate %699, %700, %715 in 1 : vector<32x8xbf16>, vector<32x8xbf16>, vector<32x8xbf16> -> vector<32x24xbf16>
    %cst_284 = arith.constant dense<0.000000e+00> : vector<32x1xf32>
    %717 = tpu.matmul %716, %667, %cst_284 {dimension_numbers = #tpu.dot_dimension_numbers<[1], [0], [0], [1], [0, 0, 1, 1], [], []>} : vector<32x24xbf16>, vector<24x1xbf16>, vector<32x1xf32> -> vector<32x1xf32>
    %cst_285 = arith.constant 0.000000e+00 : f32
    %718 = vector.broadcast %cst_285 : f32 to vector<32x1xf32>
    %719 = arith.maximumf %717, %718 : vector<32x1xf32>
    %c128 = arith.constant 128 : index
    %c0_286 = arith.constant 0 : index
    %720 = vector.load %arg3[%c128, %c0_286] : memref<224x128xf32, #tpu.memory_space<vmem>>, vector<1x1xf32>
    %721 = vector.broadcast %720 : vector<1x1xf32> to vector<32x1xf32>
    %722 = arith.mulf %719, %721 : vector<32x1xf32>
    %c136 = arith.constant 136 : index
    %c0_287 = arith.constant 0 : index
    %723 = vector.load %arg3[%c136, %c0_287] : memref<224x128xf32, #tpu.memory_space<vmem>>, vector<1x1xf32>
    %724 = vector.broadcast %723 : vector<1x1xf32> to vector<32x1xf32>
    %725 = arith.addf %722, %724 : vector<32x1xf32>
    %c672 = arith.constant 672 : index
    %c0_288 = arith.constant 0 : index
    %726 = vector.load %arg2[%c672, %c0_288] : memref<688x128xbf16, #tpu.memory_space<vmem>>, vector<3x1xbf16>
    %727 = tpu.iota {dimensions = array<i32: 0>} : vector<32x1xi32>
    %c16_i32_289 = arith.constant 16 : i32
    %c0_i32_290 = arith.constant 0 : i32
    %728 = arith.cmpi eq, %c16_i32_289, %c0_i32_290 : i32
    %c1_i32_291 = arith.constant 1 : i32
    %729 = arith.select %728, %c1_i32_291, %c16_i32_289 : i32
    %730 = vector.broadcast %729 : i32 to vector<32x1xi32>
    %731 = arith.remsi %727, %730 : vector<32x1xi32>
    %c0_i32_292 = arith.constant 0 : i32
    %732 = vector.broadcast %c0_i32_292 : i32 to vector<32x1xi32>
    %733 = arith.cmpi ne, %731, %732 : vector<32x1xi32>
    %c0_i32_293 = arith.constant 0 : i32
    %734 = vector.broadcast %c0_i32_293 : i32 to vector<32x1xi32>
    %735 = arith.cmpi slt, %731, %734 : vector<32x1xi32>
    %c0_i32_294 = arith.constant 0 : i32
    %736 = arith.cmpi slt, %729, %c0_i32_294 : i32
    %737 = vector.broadcast %736 : i1 to vector<32x1xi1>
    %738 = vector.broadcast %737 : vector<32x1xi1> to vector<32x1xi1>
    %739 = arith.xori %735, %738 : vector<32x1xi1>
    %740 = arith.andi %739, %733 : vector<32x1xi1>
    %741 = vector.broadcast %729 : i32 to vector<32x1xi32>
    %742 = arith.addi %731, %741 : vector<32x1xi32>
    %743 = arith.select %740, %742, %731 : vector<32x1xi1>, vector<32x1xi32>
    %c1_i32_295 = arith.constant 1 : i32
    %744 = tpu.dynamic_rotate %725 by %c1_i32_295 dim 0 : vector<32x1xf32>, i32 -> vector<32x1xf32>
    %c-1_i32_296 = arith.constant -1 : i32
    %745 = vector.broadcast %c-1_i32_296 : i32 to vector<32x1xi32>
    %746 = arith.addi %743, %745 : vector<32x1xi32>
    %c0_i32_297 = arith.constant 0 : i32
    %747 = vector.broadcast %c0_i32_297 : i32 to vector<32x1xi32>
    %748 = arith.cmpi sge, %746, %747 : vector<32x1xi32>
    %c-1_i32_298 = arith.constant -1 : i32
    %749 = vector.broadcast %c-1_i32_298 : i32 to vector<32x1xi32>
    %750 = arith.addi %743, %749 : vector<32x1xi32>
    %c16_i32_299 = arith.constant 16 : i32
    %751 = vector.broadcast %c16_i32_299 : i32 to vector<32x1xi32>
    %752 = arith.cmpi slt, %750, %751 : vector<32x1xi32>
    %753 = arith.andi %748, %752 : vector<32x1xi1>
    %cst_300 = arith.constant 0.000000e+00 : f32
    %754 = vector.broadcast %cst_300 : f32 to vector<32x1xf32>
    %755 = arith.select %753, %744, %754 : vector<32x1xi1>, vector<32x1xf32>
    %756 = arith.truncf %755 : vector<32x1xf32> to vector<32x1xbf16>
    %757 = arith.truncf %725 : vector<32x1xf32> to vector<32x1xbf16>
    %c31_i32_301 = arith.constant 31 : i32
    %758 = tpu.dynamic_rotate %725 by %c31_i32_301 dim 0 : vector<32x1xf32>, i32 -> vector<32x1xf32>
    %c1_i32_302 = arith.constant 1 : i32
    %759 = vector.broadcast %c1_i32_302 : i32 to vector<32x1xi32>
    %760 = arith.addi %743, %759 : vector<32x1xi32>
    %c0_i32_303 = arith.constant 0 : i32
    %761 = vector.broadcast %c0_i32_303 : i32 to vector<32x1xi32>
    %762 = arith.cmpi sge, %760, %761 : vector<32x1xi32>
    %c1_i32_304 = arith.constant 1 : i32
    %763 = vector.broadcast %c1_i32_304 : i32 to vector<32x1xi32>
    %764 = arith.addi %743, %763 : vector<32x1xi32>
    %c16_i32_305 = arith.constant 16 : i32
    %765 = vector.broadcast %c16_i32_305 : i32 to vector<32x1xi32>
    %766 = arith.cmpi slt, %764, %765 : vector<32x1xi32>
    %767 = arith.andi %762, %766 : vector<32x1xi1>
    %cst_306 = arith.constant 0.000000e+00 : f32
    %768 = vector.broadcast %cst_306 : f32 to vector<32x1xf32>
    %769 = arith.select %767, %758, %768 : vector<32x1xi1>, vector<32x1xf32>
    %770 = arith.truncf %769 : vector<32x1xf32> to vector<32x1xbf16>
    %771 = tpu.concatenate %756, %757, %770 in 1 : vector<32x1xbf16>, vector<32x1xbf16>, vector<32x1xbf16> -> vector<32x3xbf16>
    %cst_307 = arith.constant dense<0.000000e+00> : vector<32x1xf32>
    %772 = tpu.matmul %771, %726, %cst_307 {dimension_numbers = #tpu.dot_dimension_numbers<[1], [0], [0], [1], [0, 0, 1, 1], [], []>} : vector<32x3xbf16>, vector<3x1xbf16>, vector<32x1xf32> -> vector<32x1xf32>
    %cst_308 = arith.constant 0.000000e+00 : f32
    %773 = vector.broadcast %cst_308 : f32 to vector<32x1xf32>
    %774 = arith.maximumf %772, %773 : vector<32x1xf32>
    %c144 = arith.constant 144 : index
    %c0_309 = arith.constant 0 : index
    %775 = vector.load %arg3[%c144, %c0_309] : memref<224x128xf32, #tpu.memory_space<vmem>>, vector<1x1xf32>
    %776 = vector.broadcast %775 : vector<1x1xf32> to vector<32x1xf32>
    %777 = arith.mulf %774, %776 : vector<32x1xf32>
    %c152 = arith.constant 152 : index
    %c0_310 = arith.constant 0 : index
    %778 = vector.load %arg3[%c152, %c0_310] : memref<224x128xf32, #tpu.memory_space<vmem>>, vector<1x1xf32>
    %779 = vector.broadcast %778 : vector<1x1xf32> to vector<32x1xf32>
    %780 = arith.addf %777, %779 : vector<32x1xf32>
    %c680 = arith.constant 680 : index
    %c0_311 = arith.constant 0 : index
    %781 = vector.load %arg2[%c680, %c0_311] : memref<688x128xbf16, #tpu.memory_space<vmem>>, vector<3x1xbf16>
    %782 = tpu.iota {dimensions = array<i32: 0>} : vector<32x1xi32>
    %c16_i32_312 = arith.constant 16 : i32
    %c0_i32_313 = arith.constant 0 : i32
    %783 = arith.cmpi eq, %c16_i32_312, %c0_i32_313 : i32
    %c1_i32_314 = arith.constant 1 : i32
    %784 = arith.select %783, %c1_i32_314, %c16_i32_312 : i32
    %785 = vector.broadcast %784 : i32 to vector<32x1xi32>
    %786 = arith.remsi %782, %785 : vector<32x1xi32>
    %c0_i32_315 = arith.constant 0 : i32
    %787 = vector.broadcast %c0_i32_315 : i32 to vector<32x1xi32>
    %788 = arith.cmpi ne, %786, %787 : vector<32x1xi32>
    %c0_i32_316 = arith.constant 0 : i32
    %789 = vector.broadcast %c0_i32_316 : i32 to vector<32x1xi32>
    %790 = arith.cmpi slt, %786, %789 : vector<32x1xi32>
    %c0_i32_317 = arith.constant 0 : i32
    %791 = arith.cmpi slt, %784, %c0_i32_317 : i32
    %792 = vector.broadcast %791 : i1 to vector<32x1xi1>
    %793 = vector.broadcast %792 : vector<32x1xi1> to vector<32x1xi1>
    %794 = arith.xori %790, %793 : vector<32x1xi1>
    %795 = arith.andi %794, %788 : vector<32x1xi1>
    %796 = vector.broadcast %784 : i32 to vector<32x1xi32>
    %797 = arith.addi %786, %796 : vector<32x1xi32>
    %798 = arith.select %795, %797, %786 : vector<32x1xi1>, vector<32x1xi32>
    %c1_i32_318 = arith.constant 1 : i32
    %799 = tpu.dynamic_rotate %780 by %c1_i32_318 dim 0 : vector<32x1xf32>, i32 -> vector<32x1xf32>
    %c-1_i32_319 = arith.constant -1 : i32
    %800 = vector.broadcast %c-1_i32_319 : i32 to vector<32x1xi32>
    %801 = arith.addi %798, %800 : vector<32x1xi32>
    %c0_i32_320 = arith.constant 0 : i32
    %802 = vector.broadcast %c0_i32_320 : i32 to vector<32x1xi32>
    %803 = arith.cmpi sge, %801, %802 : vector<32x1xi32>
    %c-1_i32_321 = arith.constant -1 : i32
    %804 = vector.broadcast %c-1_i32_321 : i32 to vector<32x1xi32>
    %805 = arith.addi %798, %804 : vector<32x1xi32>
    %c16_i32_322 = arith.constant 16 : i32
    %806 = vector.broadcast %c16_i32_322 : i32 to vector<32x1xi32>
    %807 = arith.cmpi slt, %805, %806 : vector<32x1xi32>
    %808 = arith.andi %803, %807 : vector<32x1xi1>
    %cst_323 = arith.constant 0.000000e+00 : f32
    %809 = vector.broadcast %cst_323 : f32 to vector<32x1xf32>
    %810 = arith.select %808, %799, %809 : vector<32x1xi1>, vector<32x1xf32>
    %811 = arith.truncf %810 : vector<32x1xf32> to vector<32x1xbf16>
    %812 = arith.truncf %780 : vector<32x1xf32> to vector<32x1xbf16>
    %c31_i32_324 = arith.constant 31 : i32
    %813 = tpu.dynamic_rotate %780 by %c31_i32_324 dim 0 : vector<32x1xf32>, i32 -> vector<32x1xf32>
    %c1_i32_325 = arith.constant 1 : i32
    %814 = vector.broadcast %c1_i32_325 : i32 to vector<32x1xi32>
    %815 = arith.addi %798, %814 : vector<32x1xi32>
    %c0_i32_326 = arith.constant 0 : i32
    %816 = vector.broadcast %c0_i32_326 : i32 to vector<32x1xi32>
    %817 = arith.cmpi sge, %815, %816 : vector<32x1xi32>
    %c1_i32_327 = arith.constant 1 : i32
    %818 = vector.broadcast %c1_i32_327 : i32 to vector<32x1xi32>
    %819 = arith.addi %798, %818 : vector<32x1xi32>
    %c16_i32_328 = arith.constant 16 : i32
    %820 = vector.broadcast %c16_i32_328 : i32 to vector<32x1xi32>
    %821 = arith.cmpi slt, %819, %820 : vector<32x1xi32>
    %822 = arith.andi %817, %821 : vector<32x1xi1>
    %cst_329 = arith.constant 0.000000e+00 : f32
    %823 = vector.broadcast %cst_329 : f32 to vector<32x1xf32>
    %824 = arith.select %822, %813, %823 : vector<32x1xi1>, vector<32x1xf32>
    %825 = arith.truncf %824 : vector<32x1xf32> to vector<32x1xbf16>
    %826 = tpu.concatenate %811, %812, %825 in 1 : vector<32x1xbf16>, vector<32x1xbf16>, vector<32x1xbf16> -> vector<32x3xbf16>
    %cst_330 = arith.constant dense<0.000000e+00> : vector<32x1xf32>
    %827 = tpu.matmul %826, %781, %cst_330 {dimension_numbers = #tpu.dot_dimension_numbers<[1], [0], [0], [1], [0, 0, 1, 1], [], []>} : vector<32x3xbf16>, vector<3x1xbf16>, vector<32x1xf32> -> vector<32x1xf32>
    %cst_331 = arith.constant 0.000000e+00 : f32
    %828 = vector.broadcast %cst_331 : f32 to vector<32x1xf32>
    %829 = arith.maximumf %827, %828 : vector<32x1xf32>
    %830 = arith.addf %719, %829 : vector<32x1xf32>
    %831 = tpu.iota {dimensions = array<i32: 0>} : vector<2x32xi32>
    %832 = tpu.iota {dimensions = array<i32: 1>} : vector<2x32xi32>
    %c16_i32_332 = arith.constant 16 : i32
    %833 = vector.broadcast %c16_i32_332 : i32 to vector<2x32xi32>
    %834 = arith.muli %831, %833 : vector<2x32xi32>
    %835 = arith.cmpi sge, %832, %834 : vector<2x32xi32>
    %c1_i32_333 = arith.constant 1 : i32
    %836 = vector.broadcast %c1_i32_333 : i32 to vector<2x32xi32>
    %837 = arith.addi %831, %836 : vector<2x32xi32>
    %c16_i32_334 = arith.constant 16 : i32
    %838 = vector.broadcast %c16_i32_334 : i32 to vector<2x32xi32>
    %839 = arith.muli %837, %838 : vector<2x32xi32>
    %840 = arith.cmpi slt, %832, %839 : vector<2x32xi32>
    %841 = arith.andi %835, %840 : vector<2x32xi1>
    %842 = arith.extui %841 : vector<2x32xi1> to vector<2x32xi32>
    %843 = arith.sitofp %842 : vector<2x32xi32> to vector<2x32xf32>
    %c160 = arith.constant 160 : index
    %c0_335 = arith.constant 0 : index
    %844 = vector.load %arg3[%c160, %c0_335] : memref<224x128xf32, #tpu.memory_space<vmem>>, vector<32x16xf32>
    %845 = vector.broadcast %830 : vector<32x1xf32> to vector<32x16xf32>
    %846 = arith.mulf %845, %844 : vector<32x16xf32>
    %cst_336 = arith.constant dense<0.000000e+00> : vector<2x16xf32>
    %847 = tpu.matmul %843, %846, %cst_336 {dimension_numbers = #tpu.dot_dimension_numbers<[1], [0], [0], [1], [0, 0, 1, 1], [], []>} : vector<2x32xf32>, vector<32x16xf32>, vector<2x16xf32> -> vector<2x16xf32>
    %c192 = arith.constant 192 : index
    %c0_337 = arith.constant 0 : index
    %848 = vector.load %arg3[%c192, %c0_337] : memref<224x128xf32, #tpu.memory_space<vmem>>, vector<1x16xf32>
    %849 = vector.broadcast %848 : vector<1x16xf32> to vector<2x16xf32>
    %850 = arith.addf %847, %849 : vector<2x16xf32>
    %cst_338 = arith.constant 0.000000e+00 : f32
    %851 = vector.broadcast %cst_338 : f32 to vector<2x16xf32>
    %852 = arith.maximumf %850, %851 : vector<2x16xf32>
    %c200 = arith.constant 200 : index
    %c0_339 = arith.constant 0 : index
    %853 = vector.load %arg3[%c200, %c0_339] : memref<224x128xf32, #tpu.memory_space<vmem>>, vector<16x1xf32>
    %cst_340 = arith.constant dense<0.000000e+00> : vector<2x1xf32>
    %854 = tpu.matmul %852, %853, %cst_340 {dimension_numbers = #tpu.dot_dimension_numbers<[1], [0], [0], [1], [0, 0, 1, 1], [], []>} : vector<2x16xf32>, vector<16x1xf32>, vector<2x1xf32> -> vector<2x1xf32>
    %c216 = arith.constant 216 : index
    %c0_341 = arith.constant 0 : index
    %855 = vector.load %arg3[%c216, %c0_341] : memref<224x128xf32, #tpu.memory_space<vmem>>, vector<1x1xf32>
    %856 = vector.broadcast %855 : vector<1x1xf32> to vector<2x1xf32>
    %857 = arith.addf %854, %856 : vector<2x1xf32>
    %c0_342 = arith.constant 0 : index
    %c0_343 = arith.constant 0 : index
    %858 = vector.load %arg4[%c0_342, %c0_343] : memref<2x1xf32, #tpu.memory_space<vmem>>, vector<2x1xf32>
    tpu.vector_store %arg4[%c0_342, %c0_343], %857 {strides = array<i32>} : memref<2x1xf32, #tpu.memory_space<vmem>>, vector<2x1xf32>,
    return
  }
  func.func @transform_0(%arg0: i32) -> (i32, i32) {
    %c0_i32 = arith.constant 0 : i32
    %c0_i32_0 = arith.constant 0 : i32
    return %arg0, %c0_i32 : i32, i32
  }
  func.func @transform_1(%arg0: i32) -> (i32, i32) {
    %c0_i32 = arith.constant 0 : i32
    %c0_i32_0 = arith.constant 0 : i32
    %c0_i32_1 = arith.constant 0 : i32
    return %c0_i32, %c0_i32_0 : i32, i32
  }
  func.func @transform_2(%arg0: i32) -> (i32, i32) {
    %c0_i32 = arith.constant 0 : i32
    %c0_i32_0 = arith.constant 0 : i32
    %c0_i32_1 = arith.constant 0 : i32
    return %c0_i32, %c0_i32_0 : i32, i32
  }
  func.func @transform_3(%arg0: i32) -> (i32, i32) {
    %c0_i32 = arith.constant 0 : i32
    %c0_i32_0 = arith.constant 0 : i32
    return %arg0, %c0_i32 : i32, i32
  }
}

</mosaic_0001>

<bundles_post_ra>
// kernel: model_apply.1
= control target key start
LH: loop header
LB: loop body
LE: loop exit
PB: predicated region body
PF: predicated region fallthrough
CT: control target
= control target key end

     0   :  { %vm34_vm0 = vcmask 64512   ;;  %v82_v0 = vlaneseq  ;;  %vm335_vm1 = vcmask 1043456   ;;  %s3462_s21 = smov 8   ;;  %vm308_vm5 = vcmask 130048   ;;  %s3463_s5 = smov 32   ;;  %s4592_s0 = inlined_call_operand.vmem [shape: f32[128,8], index: 0, kind: input, shape index: {}]   ;;  %s4593_s1 = inlined_call_operand.vmem [shape: bf16[688,128], index: 1, kind: input, shape index: {}]   ;;  %s4594_s2 = inlined_call_operand.vmem [shape: f32[224,128], index: 2, kind: input, shape index: {}]   ;;  %s4595_s3 = inlined_call_operand.vmem [shape: f32[2,1], index: 3, kind: output, shape index: {}]  }
   0x1   :  { %v15_v1 = vld [vmem:[%s4592_s0] sm:$0xff]  ;;  %v16_v2 = vld [vmem:[%s4592_s0 + $0x8] sm:$0xff]  ;;  %v17_v3 = vld [vmem:[%s4592_s0 + $0x10] sm:$0xff]  ;;  %vm326_vm6 = vcmask 195584   ;;  %vm589_vm10 = vcmask 261120   ;;  %vm616_vm11 = vcmask 392192  }
   0x2   :  { %v18_v4 = vld [vmem:[%s4592_s0 + $0x18] sm:$0xff]  ;;  %35 = vst.msk [vmem:[#allocation2] sm:$0xff] %vm34_vm0, %v15_v1  ;;  %36 = vst.msk [vmem:[#allocation2 + $0x8] sm:$0xff] %vm34_vm0, %v16_v2  ;;  %v19_v5 = vld [vmem:[%s4592_s0 + $0x20] sm:$0xff]  ;;  %v3526_v10 = vshrl.u32 %v82_v0, 7  ;;  %s3464_s13 = smov 64  }
   0x3   :  { %37 = vst.msk [vmem:[#allocation2 + $0x10] sm:$0xff] %vm34_vm0, %v17_v3  ;;  %v20_v6 = vld [vmem:[%s4592_s0 + $0x28] sm:$0xff]  ;;  %38 = vst.msk [vmem:[#allocation2 + $0x18] sm:$0xff] %vm34_vm0, %v18_v4  ;;  %v21_v7 = vld [vmem:[%s4592_s0 + $0x30] sm:$0xff]  ;;  %s3466_s17 = smov 1   ;;  %s3467_s18 = smov 2  }
   0x4   :  { %v22_v8 = vld [vmem:[%s4592_s0 + $0x38] sm:$0xff]  ;;  %39 = vst.msk [vmem:[#allocation2 + $0x20] sm:$0xff] %vm34_vm0, %v19_v5  ;;  %40 = vst.msk [vmem:[#allocation2 + $0x28] sm:$0xff] %vm34_vm0, %v20_v6  ;;  %v27_v9 = vld [vmem:[%s4592_s0 + $0x60] sm:$0xff]  ;;  %v87_v17 = vadd.s32 32, %v3526_v10  ;;  %vm195_vm2 = vcmp.lt.s32.totalorder %v3526_v10, 1 }
   0x5   :  { %41 = vst.msk [vmem:[#allocation2 + $0x30] sm:$0xff] %vm34_vm0, %v21_v7  ;;  %42 = vst.msk [vmem:[#allocation2 + $0x38] sm:$0xff] %vm34_vm0, %v22_v8  ;;  %v28_v11 = vld [vmem:[%s4592_s0 + $0x68] sm:$0xff]  ;;  %v29_v12 = vld [vmem:[%s4592_s0 + $0x70] sm:$0xff]  ;;  %v95_v60 = vand.u32 31, %v3526_v10  ;;  %vm484_vm7 = vcmp.lt.s32.totalorder %v3526_v10, 7 }
   0x6   :  { %v30_v13 = vld [vmem:[%s4592_s0 + $0x78] sm:$0xff]  ;;  %47 = vst.msk [vmem:[#allocation2 + $0x60] sm:$0xff] %vm34_vm0, %v27_v9  ;;  %48 = vst.msk [vmem:[#allocation2 + $0x68] sm:$0xff] %vm34_vm0, %v28_v11  ;;  %v23_v14 = vld [vmem:[%s4592_s0 + $0x40] sm:$0xff]  ;;  %v123_v21 = vand.u32 31, %v87_v17 }
   0x7   :  { %49 = vst.msk [vmem:[#allocation2 + $0x70] sm:$0xff] %vm34_vm0, %v29_v12  ;;  %50 = vst.msk [vmem:[#allocation2 + $0x78] sm:$0xff] %vm34_vm0, %v30_v13  ;;  %v24_v15 = vld [vmem:[%s4592_s0 + $0x48] sm:$0xff]  ;;  %v25_v16 = vld [vmem:[%s4592_s0 + $0x50] sm:$0xff]  ;;  %v3594_v62 = vadd.s32 4294967295, %v95_v60 }
   0x8   :  { %v26_v18 = vld [vmem:[%s4592_s0 + $0x58] sm:$0xff]  ;;  %43 = vst.msk [vmem:[#allocation2 + $0x40] sm:$0xff] %vm34_vm0, %v23_v14  ;;  %44 = vst.msk [vmem:[#allocation2 + $0x48] sm:$0xff] %vm34_vm0, %v24_v15  ;;  %v3417_v19 = vld [vmem:[%s4593_s1] sm:$0xff]   ;;  %v3571_v31 = vadd.s32 4294967295, %v123_v21  ;;  %s3461_s0 = smov 16  }
   0x9   :  { %45 = vst.msk [vmem:[#allocation2 + $0x50] sm:$0xff] %vm34_vm0, %v25_v16  ;;  %46 = vst.msk [vmem:[#allocation2 + $0x58] sm:$0xff] %vm34_vm0, %v26_v18  ;;  %v3418_v20 = vld [vmem:[%s4593_s1 + $0x8] ss:$0 sps:$4 sm:$0xff]   ;;  %v67_v22 = vld [vmem:[#allocation2 + $0x1] ss:$2 sm:$0xff]  ;;  %3209 = vmatprep.subr.bf16.mxu0 %v3417_v19 }
   0xa   :  { %v51_v23 = vld [vmem:[#allocation2] ss:$2 sm:$0xff]  ;;  %v3566_v24 = vld [vmem:[#allocation2 + $0x11] ss:$2 sm:$0xff]  ;;  %v53_v25 = vld [vmem:[#allocation2 + $0x10] ss:$2 sm:$0xff]  ;;  %3210 = vmatpush3.bf16.msra.mxu0 %v3417_v19 }
   0xb   :  { %v268_v26 = vpack.c.bf16 %v3566_v24, %v67_v22  ;;  %v264_v27 = vpack.c.bf16 %v53_v25, %v51_v23  ;;  %v71_v28 = vld [vmem:[#allocation2 + $0x21] ss:$2 sm:$0xff]  ;;  %3400 = vmatprep.subr.msk.bf16.mxu0 %vm335_vm1, %v3418_v20  ;;  %v337_v30 = vsel %vm335_vm1, %v3418_v20, 0  ;;  %v55_v32 = vld [vmem:[#allocation2 + $0x20] ss:$2 sm:$0xff]  ;;  %vm216_vm3 = vcmp.ge.s32.totalorder %v3571_v31, 0 }
   0xc   :  { %v73_v29 = vld [vmem:[#allocation2 + $0x31] ss:$2 sm:$0xff]  ;;  %v57_v33 = vld [vmem:[#allocation2 + $0x30] ss:$2 sm:$0xff]  ;;  %v187_v61 = vrot.slane %v67_v22, 7  ;;  %v188_v63 = vrot.slane %v3566_v24, 7 }
   0xd   :  { %v63_v34 = vld [vmem:[#allocation2 + $0x60] ss:$2 sm:$0xff]  ;;  %288 = vrot.lane.b32.xlu1 %v268_v26, %s3461_s0  ;;  %276 = vrot.lane.b32.xlu0 %v264_v27, %s3462_s21  ;;  %v269_v35 = vpack.c.bf16 %v73_v29, %v71_v28  ;;  %v265_v36 = vpack.c.bf16 %v57_v33, %v55_v32  ;;  %v79_v39 = vld [vmem:[#allocation2 + $0x61] ss:$2 sm:$0xff]  ;;  %v190_v50 = vrot.slane %v73_v29, 7  ;;  %vm212_vm4 = vcmp.ge.s32.totalorder %v3594_v62, 0 }
   0xe   :  { %v65_v37 = vld [vmem:[#allocation2 + $0x70] ss:$2 sm:$0xff]  ;;  %v81_v41 = vld [vmem:[#allocation2 + $0x71] ss:$2 sm:$0xff]  ;;  %v193_v42 = vrot.slane %v79_v39, 7  ;;  %3212 = vmatpush3.bf16.msra.mxu0 %v337_v30  ;;  %v202_v2 = vsel %vm195_vm2, %v187_v61, %v188_v63  ;;  %v189_v4 = vrot.slane %v71_v28, 7 }
   0xf   :  { %v59_v38 = vld [vmem:[#allocation2 + $0x40] ss:$2 sm:$0xff]  ;;  %v194_v43 = vrot.slane %v81_v41, 7  ;;  %v75_v44 = vld [vmem:[#allocation2 + $0x41] ss:$2 sm:$0xff]  ;;  %v267_v48 = vpack.c.bf16 %v65_v37, %v63_v34  ;;  %v271_v57 = vpack.c.bf16 %v81_v41, %v79_v39  ;;  %v3420_v27 = vld [vmem:[%s4593_s1 + $0x14] sm:$0xff]  }
  0x10   :  { %v61_v40 = vld [vmem:[#allocation2 + $0x50] ss:$2 sm:$0xff]  ;;  %v77_v45 = vld [vmem:[#allocation2 + $0x51] ss:$2 sm:$0xff]  ;;  %v191_v46 = vrot.slane %v75_v44, 7  ;;  %v200_v6 = vsel %vm195_vm2, %v189_v4, %v190_v50  ;;  %v201_v7 = vsel %vm195_vm2, %v188_v63, %v189_v4  ;;  %v3632_v30 = vadd.s32 24, %v3526_v10 }
  0x11   :  { %v192_v47 = vrot.slane %v77_v45, 7  ;;  %290 = vrot.lane.b32.xlu1 %v269_v35, %s3461_s0  ;;  %278 = vrot.lane.b32.xlu0 %v265_v36, %s3462_s21  ;;  %v266_v49 = vpack.c.bf16 %v61_v40, %v59_v38  ;;  %v196_v51 = vsel %vm195_vm2, %v193_v42, %v194_v43  ;;  %v270_v58 = vpack.c.bf16 %v77_v45, %v75_v44  ;;  %v3419_v26 = vld [vmem:[%s4593_s1 + $0xc] sm:$0xff]   ;;  %v3020_v29 = vld [vmem:[%s4594_s2] ss:$0 sm:$0xff] }
  0x12   :  { %v199_v55 = vsel %vm195_vm2, %v190_v50, %v191_v46  ;;  %v203_v1 = vsel %vm195_vm2, %v194_v43, %v187_v61  ;;  %v261_v12 = vpack.c.bf16 %v200_v6, %v201_v7  ;;  %3221 = vmatprep.subr.bf16.mxu1 %v3419_v26  ;;  %v3021_v34 = vld [vmem:[%s4594_s2 + $0x8] ss:$0 sm:$0xff]  ;;  %v90_v40 = vadd.s32 56, %v3526_v10  ;;  %v3421_v44 = vld [vmem:[%s4593_s1 + $0x1c] sm:$0xff]  }
  0x13   :  { %v197_v52 = vsel %vm195_vm2, %v192_v47, %v193_v42  ;;  %v198_v53 = vsel %vm195_vm2, %v191_v46, %v192_v47  ;;  %v256_v56 = vsel %vm216_vm3, %v199_v55, 0.0  ;;  %v252_v3 = vsel %vm212_vm4, %v203_v1, 0.0  ;;  %3222 = vmatpush3.bf16.msra.mxu1 %v3419_v26 }
  0x14   :  { %v263_v54 = vpack.c.bf16 %v196_v51, %v197_v52  ;;  %v262_v59 = vpack.c.bf16 %v198_v53, %v256_v56  ;;  %v260_v5 = vpack.c.bf16 %v202_v2, %v252_v3  ;;  %3223 = vmatprep.subr.bf16.mxu1 %v3420_v27  ;;  %v116_v43 = vand.u32 31, %v3632_v30 }
  0x15   :  { %282 = vrot.lane.b32.xlu1 %v267_v48, %s3462_s21  ;;  %280 = vrot.lane.b32.xlu0 %v266_v49, %s3462_s21  ;;  %v144_v50 = vand.u32 31, %v90_v40 }
  0x16   :  { %v3667_v55 = vadd.s32 1, %v116_v43 }
  0x17   :  { %3224 = vmatpush3.bf16.msra.mxu1 %v3420_v27 }
  0x18   :  { %3225 = vmatprep.subr.bf16.mxu1 %v3421_v44  ;;  %vm512_vm8 = vcmp.lt.s32.totalorder %v3667_v55, 32 }
  0x19   :  { %294 = vrot.lane.b32.xlu1 %v271_v57, %s3461_s0  ;;  %292 = vrot.lane.b32.xlu0 %v270_v58, %s3461_s0 }
  0x1b   :  { %3226 = vmatpush3.bf16.msra.mxu1 %v3421_v44 }
  0x7f   :  { %v289_v8 = vpop.permute.xlu1 %288  ;;  %v277_v9 = vpop.permute.xlu0 %276 }
  0x80   :  { %v298_v11 = vsel %vm34_vm0, %v260_v5, %v277_v9 }
  0x81   :  { %v310_v13 = vsel %vm308_vm5, %v298_v11, %v289_v8 }
  0x82   :  { %3213 = vmatprep.mubr.msk.bf16.mxu0 %vm326_vm6, %v310_v13 }
  0x83   :  { %v291_v14 = vpop.permute.xlu1 %290  ;;  %v279_v15 = vpop.permute.xlu0 %278 }
  0x84   :  { %v301_v16 = vsel %vm34_vm0, %v261_v12, %v279_v15 }
  0x85   :  { %v312_v17 = vsel %vm308_vm5, %v301_v16, %v291_v14 }
  0x86   :  { %3214 = vmatmul.mubr.msk.bf16.vlgmr.msra.gmra.mrb[0].mxu0 %vm326_vm6, %v312_v17 }
  0x87   :  { %v283_v18 = vpop.permute.xlu1 %282  ;;  %v281_v19 = vpop.permute.xlu0 %280 }
  0x88   :  { %v307_v20 = vsel %vm34_vm0, %v263_v54, %v283_v18  ;;  %v304_v21 = vsel %vm34_vm0, %v262_v59, %v281_v19 }
  0x8b   :  { %v295_v22 = vpop.permute.xlu1 %294  ;;  %v293_v23 = vpop.permute.xlu0 %292 }
  0x8c   :  { %v316_v24 = vsel %vm308_vm5, %v307_v20, %v295_v22  ;;  %v314_v25 = vsel %vm308_vm5, %v304_v21, %v293_v23 }
  0x8d   :  { %3217 = vmatprep.mubr.msk.bf16.mxu0 %vm326_vm6, %v314_v25 }
  0x8e   :  { %3218 = vmatmul.mubr.msk.bf16.gmra.mrb[4].mxu0 %vm326_vm6, %v316_v24  ;;  %v3708_v24 = vadd.s32 1, %v144_v50 }
  0x90   :  { %vm516_vm9 = vcmp.lt.s32.totalorder %v3708_v24, 32 }
 0x159   :  { %v3626_v28 = vpop.f32.mrb[0].mxu0 }
 0x15a   :  { %v406_v32 = vmax.f32 %v3626_v28, 0.0  ;;  %v3635_v33 = vpop.f32.mrb[1].mxu0 }
 0x15b   :  { %v404_v35 = vmax.f32 %v3635_v33, 0.0  ;;  %v3641_v36 = vpop.f32.mrb[2].mxu0 }
 0x15c   :  { %v419_v37 = vmul.f32 %v3020_v29, %v406_v32  ;;  %v407_v38 = vmax.f32 %v3641_v36, 0.0  ;;  %v3646_v39 = vpop.f32.mrb[3].mxu0 }
 0x15d   :  { %v417_v41 = vmul.f32 %v3020_v29, %v404_v35  ;;  %v405_v42 = vmax.f32 %v3646_v39, 0.0 }
 0x15e   :  { %v432_v45 = vadd.f32 %v3021_v34, %v419_v37  ;;  %v420_v46 = vmul.f32 %v3020_v29, %v407_v38 }
 0x15f   :  { %v3658_v47 = vadd.f32 %v3021_v34, %v417_v41  ;;  %v418_v48 = vmul.f32 %v3020_v29, %v405_v42 }
 0x160   :  { %v3663_v49 = vadd.f32 %v3021_v34, %v420_v46  ;;  %v446_v51 = vrot.slane %v432_v45, 7  ;;  %v478_v52 = vrot.slane %v432_v45, 1 }
 0x161   :  { %v431_v53 = vadd.f32 %v3021_v34, %v418_v48  ;;  %v3665_v54 = vpop.f32.mrb[4].mxu0  ;;  %v476_v56 = vrot.slane %v3658_v47, 1  ;;  %v444_v4 = vrot.slane %v3658_v47, 7 }
 0x162   :  { %v447_v57 = vrot.slane %v3663_v49, 7  ;;  %v410_v58 = vmax.f32 %v3665_v54, 0.0  ;;  %v3672_v59 = vpop.f32.mrb[5].mxu0  ;;  %v473_v60 = vpack.c.bf16 %v3663_v49, %v432_v45  ;;  %v479_v22 = vrot.slane %v3663_v49, 1 }
 0x163   :  { %v445_v61 = vrot.slane %v431_v53, 7  ;;  %v477_v63 = vrot.slane %v431_v53, 1  ;;  %v408_v1 = vmax.f32 %v3672_v59, 0.0  ;;  %v3676_v2 = vpop.f32.mrb[6].mxu0  ;;  %v472_v3 = vpack.c.bf16 %v431_v53, %v3658_v47 }
 0x164   :  { %v423_v5 = vmul.f32 %v3020_v29, %v410_v58  ;;  %v411_v6 = vmax.f32 %v3676_v2, 0.0  ;;  %559 = vrot.lane.b32.xlu1 %v473_v60, %s3461_s0  ;;  %v3684_v7 = vpop.f32.mrb[7].mxu0  ;;  %v3688_v8 = vsel %vm195_vm2, %v446_v51, %v447_v57  ;;  %v489_v46 = vsel %vm484_vm7, %v478_v52, %v479_v22 }
 0x165   :  { %v421_v9 = vmul.f32 %v3020_v29, %v408_v1  ;;  %v409_v11 = vmax.f32 %v3684_v7, 0.0  ;;  %557 = vrot.lane.b32.xlu0 %v472_v3, %s3461_s0  ;;  %v490_v12 = vsel %vm484_vm7, %v477_v63, %v478_v52  ;;  %v491_v13 = vsel %vm484_vm7, %v476_v56, %v477_v63 }
 0x166   :  { %v436_v14 = vadd.f32 %v3021_v34, %v423_v5  ;;  %v424_v15 = vmul.f32 %v3020_v29, %v411_v6  ;;  %v549_v16 = vpack.c.bf16 %v490_v12, %v491_v13  ;;  %v457_v17 = vsel %vm195_vm2, %v445_v61, %v446_v51 }
 0x167   :  { %v434_v18 = vadd.f32 %v3021_v34, %v421_v9  ;;  %v422_v19 = vmul.f32 %v3020_v29, %v409_v11  ;;  %v469_v20 = vpack.c.bf16 %v3688_v8, %v457_v17  ;;  %v458_v21 = vsel %vm195_vm2, %v444_v4, %v445_v61 }
 0x168   :  { %v437_v23 = vadd.f32 %v3021_v34, %v424_v15  ;;  %v482_v27 = vrot.slane %v436_v14, 1  ;;  %v450_v48 = vrot.slane %v436_v14, 7 }
 0x169   :  { %v480_v25 = vrot.slane %v434_v18, 1  ;;  %v435_v26 = vadd.f32 %v3021_v34, %v422_v19  ;;  %569 = vrot.lane.b32.xlu0 %v549_v16, %s3463_s5  ;;  %v448_v37 = vrot.slane %v434_v18, 7 }
 0x16a   :  { %v451_v29 = vrot.slane %v437_v23, 7  ;;  %v483_v40 = vrot.slane %v437_v23, 1  ;;  %v475_v9 = vpack.c.bf16 %v437_v23, %v436_v14 }
 0x16b   :  { %v449_v41 = vrot.slane %v435_v26, 7  ;;  %v481_v43 = vrot.slane %v435_v26, 1  ;;  %v474_v44 = vpack.c.bf16 %v435_v26, %v434_v18  ;;  %v488_v45 = vsel %vm484_vm7, %v479_v22, %v480_v25 }
 0x16c   :  { %v544_v34 = vsel %vm512_vm8, %v488_v45, 0.0  ;;  %v459_v47 = vsel %vm195_vm2, %v451_v29, %v444_v4  ;;  %v492_v52 = vsel %vm484_vm7, %v483_v40, %v476_v56  ;;  %v455_v3 = vsel %vm195_vm2, %v447_v57, %v448_v37 }
 0x16d   :  { %561 = vrot.lane.b32.xlu0 %v474_v44, %s3461_s0  ;;  %v550_v49 = vpack.c.bf16 %v544_v34, %v489_v46  ;;  %v486_v50 = vsel %vm484_vm7, %v481_v43, %v482_v27  ;;  %v487_v51 = vsel %vm484_vm7, %v480_v25, %v481_v43  ;;  %v460_v60 = vsel %vm212_vm4, %v459_v47, 0.0  ;;  %v3423_v44 = vld [vmem:[%s4593_s1 + $0x2c] sm:$0xff]  }
 0x16e   :  { %v551_v53 = vpack.c.bf16 %v486_v50, %v487_v51  ;;  %v454_v61 = vsel %vm195_vm2, %v448_v37, %v449_v41  ;;  %v468_v63 = vpack.c.bf16 %v458_v21, %v460_v60  ;;  %v452_v4 = vsel %vm195_vm2, %v450_v48, %v451_v29  ;;  %v3029_v46 = vld [vmem:[%s4594_s2 + $0x10] ss:$0 sm:$0xff] }
 0x16f   :  { %571 = vrot.lane.b32.xlu1 %v550_v49, %s3463_s5  ;;  %v453_v5 = vsel %vm195_vm2, %v449_v41, %v450_v48  ;;  %v464_v56 = vsel %vm216_vm3, %v455_v3, 0.0  ;;  %v485_v13 = vsel %vm484_vm7, %v482_v27, %v483_v40  ;;  %v548_v57 = vsel %vm516_vm9, %v492_v52, 0.0  ;;  %v3030_v48 = vld [vmem:[%s4594_s2 + $0x18] ss:$0 sm:$0xff] }
 0x170   :  { %v471_v8 = vpack.c.bf16 %v452_v4, %v453_v5  ;;  %v470_v12 = vpack.c.bf16 %v454_v61, %v464_v56  ;;  %v552_v15 = vpack.c.bf16 %v548_v57, %v485_v13 }
 0x171   :  { %573 = vrot.lane.b32.xlu0 %v551_v53, %s3463_s5 }
 0x173   :  { %563 = vrot.lane.b32.xlu1 %v475_v9, %s3461_s0 }
 0x177   :  { %575 = vrot.lane.b32.xlu1 %v552_v15, %s3463_s5 }
 0x1d6   :  { %v560_v19 = vpop.permute.xlu1 %559 }
 0x1d7   :  { %v558_v16 = vpop.permute.xlu0 %557  ;;  %v582_v22 = vsel %vm308_vm5, %v469_v20, %v560_v19  ;;  %v3422_v20 = vld [vmem:[%s4593_s1 + $0x24] sm:$0xff]  }
 0x1d8   :  { %v579_v17 = vsel %vm308_vm5, %v468_v63, %v558_v16  ;;  %3235 = vmatprep.subr.bf16.mxu0 %v3422_v20  ;;  %v3424_v63 = vld [vmem:[%s4593_s1 + $0x34] sm:$0xff]  }
 0x1d9   :  { %3236 = vmatpush3.bf16.msra.mxu0 %v3422_v20 }
 0x1da   :  { %3237 = vmatprep.subr.bf16.mxu0 %v3423_v44 }
 0x1db   :  { %v570_v18 = vpop.permute.xlu0 %569 }
 0x1dc   :  { %v591_v14 = vsel %vm589_vm10, %v579_v17, %v570_v18 }
 0x1dd   :  { %3227 = vmatprep.mubr.msk.bf16.mxu1 %vm616_vm11, %v591_v14  ;;  %3238 = vmatpush3.bf16.msra.mxu0 %v3423_v44 }
 0x1de   :  { %3239 = vmatprep.subr.bf16.mxu0 %v3424_v63 }
 0x1df   :  { %v562_v21 = vpop.permute.xlu0 %561 }
 0x1e0   :  { %v585_v26 = vsel %vm308_vm5, %v470_v12, %v562_v21 }
 0x1e1   :  { %v572_v23 = vpop.permute.xlu1 %571  ;;  %3240 = vmatpush3.bf16.msra.mxu0 %v3424_v63 }
 0x1e2   :  { %v593_v25 = vsel %vm589_vm10, %v582_v22, %v572_v23 }
 0x1e3   :  { %3228 = vmatmul.mubr.msk.bf16.vlgmr.msra.gmra.mrb[0].mxu1 %vm616_vm11, %v593_v25  ;;  %v574_v27 = vpop.permute.xlu0 %573 }
 0x1e4   :  { %v595_v37 = vsel %vm589_vm10, %v585_v26, %v574_v27 }
 0x1e5   :  { %v564_v29 = vpop.permute.xlu1 %563  ;;  %3231 = vmatprep.mubr.msk.bf16.mxu1 %vm616_vm11, %v595_v37 }
 0x1e6   :  { %v588_v40 = vsel %vm308_vm5, %v471_v8, %v564_v29 }
 0x1e9   :  { %v576_v41 = vpop.permute.xlu1 %575 }
 0x1ea   :  { %v597_v43 = vsel %vm589_vm10, %v588_v40, %v576_v41 }
 0x1eb   :  { %3232 = vmatmul.mubr.msk.bf16.gmra.mrb[4].mxu1 %vm616_vm11, %v597_v43 }
 0x2b6   :  { %v3229_v45 = vpop.f32.mrb[0].mxu1 }
 0x2b7   :  { %v692_v34 = vmax.f32 %v3229_v45, 0.0  ;;  %v659_v47 = vpop.f32.mrb[1].mxu1 }
 0x2b8   :  { %v690_v49 = vmax.f32 %v659_v47, 0.0  ;;  %v3230_v50 = vpop.f32.mrb[2].mxu1 }
 0x2b9   :  { %v705_v51 = vmul.f32 %v3029_v46, %v692_v34  ;;  %v693_v53 = vmax.f32 %v3230_v50, 0.0  ;;  %v662_v52 = vpop.f32.mrb[3].mxu1 }
 0x2ba   :  { %v703_v60 = vmul.f32 %v3029_v46, %v690_v49  ;;  %v691_v61 = vmax.f32 %v662_v52, 0.0 }
 0x2bb   :  { %v718_v3 = vadd.f32 %v3030_v48, %v705_v51  ;;  %v706_v4 = vmul.f32 %v3029_v46, %v693_v53 }
 0x2bc   :  { %v716_v5 = vadd.f32 %v3030_v48, %v703_v60  ;;  %v704_v56 = vmul.f32 %v3029_v46, %v691_v61 }
 0x2bd   :  { %v732_v8 = vrot.slane %v718_v3, 7  ;;  %v3775_v9 = vadd.f32 %v3030_v48, %v706_v4  ;;  %v764_v12 = vrot.slane %v718_v3, 1 }
 0x2be   :  { %v730_v13 = vrot.slane %v716_v5, 7  ;;  %v762_v57 = vrot.slane %v716_v5, 1  ;;  %v717_v15 = vadd.f32 %v3030_v48, %v704_v56  ;;  %v3233_v16 = vpop.f32.mrb[4].mxu1 }
 0x2bf   :  { %v733_v17 = vrot.slane %v3775_v9, 7  ;;  %v765_v18 = vrot.slane %v3775_v9, 1  ;;  %v696_v14 = vmax.f32 %v3233_v16, 0.0  ;;  %v675_v19 = vpop.f32.mrb[5].mxu1  ;;  %v759_v21 = vpack.c.bf16 %v3775_v9, %v718_v3 }
 0x2c0   :  { %v731_v22 = vrot.slane %v717_v15, 7  ;;  %v763_v23 = vrot.slane %v717_v15, 1  ;;  %v694_v25 = vmax.f32 %v675_v19, 0.0  ;;  %v3234_v26 = vpop.f32.mrb[6].mxu1  ;;  %v758_v27 = vpack.c.bf16 %v717_v15, %v716_v5 }
 0x2c1   :  { %v709_v37 = vmul.f32 %v3029_v46, %v696_v14  ;;  %v697_v29 = vmax.f32 %v3234_v26, 0.0  ;;  %796 = vrot.lane.b32.xlu1 %v759_v21, %s3461_s0  ;;  %v678_v40 = vpop.f32.mrb[7].mxu1  ;;  %v774_v41 = vsel %vm484_vm7, %v764_v12, %v765_v18  ;;  %v742_v43 = vsel %vm195_vm2, %v732_v8, %v733_v17 }
 0x2c2   :  { %v707_v20 = vmul.f32 %v3029_v46, %v694_v25  ;;  %v695_v44 = vmax.f32 %v678_v40, 0.0  ;;  %794 = vrot.lane.b32.xlu0 %v758_v27, %s3461_s0  ;;  %v775_v45 = vsel %vm484_vm7, %v763_v23, %v764_v12  ;;  %v776_v34 = vsel %vm484_vm7, %v762_v57, %v763_v23 }
 0x2c3   :  { %v722_v47 = vadd.f32 %v3030_v48, %v709_v37  ;;  %v710_v49 = vmul.f32 %v3029_v46, %v697_v29  ;;  %v786_v50 = vpack.c.bf16 %v775_v45, %v776_v34  ;;  %v743_v51 = vsel %vm195_vm2, %v731_v22, %v732_v8 }
 0x2c4   :  { %v720_v53 = vadd.f32 %v3030_v48, %v707_v20  ;;  %v708_v52 = vmul.f32 %v3029_v46, %v695_v44  ;;  %v755_v60 = vpack.c.bf16 %v742_v43, %v743_v51  ;;  %v744_v61 = vsel %vm195_vm2, %v730_v13, %v731_v22 }
 0x2c5   :  { %v723_v63 = vadd.f32 %v3030_v48, %v710_v49  ;;  %v736_v3 = vrot.slane %v722_v47, 7  ;;  %v768_v4 = vrot.slane %v722_v47, 1 }
 0x2c6   :  { %v766_v5 = vrot.slane %v720_v53, 1  ;;  %v721_v56 = vadd.f32 %v3030_v48, %v708_v52  ;;  %806 = vrot.lane.b32.xlu0 %v786_v50, %s3463_s5  ;;  %v734_v9 = vrot.slane %v720_v53, 7 }
 0x2c7   :  { %v737_v12 = vrot.slane %v723_v63, 7  ;;  %v769_v15 = vrot.slane %v723_v63, 1  ;;  %v761_v16 = vpack.c.bf16 %v723_v63, %v722_v47 }
 0x2c8   :  { %v735_v14 = vrot.slane %v721_v56, 7  ;;  %v767_v19 = vrot.slane %v721_v56, 1  ;;  %v760_v8 = vpack.c.bf16 %v721_v56, %v720_v53  ;;  %v773_v46 = vsel %vm484_vm7, %v765_v18, %v766_v5 }
 0x2c9   :  { %v781_v21 = vsel %vm512_vm8, %v773_v46, 0.0  ;;  %v770_v22 = vsel %vm484_vm7, %v768_v4, %v769_v15  ;;  %v777_v48 = vsel %vm484_vm7, %v769_v15, %v762_v57  ;;  %v745_v23 = vsel %vm195_vm2, %v737_v12, %v730_v13 }
 0x2ca   :  { %798 = vrot.lane.b32.xlu0 %v760_v8, %s3461_s0  ;;  %v787_v25 = vpack.c.bf16 %v781_v21, %v774_v41  ;;  %v771_v26 = vsel %vm484_vm7, %v767_v19, %v768_v4  ;;  %v772_v18 = vsel %vm484_vm7, %v766_v5, %v767_v19  ;;  %v785_v55 = vsel %vm516_vm9, %v777_v48, 0.0  ;;  %v3426_v48 = vld [vmem:[%s4593_s1 + $0x44] sm:$0xff]  }
 0x2cb   :  { %v788_v27 = vpack.c.bf16 %v771_v26, %v772_v18  ;;  %v789_v37 = vpack.c.bf16 %v785_v55, %v770_v22  ;;  %v746_v57 = vsel %vm212_vm4, %v745_v23, 0.0  ;;  %v740_v13 = vsel %vm195_vm2, %v734_v9, %v735_v14 }
 0x2cc   :  { %808 = vrot.lane.b32.xlu1 %v787_v25, %s3463_s5  ;;  %v754_v29 = vpack.c.bf16 %v744_v61, %v746_v57  ;;  %v741_v40 = vsel %vm195_vm2, %v733_v17, %v734_v9  ;;  %v738_v41 = vsel %vm195_vm2, %v736_v3, %v737_v12  ;;  %v739_v24 = vsel %vm195_vm2, %v735_v14, %v736_v3 }
 0x2cd   :  { %v750_v43 = vsel %vm216_vm3, %v741_v40, 0.0  ;;  %v757_v62 = vpack.c.bf16 %v738_v41, %v739_v24  ;;  %v85_v18 = vadd.s32 16, %v3526_v10  ;;  %vm1252_vm3 = vcmask 523264  }
 0x2ce   :  { %810 = vrot.lane.b32.xlu0 %v788_v27, %s3463_s5  ;;  %v756_v20 = vpack.c.bf16 %v740_v13, %v750_v43  ;;  %v3427_v27 = vld [vmem:[%s4593_s1 + $0x4c] sm:$0xff]   ;;  %v967_v13 = vand.u32 15, %v3526_v10  ;;  %vm1293_vm4 = vcmask 785408   ;;  %vm2617_vm8 = vcmask 1041408  }
 0x2cf   :  { %vm2611_vm9 = vcmask 23552  }
 0x2d0   :  { %800 = vrot.lane.b32.xlu1 %v761_v16, %s3461_s0 }
 0x2d4   :  { %812 = vrot.lane.b32.xlu1 %v789_v37, %s3463_s5 }
 0x333   :  { %v797_v47 = vpop.permute.xlu1 %796 }
 0x334   :  { %v795_v44 = vpop.permute.xlu0 %794  ;;  %v819_v31 = vsel %vm308_vm5, %v755_v60, %v797_v47  ;;  %v3425_v60 = vld [vmem:[%s4593_s1 + $0x3c] sm:$0xff]  }
 0x335   :  { %v816_v17 = vsel %vm308_vm5, %v754_v29, %v795_v44  ;;  %3249 = vmatprep.subr.bf16.mxu1 %v3425_v60  ;;  %v981_v29 = vand.u32 15, %v85_v18 }
 0x336   :  { %3250 = vmatpush3.bf16.msra.mxu1 %v3425_v60 }
 0x337   :  { %3251 = vmatprep.subr.bf16.mxu1 %v3426_v48  ;;  %v3880_v41 = vadd.s32 4294967295, %v981_v29 }
 0x338   :  { %v807_v45 = vpop.permute.xlu0 %806 }
 0x339   :  { %v827_v34 = vsel %vm589_vm10, %v816_v17, %v807_v45  ;;  %vm1025_vm13 = vcmp.ge.s32.totalorder %v3880_v41, 0 }
 0x33a   :  { %3241 = vmatprep.mubr.msk.bf16.mxu0 %vm616_vm11, %v827_v34  ;;  %3252 = vmatpush3.bf16.msra.mxu1 %v3426_v48  ;;  %v3043_v48 = vld [vmem:[%s4594_s2 + $0x20] ss:$0 sm:$0xff] }
 0x33b   :  { %3253 = vmatprep.subr.bf16.mxu1 %v3427_v27 }
 0x33c   :  { %v799_v49 = vpop.permute.xlu0 %798 }
 0x33d   :  { %v822_v53 = vsel %vm308_vm5, %v756_v20, %v799_v49 }
 0x33e   :  { %v809_v50 = vpop.permute.xlu1 %808  ;;  %3254 = vmatpush3.bf16.msra.mxu1 %v3427_v27 }
 0x33f   :  { %v829_v51 = vsel %vm589_vm10, %v819_v31, %v809_v50 }
 0x340   :  { %3242 = vmatmul.mubr.msk.bf16.vlgmr.msra.gmra.mrb[8].mxu0 %vm616_vm11, %v829_v51  ;;  %v811_v52 = vpop.permute.xlu0 %810 }
 0x341   :  { %v831_v61 = vsel %vm589_vm10, %v822_v53, %v811_v52 }
 0x342   :  { %v801_v63 = vpop.permute.xlu1 %800  ;;  %3245 = vmatprep.mubr.msk.bf16.mxu0 %vm616_vm11, %v831_v61 }
 0x343   :  { %v825_v3 = vsel %vm308_vm5, %v757_v62, %v801_v63 }
 0x346   :  { %v813_v4 = vpop.permute.xlu1 %812 }
 0x347   :  { %v833_v5 = vsel %vm589_vm10, %v825_v3, %v813_v4 }
 0x348   :  { %3246 = vmatmul.mubr.msk.bf16.gmra.mrb[12].mxu0 %vm616_vm11, %v833_v5 }
 0x413   :  { %v3243_v56 = vpop.f32.mrb[8].mxu0 }
 0x414   :  { %v927_v9 = vmax.f32 %v3243_v56, 0.0  ;;  %v894_v12 = vpop.f32.mrb[9].mxu0 }
 0x415   :  { %v925_v15 = vmax.f32 %v894_v12, 0.0  ;;  %v3244_v16 = vpop.f32.mrb[10].mxu0  ;;  %v3428_v12 = vld [vmem:[%s4593_s1 + $0x54] sm:$0xff]  }
 0x416   :  { %v935_v14 = vadd.f32 %v927_v9, %v406_v32  ;;  %v928_v19 = vmax.f32 %v3244_v16, 0.0  ;;  %v897_v8 = vpop.f32.mrb[11].mxu0  ;;  %3259 = vmatprep.subr.bf16.mxu0 %v3428_v12  ;;  %v3430_v16 = vld [vmem:[%s4593_s1 + $0x64] sm:$0xff]  }
 0x417   :  { %v933_v46 = vadd.f32 %v925_v15, %v404_v35  ;;  %v926_v21 = vmax.f32 %v897_v8, 0.0  ;;  %v3429_v15 = vld [vmem:[%s4593_s1 + $0x5c] sm:$0xff]   ;;  %3260 = vmatpush3.bf16.msra.mxu0 %v3428_v12  ;;  %v84_v8 = vadd.s32 8, %v3526_v10 }
 0x418   :  { %949 = vst.msk [vmem:[#allocation2 + $0x10] sm:$0xff] %vm308_vm5, %v935_v14  ;;  %v936_v22 = vadd.f32 %v928_v19, %v407_v38  ;;  %3261 = vmatprep.subr.bf16.mxu0 %v3429_v15  ;;  %v3431_v14 = vld [vmem:[%s4593_s1 + $0x6c] sm:$0xff]   ;;  %v3432_v19 = vld [vmem:[%s4593_s1 + $0x74] sm:$0xff]  }
 0x419   :  { %947 = vst.msk [vmem:[#allocation2] sm:$0xff] %vm308_vm5, %v933_v46  ;;  %v934_v28 = vadd.f32 %v926_v21, %v405_v42  ;;  %v988_v46 = vand.u32 15, %v3632_v30  ;;  %v3433_v21 = vld [vmem:[%s4593_s1 + $0x7c] sm:$0xff]  }
 0x41a   :  { %950 = vst.msk [vmem:[#allocation2 + $0x18] sm:$0xff] %vm308_vm5, %v936_v22 }
 0x41b   :  { %948 = vst.msk [vmem:[#allocation2 + $0x8] sm:$0xff] %vm308_vm5, %v934_v28  ;;  %v3247_v32 = vpop.f32.mrb[12].mxu0  ;;  %3262 = vmatpush3.bf16.msra.mxu0 %v3429_v15 }
 0x41c   :  { %v931_v33 = vmax.f32 %v3247_v32, 0.0  ;;  %v910_v35 = vpop.f32.mrb[13].mxu0  ;;  %3263 = vmatprep.subr.bf16.mxu0 %v3430_v16 }
 0x41d   :  { %v929_v36 = vmax.f32 %v910_v35, 0.0  ;;  %v3248_v38 = vpop.f32.mrb[14].mxu0 }
 0x41e   :  { %v939_v23 = vadd.f32 %v931_v33, %v410_v58  ;;  %v932_v25 = vmax.f32 %v3248_v38, 0.0  ;;  %v913_v26 = vpop.f32.mrb[15].mxu0  ;;  %v3044_v33 = vld [vmem:[%s4594_s2 + $0x28] ss:$0 sm:$0xff]  ;;  %v3937_v38 = vadd.s32 1, %v988_v46  ;;  %v3437_v46 = vld [vmem:[%s4593_s1 + $0x9c] sm:$0xff]  }
 0x41f   :  { %v937_v39 = vadd.f32 %v929_v36, %v408_v1  ;;  %v930_v42 = vmax.f32 %v913_v26, 0.0  ;;  %3264 = vmatpush3.bf16.msra.mxu0 %v3430_v16  ;;  %v974_v36 = vand.u32 15, %v84_v8  ;;  %v3436_v8 = vld [vmem:[%s4593_s1 + $0x94] sm:$0xff]  }
 0x420   :  { %953 = vst.msk [vmem:[#allocation2 + $0x30] sm:$0xff] %vm308_vm5, %v939_v23  ;;  %v940_v55 = vadd.f32 %v932_v25, %v411_v6  ;;  %3265 = vmatprep.subr.bf16.mxu0 %v3431_v14  ;;  %vm1215_vm14 = vcmp.lt.s32.totalorder %v3937_v38, 16 }
 0x421   :  { %951 = vst.msk [vmem:[#allocation2 + $0x20] sm:$0xff] %vm308_vm5, %v937_v39  ;;  %v938_v54 = vadd.f32 %v930_v42, %v409_v11  ;;  %v956_v58 = vld [vmem:[#allocation2 + $0x10] ss:$2 sm:$0xff]  ;;  %v960_v59 = vld [vmem:[#allocation2 + $0x11] ss:$2 sm:$0xff]  ;;  %v3878_v11 = vadd.s32 4294967295, %v967_v13 }
 0x422   :  { %954 = vst.msk [vmem:[#allocation2 + $0x38] sm:$0xff] %vm308_vm5, %v940_v55  ;;  %v955_v1 = vld [vmem:[#allocation2] ss:$2 sm:$0xff]  ;;  %v959_v37 = vld [vmem:[#allocation2 + $0x1] ss:$2 sm:$0xff]  ;;  %v1012_v57 = vrot.slane %v960_v59, 7 }
 0x423   :  { %952 = vst.msk [vmem:[#allocation2 + $0x28] sm:$0xff] %vm308_vm5, %v938_v54  ;;  %v1049_v2 = vpack.c.bf16 %v956_v58, %v955_v1  ;;  %v1011_v6 = vrot.slane %v959_v37, 7  ;;  %v1051_v40 = vpack.c.bf16 %v960_v59, %v959_v37  ;;  %vm1023_vm12 = vcmp.ge.s32.totalorder %v3878_v11, 0  ;;  %3266 = vmatpush3.bf16.msra.mxu0 %v3431_v14  ;;  %v3434_v14 = vld [vmem:[%s4593_s1 + $0x84] sm:$0xff]  }
 0x424   :  { %3267 = vmatprep.subr.bf16.mxu0 %v3432_v19  ;;  %v3951_v58 = vadd.s32 1, %v974_v36  ;;  %3275 = vmatprep.subr.bf16.mxu1 %v3434_v14  ;;  %v3053_v36 = vld [vmem:[%s4594_s2 + $0x30] ss:$0 sm:$0xff] }
 0x425   :  { %1055 = vrot.lane.b32.xlu0 %v1049_v2, %s3461_s0  ;;  %v1017_v7 = vsel %vm195_vm2, %v1011_v6, %v1012_v57 }
 0x426   :  { %vm1213_vm15 = vcmp.lt.s32.totalorder %v3951_v58, 16 }
 0x427   :  { %3268 = vmatpush3.bf16.msra.mxu0 %v3432_v19  ;;  %v3435_v19 = vld [vmem:[%s4593_s1 + $0x8c] sm:$0xff]  }
 0x428   :  { %3269 = vmatprep.subr.bf16.mxu0 %v3433_v21 }
 0x429   :  { %1061 = vrot.lane.b32.xlu0 %v1051_v40, %s3463_s5  ;;  %v958_v24 = vld [vmem:[#allocation2 + $0x30] ss:$2 sm:$0xff]  ;;  %v962_v43 = vld [vmem:[#allocation2 + $0x31] ss:$2 sm:$0xff] }
 0x42a   :  { %v957_v62 = vld [vmem:[#allocation2 + $0x20] ss:$2 sm:$0xff]  ;;  %v961_v20 = vld [vmem:[#allocation2 + $0x21] ss:$2 sm:$0xff]  ;;  %v1014_v44 = vrot.slane %v962_v43, 7 }
 0x42b   :  { %v1050_v17 = vpack.c.bf16 %v958_v24, %v957_v62  ;;  %v1013_v45 = vrot.slane %v961_v20, 7  ;;  %v1052_v53 = vpack.c.bf16 %v962_v43, %v961_v20  ;;  %3270 = vmatpush3.bf16.msra.mxu0 %v3433_v21  ;;  %v3438_v21 = vld [vmem:[%s4593_s1 + $0xa4] sm:$0xff]  }
 0x42c   :  { %v1018_v34 = vsel %vm195_vm2, %v1014_v44, %v1011_v6 }
 0x42d   :  { %1057 = vrot.lane.b32.xlu1 %v1050_v17, %s3461_s0  ;;  %v1043_v47 = vsel %vm1023_vm12, %v1018_v34, 0.0  ;;  %v1015_v49 = vsel %vm195_vm2, %v1013_v45, %v1014_v44  ;;  %v1016_v31 = vsel %vm195_vm2, %v1012_v57, %v1013_v45 }
 0x42e   :  { %v1047_v50 = vpack.c.bf16 %v1017_v7, %v1043_v47  ;;  %v1045_v51 = vsel %vm1025_vm13, %v1016_v31, 0.0 }
 0x42f   :  { %v1048_v52 = vpack.c.bf16 %v1015_v49, %v1045_v51 }
 0x431   :  { %1063 = vrot.lane.b32.xlu1 %v1052_v53, %s3463_s5 }
 0x497   :  { %v1056_v61 = vpop.permute.xlu0 %1055 }
 0x498   :  { %v1067_v63 = vsel %vm308_vm5, %v1047_v50, %v1056_v61 }
 0x49b   :  { %v1062_v3 = vpop.permute.xlu0 %1061 }
 0x49c   :  { %v1072_v4 = vsel %vm589_vm10, %v1067_v63, %v1062_v3 }
 0x49d   :  { %3255 = vmatprep.mubr.msk.bf16.mxu1 %vm616_vm11, %v1072_v4 }
 0x49f   :  { %v1058_v5 = vpop.permute.xlu1 %1057 }
 0x4a0   :  { %v1070_v60 = vsel %vm308_vm5, %v1048_v52, %v1058_v5 }
 0x4a3   :  { %v1064_v56 = vpop.permute.xlu1 %1063 }
 0x4a4   :  { %v1074_v9 = vsel %vm589_vm10, %v1070_v60, %v1064_v56 }
 0x4a5   :  { %3256 = vmatmul.mubr.msk.bf16.vlgmr.msra.gmra.mrb[8].mxu1 %vm616_vm11, %v1074_v9 }
 0x4a6   :  { %3276 = vmatpush3.bf16.msra.mxu1 %v3434_v14 }
 0x4a7   :  { %3277 = vmatprep.subr.bf16.mxu1 %v3435_v19 }
 0x4aa   :  { %3278 = vmatpush3.bf16.msra.mxu1 %v3435_v19 }
 0x4ab   :  { %3279 = vmatprep.subr.bf16.mxu1 %v3436_v8 }
 0x4ae   :  { %3280 = vmatpush3.bf16.msra.mxu1 %v3436_v8 }
 0x4af   :  { %3281 = vmatprep.subr.bf16.mxu1 %v3437_v46 }
 0x4b2   :  { %3282 = vmatpush3.bf16.msra.mxu1 %v3437_v46 }
 0x4b3   :  { %3283 = vmatprep.subr.bf16.mxu1 %v3438_v21 }
 0x4b6   :  { %3284 = vmatpush3.bf16.msra.mxu1 %v3438_v21 }
 0x578   :  { %v3923_v22 = vpop.f32.mrb[8].mxu1 }
 0x579   :  { %v1148_v28 = vmax.f32 %v3923_v22, 0.0  ;;  %v3929_v32 = vpop.f32.mrb[9].mxu1 }
 0x57a   :  { %v1146_v30 = vmax.f32 %v3929_v32, 0.0  ;;  %v3935_v35 = vpop.f32.mrb[10].mxu1 }
 0x57b   :  { %v1157_v23 = vmul.f32 %v3043_v48, %v1148_v28  ;;  %v1149_v25 = vmax.f32 %v3935_v35, 0.0  ;;  %v3942_v26 = vpop.f32.mrb[11].mxu1 }
 0x57c   :  { %v1155_v39 = vmul.f32 %v3043_v48, %v1146_v30  ;;  %v1147_v42 = vmax.f32 %v3942_v26, 0.0 }
 0x57d   :  { %v1166_v18 = vadd.f32 %v3044_v33, %v1157_v23  ;;  %v1158_v55 = vmul.f32 %v3043_v48, %v1149_v25 }
 0x57e   :  { %v1164_v27 = vadd.f32 %v3044_v33, %v1155_v39  ;;  %v1156_v54 = vmul.f32 %v3043_v48, %v1147_v42  ;;  %v3439_v48 = vld [vmem:[%s4593_s1 + $0xac] sm:$0xff]  }
 0x57f   :  { %v1167_v59 = vadd.f32 %v3044_v33, %v1158_v55  ;;  %v1182_v1 = vrot.slane %v1166_v18, 7  ;;  %v1198_v2 = vrot.slane %v1166_v18, 1  ;;  %3285 = vmatprep.subr.bf16.mxu1 %v3439_v48 }
 0x580   :  { %v1180_v37 = vrot.slane %v1164_v27, 7  ;;  %v1196_v57 = vrot.slane %v1164_v27, 1  ;;  %v1165_v13 = vadd.f32 %v3044_v33, %v1156_v54  ;;  %3286 = vmatpush3.bf16.msra.mxu1 %v3439_v48 }
 0x581   :  { %v1183_v6 = vrot.slane %v1167_v59, 7  ;;  %v1199_v29 = vrot.slane %v1167_v59, 1  ;;  %v1195_v7 = vpack.c.bf16 %v1167_v59, %v1166_v18  ;;  %v3054_v18 = vld [vmem:[%s4594_s2 + $0x38] ss:$0 sm:$0xff] }
 0x582   :  { %v1181_v40 = vrot.slane %v1165_v13, 7  ;;  %v1197_v24 = vrot.slane %v1165_v13, 1  ;;  %v1194_v43 = vpack.c.bf16 %v1165_v13, %v1164_v27 }
 0x583   :  { %1238 = vrot.lane.b32.xlu1 %v1195_v7, %s3463_s5  ;;  %v1200_v62 = vsel %vm484_vm7, %v1198_v2, %v1199_v29  ;;  %v1203_v20 = vsel %vm484_vm7, %v1199_v29, %v1196_v57  ;;  %v1184_v44 = vsel %vm195_vm2, %v1182_v1, %v1183_v6  ;;  %v1187_v17 = vsel %vm195_vm2, %v1183_v6, %v1180_v37 }
 0x584   :  { %1236 = vrot.lane.b32.xlu0 %v1194_v43, %s3463_s5  ;;  %v1231_v45 = vsel %vm1215_vm14, %v1203_v20, 0.0  ;;  %v1201_v34 = vsel %vm484_vm7, %v1197_v24, %v1198_v2  ;;  %v1202_v47 = vsel %vm484_vm7, %v1196_v57, %v1197_v24  ;;  %v1185_v49 = vsel %vm195_vm2, %v1181_v40, %v1182_v1 }
 0x585   :  { %v1233_v31 = vpack.c.bf16 %v1231_v45, %v1200_v62  ;;  %v1229_v50 = vsel %vm1213_vm15, %v1201_v34, 0.0  ;;  %v1190_v51 = vsel %vm1025_vm13, %v1185_v49, 0.0  ;;  %v1188_v53 = vsel %vm1023_vm12, %v1187_v17, 0.0 }
 0x586   :  { %v1232_v52 = vpack.c.bf16 %v1229_v50, %v1202_v47  ;;  %v1193_v61 = vpack.c.bf16 %v1184_v44, %v1190_v51  ;;  %v1186_v63 = vsel %vm195_vm2, %v1180_v37, %v1181_v40 }
 0x587   :  { %1244 = vrot.lane.b32.xlu1 %v1233_v31, %s3464_s13  ;;  %v1192_v3 = vpack.c.bf16 %v1186_v63, %v1188_v53 }
 0x588   :  { %1242 = vrot.lane.b32.xlu0 %v1232_v52, %s3464_s13 }
 0x5f5   :  { %v1239_v4 = vpop.permute.xlu1 %1238 }
 0x5f6   :  { %v1237_v5 = vpop.permute.xlu0 %1236  ;;  %v1251_v12 = vsel %vm589_vm10, %v1193_v61, %v1239_v4 }
 0x5f7   :  { %v1248_v56 = vsel %vm589_vm10, %v1192_v3, %v1237_v5 }
 0x5f9   :  { %v1245_v60 = vpop.permute.xlu1 %1244 }
 0x5fa   :  { %v1243_v9 = vpop.permute.xlu0 %1242  ;;  %v1256_v16 = vsel %vm1252_vm3, %v1251_v12, %v1245_v60 }
 0x5fb   :  { %v1254_v15 = vsel %vm1252_vm3, %v1248_v56, %v1243_v9 }
 0x5fc   :  { %3271 = vmatprep.mubr.msk.bf16.mxu0 %vm1293_vm4, %v1254_v15 }
 0x5fd   :  { %3272 = vmatmul.mubr.msk.bf16.vlgmr.msra.gmra.mrb[16].mxu0 %vm1293_vm4, %v1256_v16 }
 0x6d0   :  { %v3273_v33 = vpop.f32.mrb[16].mxu0 }
 0x6d1   :  { %v1349_v23 = vmax.f32 %v3273_v33, 0.0  ;;  %v1332_v39 = vpop.f32.mrb[17].mxu0 }
 0x6d2   :  { %v1347_v55 = vmax.f32 %v1332_v39, 0.0  ;;  %v3274_v27 = vpop.f32.mrb[18].mxu0  ;;  %v3441_v39 = vld [vmem:[%s4593_s1 + $0xbc] sm:$0xff]  }
 0x6d3   :  { %v1358_v54 = vmul.f32 %v3053_v36, %v1349_v23  ;;  %v1350_v59 = vmax.f32 %v3274_v27, 0.0  ;;  %v1335_v1 = vpop.f32.mrb[19].mxu0  ;;  %v3440_v23 = vld [vmem:[%s4593_s1 + $0xb4] sm:$0xff]  }
 0x6d4   :  { %v1356_v37 = vmul.f32 %v3053_v36, %v1347_v55  ;;  %v1348_v57 = vmax.f32 %v1335_v1, 0.0  ;;  %3291 = vmatprep.subr.bf16.mxu0 %v3440_v23  ;;  %v3443_v55 = vld [vmem:[%s4593_s1 + $0xcc] sm:$0xff]   ;;  %v3444_v27 = vld [vmem:[%s4593_s1 + $0xd4] sm:$0xff]  }
 0x6d5   :  { %v1367_v13 = vadd.f32 %v3054_v18, %v1358_v54  ;;  %v1359_v2 = vmul.f32 %v3053_v36, %v1350_v59  ;;  %3292 = vmatpush3.bf16.msra.mxu0 %v3440_v23  ;;  %v3445_v54 = vld [vmem:[%s4593_s1 + $0xdc] sm:$0xff]  }
 0x6d6   :  { %v1365_v6 = vadd.f32 %v3054_v18, %v1356_v37  ;;  %v1357_v29 = vmul.f32 %v3053_v36, %v1348_v57  ;;  %3293 = vmatprep.subr.bf16.mxu0 %v3441_v39 }
 0x6d7   :  { %v1368_v7 = vadd.f32 %v3054_v18, %v1359_v2  ;;  %v1383_v40 = vrot.slane %v1367_v13, 7  ;;  %v1399_v20 = vrot.slane %v1367_v13, 1 }
 0x6d8   :  { %v1381_v24 = vrot.slane %v1365_v6, 7  ;;  %v1397_v43 = vrot.slane %v1365_v6, 1  ;;  %v1366_v62 = vadd.f32 %v3054_v18, %v1357_v29  ;;  %v3442_v18 = vld [vmem:[%s4593_s1 + $0xc4] sm:$0xff]  }
 0x6d9   :  { %v1384_v44 = vrot.slane %v1368_v7, 7  ;;  %v1400_v17 = vrot.slane %v1368_v7, 1  ;;  %v1396_v45 = vpack.c.bf16 %v1368_v7, %v1367_v13  ;;  %3294 = vmatpush3.bf16.msra.mxu0 %v3441_v39  ;;  %v3072_v39 = vld [vmem:[%s4594_s2 + $0x48] ss:$0 sm:$0xff] }
 0x6da   :  { %v1382_v34 = vrot.slane %v1366_v62, 7  ;;  %v1398_v47 = vrot.slane %v1366_v62, 1  ;;  %v1395_v49 = vpack.c.bf16 %v1366_v62, %v1365_v6  ;;  %3295 = vmatprep.subr.bf16.mxu0 %v3442_v18 }
 0x6db   :  { %1415 = vrot.lane.b32.xlu1 %v1396_v45, %s3463_s5  ;;  %v1401_v31 = vsel %vm484_vm7, %v1399_v20, %v1400_v17  ;;  %v1404_v50 = vsel %vm484_vm7, %v1400_v17, %v1397_v43  ;;  %v1385_v51 = vsel %vm195_vm2, %v1383_v40, %v1384_v44  ;;  %v1388_v53 = vsel %vm195_vm2, %v1384_v44, %v1381_v24 }
 0x6dc   :  { %1413 = vrot.lane.b32.xlu0 %v1395_v49, %s3463_s5  ;;  %v1408_v52 = vsel %vm1215_vm14, %v1404_v50, 0.0  ;;  %v1402_v61 = vsel %vm484_vm7, %v1398_v47, %v1399_v20  ;;  %v1403_v63 = vsel %vm484_vm7, %v1397_v43, %v1398_v47  ;;  %v1386_v3 = vsel %vm195_vm2, %v1382_v34, %v1383_v40 }
 0x6dd   :  { %v1410_v4 = vpack.c.bf16 %v1408_v52, %v1401_v31  ;;  %v1406_v5 = vsel %vm1213_vm15, %v1402_v61, 0.0  ;;  %v1391_v60 = vsel %vm1025_vm13, %v1386_v3, 0.0  ;;  %v1389_v56 = vsel %vm1023_vm12, %v1388_v53, 0.0  ;;  %3296 = vmatpush3.bf16.msra.mxu0 %v3442_v18 }
 0x6de   :  { %v1409_v9 = vpack.c.bf16 %v1406_v5, %v1403_v63  ;;  %v1394_v12 = vpack.c.bf16 %v1385_v51, %v1391_v60  ;;  %v1387_v15 = vsel %vm195_vm2, %v1381_v24, %v1382_v34  ;;  %3297 = vmatprep.subr.bf16.mxu0 %v3443_v55 }
 0x6df   :  { %1421 = vrot.lane.b32.xlu1 %v1410_v4, %s3464_s13  ;;  %v1393_v16 = vpack.c.bf16 %v1387_v15, %v1389_v56 }
 0x6e0   :  { %1419 = vrot.lane.b32.xlu0 %v1409_v9, %s3464_s13 }
 0x6e1   :  { %3298 = vmatpush3.bf16.msra.mxu0 %v3443_v55 }
 0x6e2   :  { %3299 = vmatprep.subr.bf16.mxu0 %v3444_v27 }
 0x6e5   :  { %3300 = vmatpush3.bf16.msra.mxu0 %v3444_v27 }
 0x6e6   :  { %3301 = vmatprep.subr.bf16.mxu0 %v3445_v54 }
 0x6e9   :  { %3302 = vmatpush3.bf16.msra.mxu0 %v3445_v54 }
 0x74d   :  { %v1416_v14 = vpop.permute.xlu1 %1415 }
 0x74e   :  { %v1414_v19 = vpop.permute.xlu0 %1413  ;;  %v1428_v48 = vsel %vm589_vm10, %v1394_v12, %v1416_v14 }
 0x74f   :  { %v1425_v46 = vsel %vm589_vm10, %v1393_v16, %v1414_v19 }
 0x751   :  { %v1422_v8 = vpop.permute.xlu1 %1421 }
 0x752   :  { %v1420_v21 = vpop.permute.xlu0 %1419  ;;  %v1432_v36 = vsel %vm1252_vm3, %v1428_v48, %v1422_v8  ;;  %v3446_v8 = vld [vmem:[%s4593_s1 + $0xe4] sm:$0xff]  }
 0x753   :  { %v1430_v33 = vsel %vm1252_vm3, %v1425_v46, %v1420_v21  ;;  %v3447_v46 = vld [vmem:[%s4593_s1 + $0xec] sm:$0xff]   ;;  %3307 = vmatprep.subr.bf16.mxu1 %v3446_v8  ;;  %v3448_v21 = vld [vmem:[%s4593_s1 + $0xf4] sm:$0xff]  }
 0x754   :  { %3287 = vmatprep.mubr.msk.bf16.mxu1 %vm1293_vm4, %v1430_v33  ;;  %v3071_v33 = vld [vmem:[%s4594_s2 + $0x40] ss:$0 sm:$0xff] }
 0x755   :  { %3288 = vmatmul.mubr.msk.bf16.vlgmr.msra.gmra.mrb[12].mxu1 %vm1293_vm4, %v1432_v36 }
 0x756   :  { %3308 = vmatpush3.bf16.msra.mxu1 %v3446_v8 }
 0x757   :  { %3309 = vmatprep.subr.bf16.mxu1 %v3447_v46 }
 0x75a   :  { %3310 = vmatpush3.bf16.msra.mxu1 %v3447_v46  ;;  %v3078_v46 = vld [vmem:[%s4594_s2 + $0x50] ss:$0 sm:$0xff] }
 0x75b   :  { %3311 = vmatprep.subr.bf16.mxu1 %v3448_v21 }
 0x75e   :  { %3312 = vmatpush3.bf16.msra.mxu1 %v3448_v21 }
 0x828   :  { %v3289_v59 = vpop.f32.mrb[12].mxu1 }
 0x829   :  { %v1524_v1 = vmax.f32 %v3289_v59, 0.0  ;;  %v1507_v37 = vpop.f32.mrb[13].mxu1 }
 0x82a   :  { %v1522_v57 = vmax.f32 %v1507_v37, 0.0  ;;  %v3290_v13 = vpop.f32.mrb[14].mxu1 }
 0x82b   :  { %v1528_v2 = vadd.f32 %v1524_v1, %v1148_v28  ;;  %v1525_v6 = vmax.f32 %v3290_v13, 0.0  ;;  %v1510_v29 = vpop.f32.mrb[15].mxu1 }
 0x82c   :  { %v1526_v7 = vadd.f32 %v1522_v57, %v1146_v30  ;;  %v1523_v40 = vmax.f32 %v1510_v29, 0.0 }
 0x82d   :  { %v1529_v24 = vadd.f32 %v1525_v6, %v1149_v25  ;;  %v1544_v43 = vrot.slane %v1528_v2, 7  ;;  %v1560_v17 = vrot.slane %v1528_v2, 1 }
 0x82e   :  { %v1542_v62 = vrot.slane %v1526_v7, 7  ;;  %v1558_v20 = vrot.slane %v1526_v7, 1  ;;  %v1527_v44 = vadd.f32 %v1523_v40, %v1147_v42 }
 0x82f   :  { %v1545_v45 = vrot.slane %v1529_v24, 7  ;;  %v1561_v34 = vrot.slane %v1529_v24, 1  ;;  %v1557_v22 = vpack.c.bf16 %v1529_v24, %v1528_v2 }
 0x830   :  { %v1543_v28 = vrot.slane %v1527_v44, 7  ;;  %v1559_v47 = vrot.slane %v1527_v44, 1  ;;  %v1556_v49 = vpack.c.bf16 %v1527_v44, %v1526_v7 }
 0x831   :  { %1576 = vrot.lane.b32.xlu1 %v1557_v22, %s3463_s5  ;;  %v1562_v32 = vsel %vm484_vm7, %v1560_v17, %v1561_v34  ;;  %v1565_v30 = vsel %vm484_vm7, %v1561_v34, %v1558_v20  ;;  %v1546_v35 = vsel %vm195_vm2, %v1544_v43, %v1545_v45  ;;  %v1549_v25 = vsel %vm195_vm2, %v1545_v45, %v1542_v62 }
 0x832   :  { %1574 = vrot.lane.b32.xlu0 %v1556_v49, %s3463_s5  ;;  %v1569_v26 = vsel %vm1215_vm14, %v1565_v30, 0.0  ;;  %v1563_v42 = vsel %vm484_vm7, %v1559_v47, %v1560_v17  ;;  %v1564_v31 = vsel %vm484_vm7, %v1558_v20, %v1559_v47  ;;  %v1547_v50 = vsel %vm195_vm2, %v1543_v28, %v1544_v43 }
 0x833   :  { %v1571_v51 = vpack.c.bf16 %v1569_v26, %v1562_v32  ;;  %v1567_v53 = vsel %vm1213_vm15, %v1563_v42, 0.0  ;;  %v1552_v52 = vsel %vm1025_vm13, %v1547_v50, 0.0  ;;  %v1550_v61 = vsel %vm1023_vm12, %v1549_v25, 0.0 }
 0x834   :  { %v1570_v63 = vpack.c.bf16 %v1567_v53, %v1564_v31  ;;  %v1555_v3 = vpack.c.bf16 %v1546_v35, %v1552_v52  ;;  %v1548_v4 = vsel %vm195_vm2, %v1542_v62, %v1543_v28 }
 0x835   :  { %1582 = vrot.lane.b32.xlu1 %v1571_v51, %s3464_s13  ;;  %v1554_v5 = vpack.c.bf16 %v1548_v4, %v1550_v61 }
 0x836   :  { %1580 = vrot.lane.b32.xlu0 %v1570_v63, %s3464_s13 }
 0x8a3   :  { %v1577_v60 = vpop.permute.xlu1 %1576 }
 0x8a4   :  { %v1575_v56 = vpop.permute.xlu0 %1574  ;;  %v1589_v16 = vsel %vm589_vm10, %v1555_v3, %v1577_v60 }
 0x8a5   :  { %v1586_v12 = vsel %vm589_vm10, %v1554_v5, %v1575_v56 }
 0x8a7   :  { %v1583_v9 = vpop.permute.xlu1 %1582 }
 0x8a8   :  { %v1581_v15 = vpop.permute.xlu0 %1580  ;;  %v1593_v19 = vsel %vm1252_vm3, %v1589_v16, %v1583_v9  ;;  %v3449_v16 = vld [vmem:[%s4593_s1 + $0xfc] sm:$0xff]  }
 0x8a9   :  { %v1591_v14 = vsel %vm1252_vm3, %v1586_v12, %v1581_v15  ;;  %3317 = vmatprep.subr.bf16.mxu1 %v3449_v16 }
 0x8aa   :  { %3303 = vmatprep.mubr.msk.bf16.mxu0 %vm1293_vm4, %v1591_v14  ;;  %v3450_v14 = vld [vmem:[%s4593_s1 + $0x104] sm:$0xff]  }
 0x8ab   :  { %3304 = vmatmul.mubr.msk.bf16.vlgmr.msra.gmra.mrb[20].mxu0 %vm1293_vm4, %v1593_v19  ;;  %v3451_v19 = vld [vmem:[%s4593_s1 + $0x10c] sm:$0xff]  }
 0x97e   :  { %v4116_v48 = vpop.f32.mrb[20].mxu0 }
 0x97f   :  { %v1685_v36 = vmax.f32 %v4116_v48, 0.0  ;;  %v4122_v23 = vpop.f32.mrb[21].mxu0 }
 0x980   :  { %v1683_v18 = vmax.f32 %v4122_v23, 0.0  ;;  %v4128_v55 = vpop.f32.mrb[22].mxu0 }
 0x981   :  { %v1694_v27 = vmul.f32 %v3071_v33, %v1685_v36  ;;  %v1686_v54 = vmax.f32 %v4128_v55, 0.0  ;;  %v4133_v59 = vpop.f32.mrb[23].mxu0 }
 0x982   :  { %v1692_v1 = vmul.f32 %v3071_v33, %v1683_v18  ;;  %v1684_v37 = vmax.f32 %v4133_v59, 0.0 }
 0x983   :  { %v1703_v57 = vadd.f32 %v3072_v39, %v1694_v27  ;;  %v1695_v13 = vmul.f32 %v3071_v33, %v1686_v54 }
 0x984   :  { %v1701_v2 = vadd.f32 %v3072_v39, %v1692_v1  ;;  %v1693_v6 = vmul.f32 %v3071_v33, %v1684_v37 }
 0x985   :  { %v1704_v29 = vadd.f32 %v3072_v39, %v1695_v13  ;;  %v1713_v7 = vrot.slane %v1703_v57, 7  ;;  %v1729_v62 = vrot.slane %v1703_v57, 1 }
 0x986   :  { %v1711_v40 = vrot.slane %v1701_v2, 7  ;;  %v1727_v24 = vrot.slane %v1701_v2, 1  ;;  %v1702_v43 = vadd.f32 %v3072_v39, %v1693_v6  ;;  %v3079_v39 = vld [vmem:[%s4594_s2 + $0x58] ss:$0 sm:$0xff] }
 0x987   :  { %v1714_v20 = vrot.slane %v1704_v29, 7  ;;  %v1730_v44 = vrot.slane %v1704_v29, 1  ;;  %v1726_v17 = vpack.c.bf16 %v1704_v29, %v1703_v57 }
 0x988   :  { %v1712_v45 = vrot.slane %v1702_v43, 7  ;;  %v1728_v34 = vrot.slane %v1702_v43, 1  ;;  %v1725_v22 = vpack.c.bf16 %v1702_v43, %v1701_v2 }
 0x989   :  { %1745 = vrot.lane.b32.xlu1 %v1726_v17, %s3461_s0  ;;  %v1731_v28 = vsel %vm484_vm7, %v1729_v62, %v1730_v44  ;;  %v1734_v47 = vsel %vm484_vm7, %v1730_v44, %v1727_v24  ;;  %v1715_v49 = vsel %vm195_vm2, %v1713_v7, %v1714_v20  ;;  %v1718_v32 = vsel %vm195_vm2, %v1714_v20, %v1711_v40 }
 0x98a   :  { %1743 = vrot.lane.b32.xlu0 %v1725_v22, %s3461_s0  ;;  %v1738_v30 = vsel %vm1215_vm14, %v1734_v47, 0.0  ;;  %v1732_v35 = vsel %vm484_vm7, %v1728_v34, %v1729_v62  ;;  %v1733_v25 = vsel %vm484_vm7, %v1727_v24, %v1728_v34  ;;  %v1716_v26 = vsel %vm195_vm2, %v1712_v45, %v1713_v7 }
 0x98b   :  { %v1740_v42 = vpack.c.bf16 %v1738_v30, %v1731_v28  ;;  %v1736_v31 = vsel %vm1213_vm15, %v1732_v35, 0.0  ;;  %v1721_v50 = vsel %vm1025_vm13, %v1716_v26, 0.0  ;;  %v1719_v51 = vsel %vm1023_vm12, %v1718_v32, 0.0 }
 0x98c   :  { %v1739_v53 = vpack.c.bf16 %v1736_v31, %v1733_v25  ;;  %v1724_v52 = vpack.c.bf16 %v1715_v49, %v1721_v50  ;;  %v1717_v61 = vsel %vm195_vm2, %v1711_v40, %v1712_v45 }
 0x98d   :  { %1751 = vrot.lane.b32.xlu1 %v1740_v42, %s3463_s5  ;;  %v1723_v63 = vpack.c.bf16 %v1717_v61, %v1719_v51 }
 0x98e   :  { %1749 = vrot.lane.b32.xlu0 %v1739_v53, %s3463_s5 }
 0x9fb   :  { %v1746_v3 = vpop.permute.xlu1 %1745 }
 0x9fc   :  { %v1744_v4 = vpop.permute.xlu0 %1743  ;;  %v1758_v9 = vsel %vm308_vm5, %v1724_v52, %v1746_v3 }
 0x9fd   :  { %v1755_v60 = vsel %vm308_vm5, %v1723_v63, %v1744_v4 }
 0x9ff   :  { %v1752_v5 = vpop.permute.xlu1 %1751 }
 0xa00   :  { %v1750_v56 = vpop.permute.xlu0 %1749  ;;  %v1762_v15 = vsel %vm589_vm10, %v1758_v9, %v1752_v5 }
 0xa01   :  { %v1760_v12 = vsel %vm589_vm10, %v1755_v60, %v1750_v56 }
 0xa02   :  { %3313 = vmatprep.mubr.msk.bf16.mxu1 %vm616_vm11, %v1760_v12 }
 0xa03   :  { %3314 = vmatmul.mubr.msk.bf16.vlgmr.msra.gmra.mrb[16].mxu1 %vm616_vm11, %v1762_v15 }
 0xa04   :  { %3318 = vmatpush3.bf16.msra.mxu1 %v3449_v16 }
 0xa05   :  { %3319 = vmatprep.subr.bf16.mxu1 %v3450_v14 }
 0xa08   :  { %3320 = vmatpush3.bf16.msra.mxu1 %v3450_v14 }
 0xa09   :  { %3321 = vmatprep.subr.bf16.mxu1 %v3451_v19 }
 0xa0c   :  { %3322 = vmatpush3.bf16.msra.mxu1 %v3451_v19 }
 0xad6   :  { %v3315_v8 = vpop.f32.mrb[16].mxu1 }
 0xad7   :  { %v1836_v21 = vmax.f32 %v3315_v8, 0.0  ;;  %v1819_v33 = vpop.f32.mrb[17].mxu1 }
 0xad8   :  { %v1834_v27 = vmax.f32 %v1819_v33, 0.0  ;;  %v3316_v1 = vpop.f32.mrb[18].mxu1  ;;  %v3453_v33 = vld [vmem:[%s4593_s1 + $0x11c] sm:$0xff]  }
 0xad9   :  { %v1845_v57 = vmul.f32 %v3078_v46, %v1836_v21  ;;  %v1837_v13 = vmax.f32 %v3316_v1, 0.0  ;;  %v1822_v2 = vpop.f32.mrb[19].mxu1  ;;  %v3452_v21 = vld [vmem:[%s4593_s1 + $0x114] sm:$0xff]  }
 0xada   :  { %v1843_v6 = vmul.f32 %v3078_v46, %v1834_v27  ;;  %v1835_v29 = vmax.f32 %v1822_v2, 0.0  ;;  %3327 = vmatprep.subr.bf16.mxu0 %v3452_v21 }
 0xadb   :  { %v1854_v7 = vadd.f32 %v3079_v39, %v1845_v57  ;;  %v1846_v40 = vmul.f32 %v3078_v46, %v1837_v13  ;;  %3328 = vmatpush3.bf16.msra.mxu0 %v3452_v21 }
 0xadc   :  { %v1852_v24 = vadd.f32 %v3079_v39, %v1843_v6  ;;  %v1844_v43 = vmul.f32 %v3078_v46, %v1835_v29  ;;  %3329 = vmatprep.subr.bf16.mxu0 %v3453_v33 }
 0xadd   :  { %v1855_v62 = vadd.f32 %v3079_v39, %v1846_v40  ;;  %v1864_v20 = vrot.slane %v1854_v7, 7  ;;  %v1880_v34 = vrot.slane %v1854_v7, 1 }
 0xade   :  { %v1862_v44 = vrot.slane %v1852_v24, 7  ;;  %v1878_v17 = vrot.slane %v1852_v24, 1  ;;  %v1853_v45 = vadd.f32 %v3079_v39, %v1844_v43  ;;  %v3454_v39 = vld [vmem:[%s4593_s1 + $0x124] sm:$0xff]  }
 0xadf   :  { %v1865_v22 = vrot.slane %v1855_v62, 7  ;;  %v1881_v28 = vrot.slane %v1855_v62, 1  ;;  %v1877_v47 = vpack.c.bf16 %v1855_v62, %v1854_v7  ;;  %3330 = vmatpush3.bf16.msra.mxu0 %v3453_v33 }
 0xae0   :  { %v1863_v49 = vrot.slane %v1853_v45, 7  ;;  %v1879_v32 = vrot.slane %v1853_v45, 1  ;;  %v1876_v30 = vpack.c.bf16 %v1853_v45, %v1852_v24  ;;  %3331 = vmatprep.subr.bf16.mxu0 %v3454_v39 }
 0xae1   :  { %1896 = vrot.lane.b32.xlu1 %v1877_v47, %s3461_s0  ;;  %v1882_v35 = vsel %vm484_vm7, %v1880_v34, %v1881_v28  ;;  %v1885_v25 = vsel %vm484_vm7, %v1881_v28, %v1878_v17  ;;  %v1866_v26 = vsel %vm195_vm2, %v1864_v20, %v1865_v22  ;;  %v1869_v42 = vsel %vm195_vm2, %v1865_v22, %v1862_v44 }
 0xae2   :  { %1894 = vrot.lane.b32.xlu0 %v1876_v30, %s3461_s0  ;;  %v1889_v31 = vsel %vm1215_vm14, %v1885_v25, 0.0  ;;  %v1883_v50 = vsel %vm484_vm7, %v1879_v32, %v1880_v34  ;;  %v1884_v51 = vsel %vm484_vm7, %v1878_v17, %v1879_v32  ;;  %v1867_v53 = vsel %vm195_vm2, %v1863_v49, %v1864_v20 }
 0xae3   :  { %v1891_v52 = vpack.c.bf16 %v1889_v31, %v1882_v35  ;;  %v1887_v61 = vsel %vm1213_vm15, %v1883_v50, 0.0  ;;  %v1872_v63 = vsel %vm1025_vm13, %v1867_v53, 0.0  ;;  %v1870_v3 = vsel %vm1023_vm12, %v1869_v42, 0.0  ;;  %3332 = vmatpush3.bf16.msra.mxu0 %v3454_v39 }
 0xae4   :  { %v1890_v4 = vpack.c.bf16 %v1887_v61, %v1884_v51  ;;  %v1875_v5 = vpack.c.bf16 %v1866_v26, %v1872_v63  ;;  %v1868_v60 = vsel %vm195_vm2, %v1862_v44, %v1863_v49 }
 0xae5   :  { %1902 = vrot.lane.b32.xlu1 %v1891_v52, %s3463_s5  ;;  %v1874_v56 = vpack.c.bf16 %v1868_v60, %v1870_v3 }
 0xae6   :  { %1900 = vrot.lane.b32.xlu0 %v1890_v4, %s3463_s5 }
 0xb53   :  { %v1897_v9 = vpop.permute.xlu1 %1896 }
 0xb54   :  { %v1895_v12 = vpop.permute.xlu0 %1894  ;;  %v1909_v19 = vsel %vm308_vm5, %v1875_v5, %v1897_v9  ;;  %v3456_v9 = vld [vmem:[%s4593_s1 + $0x134] ss:$0 sps:$4 sm:$0xff]  }
 0xb55   :  { %v1906_v16 = vsel %vm308_vm5, %v1874_v56, %v1895_v12  ;;  %v3455_v56 = vld [vmem:[%s4593_s1 + $0x12c] sm:$0xff]   ;;  %v2213_v21 = vsel %vm335_vm1, %v3456_v9, 0 }
 0xb56   :  { %3337 = vmatprep.subr.bf16.mxu1 %v3455_v56 }
 0xb57   :  { %v1903_v15 = vpop.permute.xlu1 %1902 }
 0xb58   :  { %v1901_v14 = vpop.permute.xlu0 %1900  ;;  %v1913_v46 = vsel %vm589_vm10, %v1909_v19, %v1903_v15  ;;  %v3090_v15 = vld [vmem:[%s4594_s2 + $0x60] ss:$0 sm:$0xff]  ;;  %v3091_v19 = vld [vmem:[%s4594_s2 + $0x68] ss:$0 sm:$0xff] }
 0xb59   :  { %v1911_v8 = vsel %vm589_vm10, %v1906_v16, %v1901_v14 }
 0xb5a   :  { %3323 = vmatprep.mubr.msk.bf16.mxu1 %vm616_vm11, %v1911_v8 }
 0xb5b   :  { %3324 = vmatmul.mubr.msk.bf16.vlgmr.msra.gmra.mrb[20].mxu1 %vm616_vm11, %v1913_v46 }
 0xb5c   :  { %3338 = vmatpush3.bf16.msra.mxu1 %v3455_v56  ;;  %v3096_v56 = vld [vmem:[%s4594_s2 + $0x70] ss:$0 sm:$0xff] }
 0xb5d   :  { %3401 = vmatprep.subr.msk.bf16.mxu1 %vm335_vm1, %v3456_v9 }
 0xb60   :  { %3340 = vmatpush3.bf16.msra.mxu1 %v2213_v21 }
 0xc2e   :  { %v3325_v27 = vpop.f32.mrb[20].mxu1 }
 0xc2f   :  { %v1987_v1 = vmax.f32 %v3325_v27, 0.0  ;;  %v1970_v57 = vpop.f32.mrb[21].mxu1 }
 0xc30   :  { %v1985_v13 = vmax.f32 %v1970_v57, 0.0  ;;  %v3326_v2 = vpop.f32.mrb[22].mxu1 }
 0xc31   :  { %v1991_v6 = vadd.f32 %v1987_v1, %v1685_v36  ;;  %v1988_v29 = vmax.f32 %v3326_v2, 0.0  ;;  %v1973_v7 = vpop.f32.mrb[23].mxu1 }
 0xc32   :  { %v1989_v40 = vadd.f32 %v1985_v13, %v1683_v18  ;;  %v1986_v24 = vmax.f32 %v1973_v7, 0.0 }
 0xc33   :  { %v1992_v43 = vadd.f32 %v1988_v29, %v1686_v54  ;;  %v2001_v62 = vrot.slane %v1991_v6, 7  ;;  %v2017_v45 = vrot.slane %v1991_v6, 1 }
 0xc34   :  { %v1999_v20 = vrot.slane %v1989_v40, 7  ;;  %v2015_v44 = vrot.slane %v1989_v40, 1  ;;  %v1990_v17 = vadd.f32 %v1986_v24, %v1684_v37 }
 0xc35   :  { %v2002_v34 = vrot.slane %v1992_v43, 7  ;;  %v2018_v22 = vrot.slane %v1992_v43, 1  ;;  %v2014_v48 = vpack.c.bf16 %v1992_v43, %v1991_v6 }
 0xc36   :  { %v2000_v36 = vrot.slane %v1990_v17, 7  ;;  %v2016_v28 = vrot.slane %v1990_v17, 1  ;;  %v2013_v47 = vpack.c.bf16 %v1990_v17, %v1989_v40 }
 0xc37   :  { %2033 = vrot.lane.b32.xlu1 %v2014_v48, %s3461_s0  ;;  %v2019_v23 = vsel %vm484_vm7, %v2017_v45, %v2018_v22  ;;  %v2022_v18 = vsel %vm484_vm7, %v2018_v22, %v2015_v44  ;;  %v2003_v55 = vsel %vm195_vm2, %v2001_v62, %v2002_v34  ;;  %v2006_v54 = vsel %vm195_vm2, %v2002_v34, %v1999_v20 }
 0xc38   :  { %2031 = vrot.lane.b32.xlu0 %v2013_v47, %s3461_s0  ;;  %v2026_v59 = vsel %vm1215_vm14, %v2022_v18, 0.0  ;;  %v2020_v37 = vsel %vm484_vm7, %v2016_v28, %v2017_v45  ;;  %v2021_v49 = vsel %vm484_vm7, %v2015_v44, %v2016_v28  ;;  %v2004_v32 = vsel %vm195_vm2, %v2000_v36, %v2001_v62 }
 0xc39   :  { %v2028_v30 = vpack.c.bf16 %v2026_v59, %v2019_v23  ;;  %v2024_v35 = vsel %vm1213_vm15, %v2020_v37, 0.0  ;;  %v2009_v25 = vsel %vm1025_vm13, %v2004_v32, 0.0  ;;  %v2007_v26 = vsel %vm1023_vm12, %v2006_v54, 0.0 }
 0xc3a   :  { %v2027_v42 = vpack.c.bf16 %v2024_v35, %v2021_v49  ;;  %v2012_v31 = vpack.c.bf16 %v2003_v55, %v2009_v25  ;;  %v2005_v50 = vsel %vm195_vm2, %v1999_v20, %v2000_v36 }
 0xc3b   :  { %2039 = vrot.lane.b32.xlu1 %v2028_v30, %s3463_s5  ;;  %v2011_v51 = vpack.c.bf16 %v2005_v50, %v2007_v26 }
 0xc3c   :  { %2037 = vrot.lane.b32.xlu0 %v2027_v42, %s3463_s5 }
 0xca9   :  { %v2034_v53 = vpop.permute.xlu1 %2033 }
 0xcaa   :  { %v2032_v52 = vpop.permute.xlu0 %2031  ;;  %v2046_v4 = vsel %vm308_vm5, %v2012_v31, %v2034_v53 }
 0xcab   :  { %v2043_v63 = vsel %vm308_vm5, %v2011_v51, %v2032_v52 }
 0xcad   :  { %v2040_v61 = vpop.permute.xlu1 %2039 }
 0xcae   :  { %v2038_v3 = vpop.permute.xlu0 %2037  ;;  %v2050_v60 = vsel %vm589_vm10, %v2046_v4, %v2040_v61  ;;  %v3457_v4 = vld [vmem:[%s4593_s1 + $0x138] sm:$0xff]  }
 0xcaf   :  { %v2048_v5 = vsel %vm589_vm10, %v2043_v63, %v2038_v3  ;;  %3345 = vmatprep.subr.bf16.mxu0 %v3457_v4 }
 0xcb0   :  { %3333 = vmatprep.mubr.msk.bf16.mxu0 %vm616_vm11, %v2048_v5  ;;  %v3458_v5 = vld [vmem:[%s4593_s1 + $0x140] ss:$0 sps:$4 sm:$0xff]  }
 0xcb1   :  { %3334 = vmatmul.mubr.msk.bf16.vlgmr.msra.gmra.mrb[24].mxu0 %vm616_vm11, %v2050_v60 }
 0xcb2   :  { %3346 = vmatpush3.bf16.msra.mxu0 %v3457_v4 }
 0xcb3   :  { %3402 = vmatprep.subr.msk.bf16.mxu0 %vm335_vm1, %v3458_v5 }
 0xd84   :  { %v4282_v12 = vpop.f32.mrb[24].mxu0 }
 0xd85   :  { %v2124_v16 = vmax.f32 %v4282_v12, 0.0  ;;  %v4288_v14 = vpop.f32.mrb[25].mxu0 }
 0xd86   :  { %v2122_v8 = vmax.f32 %v4288_v14, 0.0  ;;  %v4295_v46 = vpop.f32.mrb[26].mxu0 }
 0xd87   :  { %v2133_v33 = vmul.f32 %v3090_v15, %v2124_v16  ;;  %v2125_v39 = vmax.f32 %v4295_v46, 0.0  ;;  %v4301_v27 = vpop.f32.mrb[27].mxu0 }
 0xd88   :  { %v2131_v1 = vmul.f32 %v3090_v15, %v2122_v8  ;;  %v2123_v57 = vmax.f32 %v4301_v27, 0.0 }
 0xd89   :  { %v2142_v13 = vadd.f32 %v3091_v19, %v2133_v33  ;;  %v2134_v2 = vmul.f32 %v3090_v15, %v2125_v39 }
 0xd8a   :  { %v2140_v6 = vadd.f32 %v3091_v19, %v2131_v1  ;;  %v2132_v29 = vmul.f32 %v3090_v15, %v2123_v57  ;;  %v2355_v1 = vsel %vm335_vm1, %v3458_v5, 0 }
 0xd8b   :  { %v2143_v7 = vadd.f32 %v3091_v19, %v2134_v2  ;;  %v2149_v40 = vrot.slane %v2142_v13, 7  ;;  %v2165_v20 = vrot.slane %v2142_v13, 1  ;;  %3348 = vmatpush3.bf16.msra.mxu0 %v2355_v1 }
 0xd8c   :  { %v2147_v24 = vrot.slane %v2140_v6, 7  ;;  %v2163_v43 = vrot.slane %v2140_v6, 1  ;;  %v2141_v62 = vadd.f32 %v3091_v19, %v2132_v29  ;;  %v3097_v19 = vld [vmem:[%s4594_s2 + $0x78] ss:$0 sm:$0xff] }
 0xd8d   :  { %v2150_v44 = vrot.slane %v2143_v7, 7  ;;  %v2166_v17 = vrot.slane %v2143_v7, 1  ;;  %v2162_v45 = vpack.c.bf16 %v2143_v7, %v2142_v13 }
 0xd8e   :  { %v2148_v34 = vrot.slane %v2141_v62, 7  ;;  %v2164_v22 = vrot.slane %v2141_v62, 1  ;;  %v2161_v48 = vpack.c.bf16 %v2141_v62, %v2140_v6 }
 0xd8f   :  { %2181 = vrot.lane.b32.xlu1 %v2162_v45, %s3462_s21  ;;  %v2167_v36 = vsel %vm484_vm7, %v2165_v20, %v2166_v17  ;;  %v2170_v28 = vsel %vm484_vm7, %v2166_v17, %v2163_v43  ;;  %v2151_v47 = vsel %vm195_vm2, %v2149_v40, %v2150_v44  ;;  %v2154_v23 = vsel %vm195_vm2, %v2150_v44, %v2147_v24 }
 0xd90   :  { %2179 = vrot.lane.b32.xlu0 %v2161_v48, %s3462_s21  ;;  %v2174_v18 = vsel %vm1215_vm14, %v2170_v28, 0.0  ;;  %v2168_v55 = vsel %vm484_vm7, %v2164_v22, %v2165_v20  ;;  %v2169_v54 = vsel %vm484_vm7, %v2163_v43, %v2164_v22  ;;  %v2152_v59 = vsel %vm195_vm2, %v2148_v34, %v2149_v40 }
 0xd91   :  { %v2176_v37 = vpack.c.bf16 %v2174_v18, %v2167_v36  ;;  %v2172_v49 = vsel %vm1213_vm15, %v2168_v55, 0.0  ;;  %v2157_v32 = vsel %vm1025_vm13, %v2152_v59, 0.0  ;;  %v2155_v30 = vsel %vm1023_vm12, %v2154_v23, 0.0 }
 0xd92   :  { %v2175_v35 = vpack.c.bf16 %v2172_v49, %v2169_v54  ;;  %v2160_v25 = vpack.c.bf16 %v2151_v47, %v2157_v32  ;;  %v2153_v26 = vsel %vm195_vm2, %v2147_v24, %v2148_v34 }
 0xd93   :  { %2187 = vrot.lane.b32.xlu1 %v2176_v37, %s3461_s0  ;;  %v2159_v42 = vpack.c.bf16 %v2153_v26, %v2155_v30 }
 0xd94   :  { %2185 = vrot.lane.b32.xlu0 %v2175_v35, %s3461_s0 }
 0xe01   :  { %v2182_v31 = vpop.permute.xlu1 %2181 }
 0xe02   :  { %v2180_v50 = vpop.permute.xlu0 %2179  ;;  %v2194_v61 = vsel %vm34_vm0, %v2160_v25, %v2182_v31 }
 0xe03   :  { %v2191_v53 = vsel %vm34_vm0, %v2159_v42, %v2180_v50 }
 0xe05   :  { %v2188_v51 = vpop.permute.xlu1 %2187 }
 0xe06   :  { %v2186_v52 = vpop.permute.xlu0 %2185  ;;  %v2198_v3 = vsel %vm308_vm5, %v2194_v61, %v2188_v51 }
 0xe07   :  { %v2196_v63 = vsel %vm308_vm5, %v2191_v53, %v2186_v52 }
 0xe08   :  { %3341 = vmatprep.mubr.msk.bf16.mxu1 %vm326_vm6, %v2196_v63 }
 0xe09   :  { %3342 = vmatmul.mubr.msk.bf16.vlgmr.msra.gmra.mrb[24].mxu1 %vm326_vm6, %v2198_v3 }
 0xedc   :  { %v3343_v60 = vpop.f32.mrb[24].mxu1 }
 0xedd   :  { %v2266_v9 = vmax.f32 %v3343_v60, 0.0  ;;  %v2249_v15 = vpop.f32.mrb[25].mxu1 }
 0xede   :  { %v2264_v21 = vmax.f32 %v2249_v15, 0.0  ;;  %v3344_v33 = vpop.f32.mrb[26].mxu1  ;;  %v3459_v15 = vld [vmem:[%s4593_s1 + $0x144] sm:$0xff]  }
 0xedf   :  { %v2275_v13 = vmul.f32 %v3096_v56, %v2266_v9  ;;  %v2267_v2 = vmax.f32 %v3344_v33, 0.0  ;;  %v2252_v6 = vpop.f32.mrb[27].mxu1  ;;  %3353 = vmatprep.subr.bf16.mxu1 %v3459_v15 }
 0xee0   :  { %v2273_v29 = vmul.f32 %v3096_v56, %v2264_v21  ;;  %v2265_v7 = vmax.f32 %v2252_v6, 0.0  ;;  %3354 = vmatpush3.bf16.msra.mxu1 %v3459_v15  ;;  %v3107_v15 = vld [vmem:[%s4594_s2 + $0x88] ss:$0 sm:$0xff] }
 0xee1   :  { %v2284_v40 = vadd.f32 %v3097_v19, %v2275_v13  ;;  %v2276_v24 = vmul.f32 %v3096_v56, %v2267_v2 }
 0xee2   :  { %v2282_v43 = vadd.f32 %v3097_v19, %v2273_v29  ;;  %v2274_v62 = vmul.f32 %v3096_v56, %v2265_v7 }
 0xee3   :  { %v2285_v20 = vadd.f32 %v3097_v19, %v2276_v24  ;;  %v2291_v44 = vrot.slane %v2284_v40, 7  ;;  %v2307_v22 = vrot.slane %v2284_v40, 1 }
 0xee4   :  { %v2289_v17 = vrot.slane %v2282_v43, 7  ;;  %v2305_v45 = vrot.slane %v2282_v43, 1  ;;  %v2283_v34 = vadd.f32 %v3097_v19, %v2274_v62  ;;  %v3460_v19 = vld [vmem:[%s4593_s1 + $0x14c] ss:$0 sps:$4 sm:$0xff]  }
 0xee5   :  { %v2292_v48 = vrot.slane %v2285_v20, 7  ;;  %v2308_v36 = vrot.slane %v2285_v20, 1  ;;  %v2304_v28 = vpack.c.bf16 %v2285_v20, %v2284_v40  ;;  %3403 = vmatprep.subr.msk.bf16.mxu1 %vm335_vm1, %v3460_v19  ;;  %v2483_v33 = vsel %vm335_vm1, %v3460_v19, 0 }
 0xee6   :  { %v2290_v47 = vrot.slane %v2283_v34, 7  ;;  %v2306_v23 = vrot.slane %v2283_v34, 1  ;;  %v2303_v18 = vpack.c.bf16 %v2283_v34, %v2282_v43  ;;  %3356 = vmatpush3.bf16.msra.mxu1 %v2483_v33  ;;  %vm2616_vm1 = vcmask 1040384  }
 0xee7   :  { %2323 = vrot.lane.b32.xlu1 %v2304_v28, %s3462_s21  ;;  %v2309_v55 = vsel %vm484_vm7, %v2307_v22, %v2308_v36  ;;  %v2312_v54 = vsel %vm484_vm7, %v2308_v36, %v2305_v45  ;;  %v2293_v59 = vsel %vm195_vm2, %v2291_v44, %v2292_v48  ;;  %v2296_v37 = vsel %vm195_vm2, %v2292_v48, %v2289_v17 }
 0xee8   :  { %2321 = vrot.lane.b32.xlu0 %v2303_v18, %s3462_s21  ;;  %v2316_v49 = vsel %vm1215_vm14, %v2312_v54, 0.0  ;;  %v2310_v32 = vsel %vm484_vm7, %v2306_v23, %v2307_v22  ;;  %v2311_v30 = vsel %vm484_vm7, %v2305_v45, %v2306_v23  ;;  %v2294_v35 = vsel %vm195_vm2, %v2290_v47, %v2291_v44 }
 0xee9   :  { %v2318_v25 = vpack.c.bf16 %v2316_v49, %v2309_v55  ;;  %v2314_v26 = vsel %vm1213_vm15, %v2310_v32, 0.0  ;;  %v2299_v42 = vsel %vm1025_vm13, %v2294_v35, 0.0  ;;  %v2297_v31 = vsel %vm1023_vm12, %v2296_v37, 0.0 }
 0xeea   :  { %v2317_v50 = vpack.c.bf16 %v2314_v26, %v2311_v30  ;;  %v2302_v51 = vpack.c.bf16 %v2293_v59, %v2299_v42  ;;  %v2295_v53 = vsel %vm195_vm2, %v2289_v17, %v2290_v47 }
 0xeeb   :  { %2329 = vrot.lane.b32.xlu1 %v2318_v25, %s3461_s0  ;;  %v2301_v52 = vpack.c.bf16 %v2295_v53, %v2297_v31 }
 0xeec   :  { %2327 = vrot.lane.b32.xlu0 %v2317_v50, %s3461_s0 }
 0xf59   :  { %v2324_v61 = vpop.permute.xlu1 %2323 }
 0xf5a   :  { %v2322_v63 = vpop.permute.xlu0 %2321  ;;  %v2336_v60 = vsel %vm34_vm0, %v2302_v51, %v2324_v61  ;;  %v3465_v61 = vmov 65535  }
 0xf5b   :  { %v2333_v4 = vsel %vm34_vm0, %v2301_v52, %v2322_v63  ;;  %v2556_v52 = vld [vmem:[%s4593_s1 + $0x150] sm:$0x3]  ;;  %v2618_v63 = vsel %vm2616_vm1, 4294967295, %v3465_v61 }
 0xf5d   :  { %v2330_v3 = vpop.permute.xlu1 %2329 }
 0xf5e   :  { %v2328_v5 = vpop.permute.xlu0 %2327  ;;  %v2340_v9 = vsel %vm308_vm5, %v2336_v60, %v2330_v3  ;;  %v4445_v3 = vsel %vm2617_vm8, %v2618_v63, 0  ;;  %v3106_v60 = vld [vmem:[%s4594_s2 + $0x80] ss:$0 sm:$0xff]  ;;  %v3110_v63 = vld [vmem:[%s4594_s2 + $0x90] ss:$0 sm:$0xff] }
 0xf5f   :  { %v2338_v56 = vsel %vm308_vm5, %v2333_v4, %v2328_v5  ;;  %v2621_v4 = vand.u32 %v4445_v3, %v2556_v52 }
 0xf60   :  { %3349 = vmatprep.mubr.msk.bf16.mxu0 %vm326_vm6, %v2338_v56 }
 0xf61   :  { %3350 = vmatmul.mubr.msk.bf16.vlgmr.msra.gmra.mrb[28].mxu0 %vm326_vm6, %v2340_v9  ;;  %3361 = vmatprep.subr.bf16.mxu0 %v2621_v4 }
 0xf62   :  { %3362 = vmatpush3.bf16.msra.mxu0 %v2621_v4 }
0x1034   :  { %v3351_v21 = vpop.f32.mrb[28].mxu0 }
0x1035   :  { %v2408_v1 = vmax.f32 %v3351_v21, 0.0  ;;  %v2391_v13 = vpop.f32.mrb[29].mxu0 }
0x1036   :  { %v2406_v2 = vmax.f32 %v2391_v13, 0.0  ;;  %v3352_v6 = vpop.f32.mrb[30].mxu0 }
0x1037   :  { %v2412_v29 = vadd.f32 %v2408_v1, %v2124_v16  ;;  %v2409_v7 = vmax.f32 %v3352_v6, 0.0  ;;  %v2394_v40 = vpop.f32.mrb[31].mxu0 }
0x1038   :  { %v2410_v24 = vadd.f32 %v2406_v2, %v2122_v8  ;;  %v2407_v43 = vmax.f32 %v2394_v40, 0.0 }
0x1039   :  { %v2413_v62 = vadd.f32 %v2409_v7, %v2125_v39  ;;  %v2419_v20 = vrot.slane %v2412_v29, 7  ;;  %v2435_v34 = vrot.slane %v2412_v29, 1 }
0x103a   :  { %v2417_v44 = vrot.slane %v2410_v24, 7  ;;  %v2433_v17 = vrot.slane %v2410_v24, 1  ;;  %v2411_v45 = vadd.f32 %v2407_v43, %v2123_v57 }
0x103b   :  { %v2420_v22 = vrot.slane %v2413_v62, 7  ;;  %v2436_v48 = vrot.slane %v2413_v62, 1  ;;  %v2432_v12 = vpack.c.bf16 %v2413_v62, %v2412_v29 }
0x103c   :  { %v2418_v16 = vrot.slane %v2411_v45, 7  ;;  %v2434_v36 = vrot.slane %v2411_v45, 1  ;;  %v2431_v28 = vpack.c.bf16 %v2411_v45, %v2410_v24 }
0x103d   :  { %2451 = vrot.lane.b32.xlu1 %v2432_v12, %s3462_s21  ;;  %v2437_v14 = vsel %vm484_vm7, %v2435_v34, %v2436_v48  ;;  %v2440_v8 = vsel %vm484_vm7, %v2436_v48, %v2433_v17  ;;  %v2421_v46 = vsel %vm195_vm2, %v2419_v20, %v2420_v22  ;;  %v2424_v39 = vsel %vm195_vm2, %v2420_v22, %v2417_v44 }
0x103e   :  { %2449 = vrot.lane.b32.xlu0 %v2431_v28, %s3462_s21  ;;  %v2444_v27 = vsel %vm1215_vm14, %v2440_v8, 0.0  ;;  %v2438_v57 = vsel %vm484_vm7, %v2434_v36, %v2435_v34  ;;  %v2439_v47 = vsel %vm484_vm7, %v2433_v17, %v2434_v36  ;;  %v2422_v23 = vsel %vm195_vm2, %v2418_v16, %v2419_v20 }
0x103f   :  { %v2446_v18 = vpack.c.bf16 %v2444_v27, %v2437_v14  ;;  %v2442_v55 = vsel %vm1213_vm15, %v2438_v57, 0.0  ;;  %v2427_v54 = vsel %vm1025_vm13, %v2422_v23, 0.0  ;;  %v2425_v59 = vsel %vm1023_vm12, %v2424_v39, 0.0 }
0x1040   :  { %v2445_v37 = vpack.c.bf16 %v2442_v55, %v2439_v47  ;;  %v2430_v49 = vpack.c.bf16 %v2421_v46, %v2427_v54  ;;  %v2423_v32 = vsel %vm195_vm2, %v2417_v44, %v2418_v16 }
0x1041   :  { %2457 = vrot.lane.b32.xlu1 %v2446_v18, %s3461_s0  ;;  %v2429_v30 = vpack.c.bf16 %v2423_v32, %v2425_v59 }
0x1042   :  { %2455 = vrot.lane.b32.xlu0 %v2445_v37, %s3461_s0 }
0x10af   :  { %v2452_v35 = vpop.permute.xlu1 %2451 }
0x10b0   :  { %v2450_v25 = vpop.permute.xlu0 %2449  ;;  %v2464_v50 = vsel %vm34_vm0, %v2430_v49, %v2452_v35 }
0x10b1   :  { %v2461_v42 = vsel %vm34_vm0, %v2429_v30, %v2450_v25  ;;  %vm2599_vm0 = vcmask 7168  }
0x10b3   :  { %v2458_v26 = vpop.permute.xlu1 %2457 }
0x10b4   :  { %v2456_v31 = vpop.permute.xlu0 %2455  ;;  %v2468_v53 = vsel %vm308_vm5, %v2464_v50, %v2458_v26 }
0x10b5   :  { %v2466_v51 = vsel %vm308_vm5, %v2461_v42, %v2456_v31 }
0x10b6   :  { %3357 = vmatprep.mubr.msk.bf16.mxu1 %vm326_vm6, %v2466_v51 }
0x10b7   :  { %3358 = vmatmul.mubr.msk.bf16.vlgmr.msra.gmra.mrb[28].mxu1 %vm326_vm6, %v2468_v53  ;;  %vm2606_vm6 = vcmask 15360   ;;  %v2694_v53 = vld [vmem:[%s4593_s1 + $0x154] sm:$0x3] }
0x10b8   :  { %v2752_v52 = vand.u32 %v2694_v53, %v4445_v3  ;;  %v3468_v53 = vmov 0  }
0x10b9   :  { %3415 = vset.pattern.permute.xlu0 %v3468_v53  ;;  %3416 = vset.pattern.permute.xlu1 %v3468_v53 }
0x10ba   :  { %3367 = vmatprep.subr.bf16.mxu1 %v2752_v52 }
0x10bb   :  { %3368 = vmatpush3.bf16.msra.mxu1 %v2752_v52 }
0x118a   :  { %v4448_v5 = vpop.f32.mrb[28].mxu1 }
0x118b   :  { %v2536_v56 = vmax.f32 %v4448_v5, 0.0  ;;  %v4454_v9 = vpop.f32.mrb[29].mxu1  ;;  %v2815_v5 = vadd.s32 1, %v3526_v10 }
0x118c   :  { %v2534_v19 = vmax.f32 %v4454_v9, 0.0  ;;  %v4460_v21 = vpop.f32.mrb[30].mxu1  ;;  %v3471_v9 = vmov 0.0  }
0x118d   :  { %v2545_v33 = vmul.f32 %v3106_v60, %v2536_v56  ;;  %v2537_v1 = vmax.f32 %v4460_v21, 0.0  ;;  %v4465_v13 = vpop.f32.mrb[31].mxu1  ;;  %v2929_v21 = vld [vmem:[%s4594_s2 + $0xd0] sm:$0xff] }
0x118e   :  { %v2543_v2 = vmul.f32 %v3106_v60, %v2534_v19  ;;  %v2535_v6 = vmax.f32 %v4465_v13, 0.0 }
0x118f   :  { %v2554_v29 = vadd.f32 %v3107_v15, %v2545_v33  ;;  %v2546_v7 = vmul.f32 %v3106_v60, %v2537_v1 }
0x1190   :  { %v2552_v40 = vadd.f32 %v3107_v15, %v2543_v2  ;;  %v2544_v24 = vmul.f32 %v3106_v60, %v2535_v6 }
0x1191   :  { %v2555_v43 = vadd.f32 %v3107_v15, %v2546_v7  ;;  %v2559_v62 = vrot.slane %v2554_v29, 7  ;;  %v2575_v45 = vrot.slane %v2554_v29, 1 }
0x1192   :  { %v2557_v20 = vrot.slane %v2552_v40, 7  ;;  %v2573_v44 = vrot.slane %v2552_v40, 1  ;;  %v2553_v17 = vadd.f32 %v3107_v15, %v2544_v24  ;;  %v3111_v15 = vld [vmem:[%s4594_s2 + $0x98] ss:$0 sm:$0xff] }
0x1193   :  { %v2560_v34 = vrot.slane %v2555_v43, 7  ;;  %v2576_v22 = vrot.slane %v2555_v43, 1  ;;  %v2572_v48 = vpack.c.bf16 %v2555_v43, %v2554_v29 }
0x1194   :  { %v2558_v12 = vrot.slane %v2553_v17, 7  ;;  %v2574_v16 = vrot.slane %v2553_v17, 1  ;;  %v2571_v36 = vpack.c.bf16 %v2553_v17, %v2552_v40 }
0x1195   :  { %2591 = vrot.lane.b32.xlu1 %v2572_v48, %s3466_s17  ;;  %v2577_v28 = vsel %vm484_vm7, %v2575_v45, %v2576_v22  ;;  %v2580_v14 = vsel %vm484_vm7, %v2576_v22, %v2573_v44  ;;  %v2561_v8 = vsel %vm195_vm2, %v2559_v62, %v2560_v34  ;;  %v2564_v46 = vsel %vm195_vm2, %v2560_v34, %v2557_v20 }
0x1196   :  { %2589 = vrot.lane.b32.xlu0 %v2571_v36, %s3466_s17  ;;  %v2584_v39 = vsel %vm1215_vm14, %v2580_v14, 0.0  ;;  %v2578_v27 = vsel %vm484_vm7, %v2574_v16, %v2575_v45  ;;  %v2579_v57 = vsel %vm484_vm7, %v2573_v44, %v2574_v16  ;;  %v2562_v47 = vsel %vm195_vm2, %v2558_v12, %v2559_v62 }
0x1197   :  { %v2586_v23 = vpack.c.bf16 %v2584_v39, %v2577_v28  ;;  %v2582_v18 = vsel %vm1213_vm15, %v2578_v27, 0.0  ;;  %v2567_v55 = vsel %vm1025_vm13, %v2562_v47, 0.0  ;;  %v2565_v54 = vsel %vm1023_vm12, %v2564_v46, 0.0 }
0x1198   :  { %v2585_v59 = vpack.c.bf16 %v2582_v18, %v2579_v57  ;;  %v2570_v37 = vpack.c.bf16 %v2561_v8, %v2567_v55  ;;  %v2563_v49 = vsel %vm195_vm2, %v2557_v20, %v2558_v12 }
0x1199   :  { %2597 = vrot.lane.b32.xlu1 %v2586_v23, %s3467_s18  ;;  %v2569_v32 = vpack.c.bf16 %v2563_v49, %v2565_v54 }
0x119a   :  { %2595 = vrot.lane.b32.xlu0 %v2585_v59, %s3467_s18 }
0x1207   :  { %v2592_v30 = vpop.permute.xlu1 %2591 }
0x1208   :  { %v2590_v35 = vpop.permute.xlu0 %2589  ;;  %v2605_v31 = vsel %vm2599_vm0, %v2570_v37, %v2592_v30 }
0x1209   :  { %v2602_v26 = vsel %vm2599_vm0, %v2569_v32, %v2590_v35 }
0x120b   :  { %v2598_v25 = vpop.permute.xlu1 %2597 }
0x120c   :  { %v2596_v42 = vpop.permute.xlu0 %2595  ;;  %v2610_v51 = vsel %vm2606_vm6, %v2605_v31, %v2598_v25 }
0x120d   :  { %v2608_v50 = vsel %vm2606_vm6, %v2602_v26, %v2596_v42 }
0x120e   :  { %3363 = vmatprep.mubr.msk.bf16.mxu0 %vm2611_vm9, %v2608_v50 }
0x120f   :  { %3364 = vmatmul.mubr.msk.bf16.vlgmr.msra.gmra.mrb[32].mxu0 %vm2611_vm9, %v2610_v51 }
0x12e2   :  { %v3365_v61 = vpop.f32.mrb[32].mxu0 }
0x12e3   :  { %v2674_v4 = vmax.f32 %v3365_v61, 0.0  ;;  %v2657_v60 = vpop.f32.mrb[33].mxu0 }
0x12e4   :  { %v2672_v33 = vmax.f32 %v2657_v60, 0.0  ;;  %v3366_v2 = vpop.f32.mrb[34].mxu0 }
0x12e5   :  { %v2683_v29 = vmul.f32 %v3110_v63, %v2674_v4  ;;  %v2675_v7 = vmax.f32 %v3366_v2, 0.0  ;;  %v2660_v40 = vpop.f32.mrb[35].mxu0 }
0x12e6   :  { %v2681_v24 = vmul.f32 %v3110_v63, %v2672_v33  ;;  %v2673_v3 = vmax.f32 %v2660_v40, 0.0 }
0x12e7   :  { %v2692_v43 = vadd.f32 %v3111_v15, %v2683_v29  ;;  %v2684_v62 = vmul.f32 %v3110_v63, %v2675_v7 }
0x12e8   :  { %v2690_v20 = vadd.f32 %v3111_v15, %v2681_v24  ;;  %v2682_v44 = vmul.f32 %v3110_v63, %v2673_v3  ;;  %v3469_v3 = vmov 0.0|0.0  }
0x12e9   :  { %v2693_v17 = vadd.f32 %v3111_v15, %v2684_v62  ;;  %v2697_v45 = vrot.slane %v2692_v43, 7  ;;  %v2713_v12 = vrot.slane %v2692_v43, 1  ;;  %3391 = vmatprep.subr.bf16.mxu0 %v3469_v3  ;;  %3397 = vmatprep.subr.bf16.mxu1 %v3469_v3  ;;  %v2813_v62 = vmul.u32 16, %v3526_v10 }
0x12ea   :  { %v2695_v34 = vrot.slane %v2690_v20, 7  ;;  %v2711_v22 = vrot.slane %v2690_v20, 1  ;;  %v2691_v48 = vadd.f32 %v3111_v15, %v2682_v44 }
0x12eb   :  { %v2698_v16 = vrot.slane %v2693_v17, 7  ;;  %v2714_v36 = vrot.slane %v2693_v17, 1  ;;  %v2710_v28 = vpack.c.bf16 %v2693_v17, %v2692_v43  ;;  %v2812_v43 = vand.u32 127, %v82_v0 }
0x12ec   :  { %v2696_v14 = vrot.slane %v2691_v48, 7  ;;  %v2712_v8 = vrot.slane %v2691_v48, 1  ;;  %v2709_v46 = vpack.c.bf16 %v2691_v48, %v2690_v20  ;;  %v2816_v20 = vmul.u32 16, %v2815_v5  ;;  %v2823_v48 = vld [vmem:[%s4594_s2 + $0xb0] sm:$0xff] }
0x12ed   :  { %2729 = vrot.lane.b32.xlu1 %v2710_v28, %s3466_s17  ;;  %v2715_v39 = vsel %vm484_vm7, %v2713_v12, %v2714_v36  ;;  %v2718_v27 = vsel %vm484_vm7, %v2714_v36, %v2711_v22  ;;  %v2699_v57 = vsel %vm195_vm2, %v2697_v45, %v2698_v16  ;;  %v2702_v47 = vsel %vm195_vm2, %v2698_v16, %v2695_v34 }
0x12ee   :  { %2727 = vrot.lane.b32.xlu0 %v2709_v46, %s3466_s17  ;;  %v2722_v23 = vsel %vm1215_vm14, %v2718_v27, 0.0  ;;  %v2716_v18 = vsel %vm484_vm7, %v2712_v8, %v2713_v12  ;;  %v2717_v55 = vsel %vm484_vm7, %v2711_v22, %v2712_v8  ;;  %v2700_v54 = vsel %vm195_vm2, %v2696_v14, %v2697_v45 }
0x12ef   :  { %v2724_v59 = vpack.c.bf16 %v2722_v23, %v2715_v39  ;;  %v2720_v37 = vsel %vm1213_vm15, %v2716_v18, 0.0  ;;  %v2705_v49 = vsel %vm1025_vm13, %v2700_v54, 0.0  ;;  %v2703_v38 = vsel %vm1023_vm12, %v2702_v47, 0.0 }
0x12f0   :  { %v2723_v32 = vpack.c.bf16 %v2720_v37, %v2717_v55  ;;  %v2708_v30 = vpack.c.bf16 %v2699_v57, %v2705_v49  ;;  %v2701_v35 = vsel %vm195_vm2, %v2695_v34, %v2696_v14  ;;  %vm3470_vm2 = vmmov 0   ;;  %v2824_v34 = vld [vmem:[%s4594_s2 + $0xb8] sm:$0xff]  ;;  %v3115_v14 = vld [vmem:[%s4594_s2 + $0xc0] ss:$0 sm:$0xff] }
0x12f1   :  { %2735 = vrot.lane.b32.xlu1 %v2724_v59, %s3467_s18  ;;  %v2707_v25 = vpack.c.bf16 %v2701_v35, %v2703_v38  ;;  %3381 = vmatprep.mubr.msk.f32.mxu0 %vm3470_vm2, %v3471_v9  ;;  %vm2814_vm7 = vcmp.ge.s32.totalorder %v2812_v43, %v2813_v62  ;;  %vm2817_vm11 = vcmp.lt.s32.totalorder %v2812_v43, %v2816_v20  ;;  %v3117_v57 = vld [vmem:[%s4594_s2 + $0xd8] ss:$0 sm:$0xff]  ;;  %vm3008_vm13 = vcmask 1024  }
0x12f2   :  { %2733 = vrot.lane.b32.xlu0 %v2723_v32, %s3467_s18  ;;  %vm2818_vm12 = vmand %vm2814_vm7, %vm2817_vm11 }
0x12f3   :  { %v3114_v28 = vsel %vm2818_vm12, 1.0, %v3471_v9 }
0x135f   :  { %v2730_v26 = vpop.permute.xlu1 %2729 }
0x1360   :  { %v2728_v42 = vpop.permute.xlu0 %2727  ;;  %v2742_v50 = vsel %vm2599_vm0, %v2708_v30, %v2730_v26 }
0x1361   :  { %v2739_v31 = vsel %vm2599_vm0, %v2707_v25, %v2728_v42 }
0x1363   :  { %v2736_v58 = vpop.permute.xlu1 %2735 }
0x1364   :  { %v2734_v41 = vpop.permute.xlu0 %2733  ;;  %v2746_v51 = vsel %vm2606_vm6, %v2742_v50, %v2736_v58 }
0x1365   :  { %v2744_v11 = vsel %vm2606_vm6, %v2739_v31, %v2734_v41 }
0x1366   :  { %3369 = vmatprep.mubr.msk.bf16.mxu1 %vm2611_vm9, %v2744_v11 }
0x1367   :  { %3370 = vmatmul.mubr.msk.bf16.vlgmr.msra.gmra.mrb[32].mxu1 %vm2611_vm9, %v2746_v51 }
0x1368   :  { %3388 = vmatprep.mubr.msk.f32.mxu1 %vm3470_vm2, %v3471_v9 }
0x143a   :  { %v3371_v52 = vpop.f32.mrb[32].mxu1 }
0x143b   :  { %v2788_v61 = vpop.f32.mrb[33].mxu1  ;;  %v2805_v29 = vmax.f32 %v3371_v52, 0.0 }
0x143c   :  { %v2803_v63 = vmax.f32 %v2788_v61, 0.0  ;;  %v3372_v4 = vpop.f32.mrb[34].mxu1 }
0x143d   :  { %v2791_v60 = vpop.f32.mrb[35].mxu1  ;;  %v2806_v33 = vmax.f32 %v3372_v4, 0.0  ;;  %v2809_v24 = vadd.f32 %v2805_v29, %v2536_v56  ;;  %v2821_v56 = vld [vmem:[%s4594_s2 + $0xa0] sm:$0xff] }
0x143e   :  { %v2807_v15 = vadd.f32 %v2803_v63, %v2534_v19  ;;  %v2804_v2 = vmax.f32 %v2791_v60, 0.0  ;;  %v2928_v19 = vld [vmem:[%s4594_s2 + $0xc8] sm:$0xff] }
0x143f   :  { %v2810_v40 = vadd.f32 %v2806_v33, %v2537_v1  ;;  %v3398_v1 = vpack.c.bf16 %v2929_v21, %v2928_v19 }
0x1440   :  { %v2808_v7 = vadd.f32 %v2804_v2, %v2535_v6  ;;  %2827 = vperm.xlu0 %3415, %v2807_v15   ;;  %v2822_v6 = vld [vmem:[%s4594_s2 + $0xa8] sm:$0xff] }
0x1441   :  { %3399 = vmatpush3.bf16.msra.mxu1 %v3398_v1 }
0x1442   :  { %2832 = vperm.xlu1 %3416, %v2808_v7  }
0x1444   :  { %2842 = vperm.xlu0 %3415, %v2810_v40  }
0x1446   :  { %2837 = vperm.xlu1 %3416, %v2809_v24  }
0x14bf   :  { %v2828_v13 = vpop.permute.xlu0 %2827 }
0x14c0   :  { %v2845_v17 = vmul.f32 %v2828_v13, %v2821_v56 }
0x14c1   :  { %v2833_v44 = vpop.permute.xlu1 %2832 }
0x14c2   :  { %v2846_v45 = vmul.f32 %v2833_v44, %v2822_v6 }
0x14c3   :  { %v2843_v22 = vpop.permute.xlu0 %2842 }
0x14c4   :  { %v3392_v12 = vpack.c.bf16 %v2846_v45, %v2845_v17  ;;  %v2848_v0 = vmul.f32 %v2843_v22, %v2824_v34 }
0x14c5   :  { %v2838_v16 = vpop.permute.xlu1 %2837 }
0x14c6   :  { %v2847_v36 = vmul.f32 %v2838_v16, %v2823_v48  ;;  %3393 = vmatpush3.bf16.msra.mxu0 %v3392_v12 }
0x14c7   :  { %3394 = vmatprep.subr.bf16.mxu0 %v3469_v3 }
0x14c8   :  { %v3395_v10 = vpack.c.bf16 %v2848_v0, %v2847_v36 }
0x14ca   :  { %3396 = vmatpush3.bf16.msra.mxu0 %v3395_v10 }
0x14cd   :  { %3382 = vmatmul.mubr.msk.f32.vlgmr.msra.gmra.mrb[36].mxu0 %vm589_vm10, %v3114_v28 }
0x15a0   :  { %v2923_v8 = vpop.f32.mrb[36].mxu0 }
0x15a1   :  { %v2924_v46 = vadd.f32 %v3115_v14, %v2923_v8  ;;  %v3383_v39 = vpop.f32.mrb[37].mxu0 }
0x15a3   :  { %v2927_v27 = vmax.f32 %v2924_v46, 0.0 }
0x15a5   :  { %3389 = vmatmul.mubr.msk.f32.vlgmr.msra.gmra.mrb[36].mxu1 %vm308_vm5, %v2927_v27 }
0x1678   :  { %v3004_v47 = vpop.f32.mrb[36].mxu1 }
0x1679   :  { %v3005_v23 = vadd.f32 %v3117_v57, %v3004_v47  ;;  %v3390_v18 = vpop.f32.mrb[37].mxu1 }
0x167b   :  { %3009 = vst.msk [vmem:[%s4595_s3] sm:$0x3] %vm3008_vm13, %v3005_v23 }

</bundles_post_ra>
